<compile_context>
chip_gen: v7x
topology: tpu7x:2x2x1
jax: 0.10.0
libtpu: 0.0.40
codegen_flags: <defaults>
</compile_context>

<pallas_src>
import jax
import jax.numpy as jnp
from jax.experimental import pallas as pl
from jax.experimental.pallas import tpu as pltpu

C_IN, C_MID, C_OUT, H, W = 160, 3840, 640, 7, 7
HW = H * W            # 49 valid spatial positions
HW_PAD = 64           # padded spatial extent (sublane friendly)
TK = 768              # reduction (C_MID) chunk streamed per grid step
NK = C_MID // TK      # 5 grid steps
BN_EPS = 1e-3


def _se_proj_bn_kernel(x_se_ref, x_sp_ref, w1_ref, b1_ref, w2_ref,
                       gamma_ref, beta_ref, o_ref):
    k = pl.program_id(0)

    @pl.when(k == 0)
    def _():
        o_ref[...] = jnp.zeros_like(o_ref)

    # ---- SE gate for this K-chunk: 1x1 conv 160 -> TK (+bias), sigmoid -----
    s = jnp.dot(x_se_ref[...], w1_ref[...],
                preferred_element_type=jnp.float32)          # [1, TK]
    s = jax.nn.sigmoid(s + b1_ref[...])                      # f32 gate

    # ---- gate the spatial activations (f32 math, bf16 only at MXU feed) ----
    gated = (s * x_sp_ref[...]).astype(jnp.bfloat16)         # [HW_PAD, TK]

    # ---- projection chunk: accumulate into the resident output block -------
    o_ref[...] += jnp.dot(gated, w2_ref[...],
                          preferred_element_type=jnp.float32)  # [HW_PAD, C_OUT]

    # ---- BatchNorm2d on the last K-chunk (training-mode batch stats) -------
    @pl.when(k == pl.num_programs(0) - 1)
    def _():
        # Explicit row mask: only the HW=49 valid rows contribute to stats,
        # even if the padded rows of x_sp were ever non-zero upstream.
        row_ids = jax.lax.broadcasted_iota(jnp.int32, (HW_PAD, 1), 0)
        valid = (row_ids < HW).astype(jnp.float32)            # [HW_PAD, 1]
        z = o_ref[...] * valid                                 # [HW_PAD, C_OUT]
        inv_n = 1.0 / HW
        ssum = jnp.sum(z, axis=0, keepdims=True)               # [1, C_OUT]
        ssq = jnp.sum(z * z, axis=0, keepdims=True)            # [1, C_OUT]
        mean = ssum * inv_n
        var = ssq * inv_n - mean * mean                        # biased variance
        zn = (z - mean) * jax.lax.rsqrt(var + BN_EPS)
        o_ref[...] = zn * gamma_ref[...] + beta_ref[...]


def se_proj_bn(x_se, x_sp, w1, b1, w2, gamma, beta):
    """x_se: [1,C_IN] bf16, x_sp: [HW_PAD,C_MID] bf16 (rows >= HW are zero),
    w1: [C_IN,C_MID] bf16, b1: [1,C_MID] f32, w2: [C_MID,C_OUT] bf16,
    gamma/beta: [1,C_OUT] f32.  Returns [HW_PAD, C_OUT] f32."""
    return pl.pallas_call(
        _se_proj_bn_kernel,
        out_shape=jax.ShapeDtypeStruct((HW_PAD, C_OUT), jnp.float32),
        grid_spec=pltpu.PrefetchScalarGridSpec(
            num_scalar_prefetch=0,
            grid=(NK,),
            in_specs=[
                pl.BlockSpec((1, C_IN), lambda k: (0, 0)),       # x_se
                pl.BlockSpec((HW_PAD, TK), lambda k: (0, k)),    # x_sp chunk
                pl.BlockSpec((C_IN, TK), lambda k: (0, k)),      # w1 chunk
                pl.BlockSpec((1, TK), lambda k: (0, k)),         # b1 chunk
                pl.BlockSpec((TK, C_OUT), lambda k: (k, 0)),     # w2 chunk
                pl.BlockSpec((1, C_OUT), lambda k: (0, 0)),      # gamma
                pl.BlockSpec((1, C_OUT), lambda k: (0, 0)),      # beta
            ],
            out_specs=pl.BlockSpec((HW_PAD, C_OUT), lambda k: (0, 0)),
        ),
        compiler_params=pltpu.CompilerParams(
            # Reduction axis: the resident output accumulator requires
            # sequential execution on a single core.
            dimension_semantics=("arbitrary",),
            vmem_limit_bytes=32 * 1024 * 1024,
        ),
    )(x_se, x_sp, w1, b1, w2, gamma, beta)


def reference(x_se, x_sp, w1, b1, w2, gamma, beta):
    """Pure-f32 reference in the original channel-major layout."""
    s = jax.nn.sigmoid(w1 @ x_se + b1)                    # [C_MID, 1]
    y = s * x_sp                                          # [C_MID, HW]
    z = w2 @ y                                            # [C_OUT, HW]
    mean = jnp.mean(z, axis=1, keepdims=True)
    var = jnp.mean((z - mean) ** 2, axis=1, keepdims=True)
    return (z - mean) / jnp.sqrt(var + BN_EPS) * gamma + beta


if __name__ == "__main__":
    key = jax.random.PRNGKey(0)
    k = jax.random.split(key, 7)

    # inputs (NCHW as in the torch module)
    x1014 = jax.random.normal(k[0], (1, C_IN, 1, 1), jnp.float32)   # [1,160,1,1]
    x1011 = jax.random.normal(k[1], (1, C_MID, H, W), jnp.float32)  # [1,3840,7,7]

    # deterministic synthetic parameters (shapes from the module __init__)
    w1 = 0.05 * jax.random.normal(k[2], (C_MID, C_IN), jnp.float32)     # conv2d316.weight
    b1 = 0.05 * jax.random.normal(k[3], (C_MID, 1), jnp.float32)        # conv2d316.bias
    w2 = 0.02 * jax.random.normal(k[4], (C_OUT, C_MID), jnp.float32)    # conv2d317.weight
    gamma = 1.0 + 0.1 * jax.random.normal(k[5], (C_OUT, 1), jnp.float32)  # bn weight
    beta = 0.1 * jax.random.normal(k[6], (C_OUT, 1), jnp.float32)         # bn bias

    # ---- glue: channels-on-lanes layout for the kernel ----------------------
    # (layout plumbing only exists because the test data is NCHW; in a fused
    #  pipeline activations would stay channels-last between blocks)
    x_se_k = x1014.reshape(1, C_IN).astype(jnp.bfloat16)             # [1, 160]
    x_sp_cm = x1011.reshape(C_MID, HW)                               # [3840, 49]
    x_sp_k = (jnp.zeros((HW_PAD, C_MID), jnp.bfloat16)
              .at[:HW, :].set(x_sp_cm.T.astype(jnp.bfloat16)))       # [64, 3840]
    w1_k = w1.T.astype(jnp.bfloat16)                                 # [160, 3840]
    b1_k = b1.reshape(1, C_MID)                                      # [1, 3840]
    w2_k = w2.T.astype(jnp.bfloat16)                                 # [3840, 640]
    gamma_k = gamma.reshape(1, C_OUT)
    beta_k = beta.reshape(1, C_OUT)

    out_pad = se_proj_bn(x_se_k, x_sp_k, w1_k, b1_k, w2_k, gamma_k, beta_k)
    out_pad = jax.block_until_ready(out_pad)                         # [64, 640]

    out2d = out_pad[:HW, :].T                                        # [640, 49]
    out_nchw = out2d.reshape(1, C_OUT, H, W)                         # [1,640,7,7]

    # ---- correctness check vs pure-f32 reference -----------------------------
    ref2d = reference(x1014.reshape(C_IN, 1), x_sp_cm, w1, b1, w2, gamma, beta)
    assert out_nchw.shape == (1, C_OUT, H, W)
    # bf16 MXU feed (x_se, x_sp, w1, w2) introduces ~1e-2-level deviation from
    # the pure-f32 reference.
    assert jnp.allclose(out2d, ref2d, atol=4e-2, rtol=4e-2), "mismatch vs JAX reference"

    print("KERNEL_OK")
</pallas_src>

<mosaic_0001>
module attributes {stable_mosaic.version = 11 : i64} {
  func.func @_se_proj_bn_kernel(%arg0: i32, %arg1: memref<1x160xbf16, #tpu.memory_space<vmem>>, %arg2: memref<64x768xbf16, #tpu.memory_space<vmem>>, %arg3: memref<160x768xbf16, #tpu.memory_space<vmem>>, %arg4: memref<1x768xf32, #tpu.memory_space<vmem>>, %arg5: memref<768x640xbf16, #tpu.memory_space<vmem>>, %arg6: memref<1x640xf32, #tpu.memory_space<vmem>>, %arg7: memref<1x640xf32, #tpu.memory_space<vmem>>, %arg8: memref<64x640xf32, #tpu.memory_space<vmem>>) attributes {dimension_semantics = [#tpu.dimension_semantics<arbitrary>], iteration_bounds = array<i64: 5>, scalar_prefetch = 0 : i64, scratch_operands = 0 : i64, tpu.core_type = #tpu.core_type<tc>, window_params = [{pipeline_mode = #tpu.pipeline_mode<synchronous>, transform_indices = @transform_0, window_bounds = array<i64: 1, 160>}, {transform_indices = @transform_1, window_bounds = array<i64: 64, 768>}, {transform_indices = @transform_2, window_bounds = array<i64: 160, 768>}, {transform_indices = @transform_3, window_bounds = array<i64: 1, 768>}, {transform_indices = @transform_4, window_bounds = array<i64: 768, 640>}, {pipeline_mode = #tpu.pipeline_mode<synchronous>, transform_indices = @transform_5, window_bounds = array<i64: 1, 640>}, {pipeline_mode = #tpu.pipeline_mode<synchronous>, transform_indices = @transform_6, window_bounds = array<i64: 1, 640>}, {pipeline_mode = #tpu.pipeline_mode<synchronous>, transform_indices = @transform_7, window_bounds = array<i64: 64, 640>}]} {
    %c0_i32 = arith.constant 0 : i32
    %0 = arith.cmpi eq, %arg0, %c0_i32 : i32
    %1 = arith.extui %0 : i1 to i32
    %c0_i32_0 = arith.constant 0 : i32
    %2 = arith.cmpi ne, %1, %c0_i32_0 : i32
    scf.if %2 {
      %cst_17 = arith.constant 0.000000e+00 : f32
      %26 = vector.broadcast %cst_17 : f32 to vector<64x640xf32>
      %c0_18 = arith.constant 0 : index
      %c0_19 = arith.constant 0 : index
      %27 = vector.load %arg8[%c0_18, %c0_19] : memref<64x640xf32, #tpu.memory_space<vmem>>, vector<64x640xf32>
      tpu.vector_store %arg8[%c0_18, %c0_19], %26 {strides = array<i32>} : memref<64x640xf32, #tpu.memory_space<vmem>>, vector<64x640xf32>,
    } else {
    }
    %c0 = arith.constant 0 : index
    %c0_1 = arith.constant 0 : index
    %3 = vector.load %arg1[%c0, %c0_1] : memref<1x160xbf16, #tpu.memory_space<vmem>>, vector<1x160xbf16>
    %c0_2 = arith.constant 0 : index
    %c0_3 = arith.constant 0 : index
    %4 = vector.load %arg3[%c0_2, %c0_3] : memref<160x768xbf16, #tpu.memory_space<vmem>>, vector<160x768xbf16>
    %cst = arith.constant dense<0.000000e+00> : vector<1x768xf32>
    %5 = tpu.matmul %3, %4, %cst {dimension_numbers = #tpu.dot_dimension_numbers<[1], [0], [0], [1], [0, 0, 1, 1], [], []>} : vector<1x160xbf16>, vector<160x768xbf16>, vector<1x768xf32> -> vector<1x768xf32>
    %c0_4 = arith.constant 0 : index
    %c0_5 = arith.constant 0 : index
    %6 = vector.load %arg4[%c0_4, %c0_5] : memref<1x768xf32, #tpu.memory_space<vmem>>, vector<1x768xf32>
    %7 = arith.addf %5, %6 : vector<1x768xf32>
    %8 = arith.negf %7 : vector<1x768xf32>
    %9 = math.exp %8 : vector<1x768xf32>
    %cst_6 = arith.constant 1.000000e+00 : f32
    %10 = vector.broadcast %cst_6 : f32 to vector<1x768xf32>
    %11 = arith.addf %10, %9 : vector<1x768xf32>
    %12 = arith.divf %10, %11 : vector<1x768xf32>
    %c0_7 = arith.constant 0 : index
    %c0_8 = arith.constant 0 : index
    %13 = vector.load %arg2[%c0_7, %c0_8] : memref<64x768xbf16, #tpu.memory_space<vmem>>, vector<64x768xbf16>
    %14 = arith.extf %13 : vector<64x768xbf16> to vector<64x768xf32>
    %15 = vector.broadcast %12 : vector<1x768xf32> to vector<64x768xf32>
    %16 = arith.mulf %15, %14 : vector<64x768xf32>
    %17 = arith.truncf %16 : vector<64x768xf32> to vector<64x768xbf16>
    %c0_9 = arith.constant 0 : index
    %c0_10 = arith.constant 0 : index
    %18 = vector.load %arg8[%c0_9, %c0_10] : memref<64x640xf32, #tpu.memory_space<vmem>>, vector<64x640xf32>
    %c0_11 = arith.constant 0 : index
    %c0_12 = arith.constant 0 : index
    %19 = vector.load %arg5[%c0_11, %c0_12] : memref<768x640xbf16, #tpu.memory_space<vmem>>, vector<768x640xbf16>
    %cst_13 = arith.constant dense<0.000000e+00> : vector<64x640xf32>
    %20 = tpu.matmul %17, %19, %cst_13 {dimension_numbers = #tpu.dot_dimension_numbers<[1], [0], [0], [1], [0, 0, 1, 1], [], []>} : vector<64x768xbf16>, vector<768x640xbf16>, vector<64x640xf32> -> vector<64x640xf32>
    %21 = arith.addf %18, %20 : vector<64x640xf32>
    %c0_14 = arith.constant 0 : index
    %c0_15 = arith.constant 0 : index
    %22 = vector.load %arg8[%c0_14, %c0_15] : memref<64x640xf32, #tpu.memory_space<vmem>>, vector<64x640xf32>
    tpu.vector_store %arg8[%c0_14, %c0_15], %21 {strides = array<i32>} : memref<64x640xf32, #tpu.memory_space<vmem>>, vector<64x640xf32>,
    %c4_i32 = arith.constant 4 : i32
    %23 = arith.cmpi eq, %arg0, %c4_i32 : i32
    %24 = arith.extui %23 : i1 to i32
    %c0_i32_16 = arith.constant 0 : i32
    %25 = arith.cmpi ne, %24, %c0_i32_16 : i32
    scf.if %25 {
      %26 = tpu.iota {dimensions = array<i32: 0>} : vector<64x1xi32>
      %c49_i32 = arith.constant 49 : i32
      %27 = vector.broadcast %c49_i32 : i32 to vector<64x1xi32>
      %28 = arith.cmpi slt, %26, %27 : vector<64x1xi32>
      %29 = arith.extui %28 : vector<64x1xi1> to vector<64x1xi32>
      %30 = arith.sitofp %29 : vector<64x1xi32> to vector<64x1xf32>
      %c0_17 = arith.constant 0 : index
      %c0_18 = arith.constant 0 : index
      %31 = vector.load %arg8[%c0_17, %c0_18] : memref<64x640xf32, #tpu.memory_space<vmem>>, vector<64x640xf32>
      %32 = vector.broadcast %30 : vector<64x1xf32> to vector<64x640xf32>
      %33 = arith.mulf %31, %32 : vector<64x640xf32>
      %cst_19 = arith.constant dense<0.000000e+00> : vector<640xf32>
      %34 = vector.multi_reduction <add>, %33, %cst_19 [0] : vector<64x640xf32> to vector<640xf32>
      %35 = vector.shape_cast %34 : vector<640xf32> to vector<1x640xf32>
      %36 = arith.mulf %33, %33 : vector<64x640xf32>
      %cst_20 = arith.constant dense<0.000000e+00> : vector<640xf32>
      %37 = vector.multi_reduction <add>, %36, %cst_20 [0] : vector<64x640xf32> to vector<640xf32>
      %38 = vector.shape_cast %37 : vector<640xf32> to vector<1x640xf32>
      %cst_21 = arith.constant 0.0204081628 : f32
      %39 = vector.broadcast %cst_21 : f32 to vector<1x640xf32>
      %40 = arith.mulf %35, %39 : vector<1x640xf32>
      %cst_22 = arith.constant 0.0204081628 : f32
      %41 = vector.broadcast %cst_22 : f32 to vector<1x640xf32>
      %42 = arith.mulf %38, %41 : vector<1x640xf32>
      %43 = arith.mulf %40, %40 : vector<1x640xf32>
      %44 = arith.subf %42, %43 : vector<1x640xf32>
      %45 = vector.broadcast %40 : vector<1x640xf32> to vector<64x640xf32>
      %46 = arith.subf %33, %45 : vector<64x640xf32>
      %cst_23 = arith.constant 1.000000e-03 : f32
      %47 = vector.broadcast %cst_23 : f32 to vector<1x640xf32>
      %48 = arith.addf %44, %47 : vector<1x640xf32>
      %49 = math.rsqrt %48 : vector<1x640xf32>
      %50 = vector.broadcast %49 : vector<1x640xf32> to vector<64x640xf32>
      %51 = arith.mulf %46, %50 : vector<64x640xf32>
      %c0_24 = arith.constant 0 : index
      %c0_25 = arith.constant 0 : index
      %52 = vector.load %arg6[%c0_24, %c0_25] : memref<1x640xf32, #tpu.memory_space<vmem>>, vector<1x640xf32>
      %53 = vector.broadcast %52 : vector<1x640xf32> to vector<64x640xf32>
      %54 = arith.mulf %51, %53 : vector<64x640xf32>
      %c0_26 = arith.constant 0 : index
      %c0_27 = arith.constant 0 : index
      %55 = vector.load %arg7[%c0_26, %c0_27] : memref<1x640xf32, #tpu.memory_space<vmem>>, vector<1x640xf32>
      %56 = vector.broadcast %55 : vector<1x640xf32> to vector<64x640xf32>
      %57 = arith.addf %54, %56 : vector<64x640xf32>
      %c0_28 = arith.constant 0 : index
      %c0_29 = arith.constant 0 : index
      %58 = vector.load %arg8[%c0_28, %c0_29] : memref<64x640xf32, #tpu.memory_space<vmem>>, vector<64x640xf32>
      tpu.vector_store %arg8[%c0_28, %c0_29], %57 {strides = array<i32>} : memref<64x640xf32, #tpu.memory_space<vmem>>, vector<64x640xf32>,
    } else {
    }
    return
  }
  func.func @transform_0(%arg0: i32) -> (i32, i32) {
    %c0_i32 = arith.constant 0 : i32
    %c0_i32_0 = arith.constant 0 : i32
    %c0_i32_1 = arith.constant 0 : i32
    return %c0_i32, %c0_i32_0 : i32, i32
  }
  func.func @transform_1(%arg0: i32) -> (i32, i32) {
    %c0_i32 = arith.constant 0 : i32
    %c0_i32_0 = arith.constant 0 : i32
    return %c0_i32, %arg0 : i32, i32
  }
  func.func @transform_2(%arg0: i32) -> (i32, i32) {
    %c0_i32 = arith.constant 0 : i32
    %c0_i32_0 = arith.constant 0 : i32
    return %c0_i32, %arg0 : i32, i32
  }
  func.func @transform_3(%arg0: i32) -> (i32, i32) {
    %c0_i32 = arith.constant 0 : i32
    %c0_i32_0 = arith.constant 0 : i32
    return %c0_i32, %arg0 : i32, i32
  }
  func.func @transform_4(%arg0: i32) -> (i32, i32) {
    %c0_i32 = arith.constant 0 : i32
    %c0_i32_0 = arith.constant 0 : i32
    return %arg0, %c0_i32 : i32, i32
  }
  func.func @transform_5(%arg0: i32) -> (i32, i32) {
    %c0_i32 = arith.constant 0 : i32
    %c0_i32_0 = arith.constant 0 : i32
    %c0_i32_1 = arith.constant 0 : i32
    return %c0_i32, %c0_i32_0 : i32, i32
  }
  func.func @transform_6(%arg0: i32) -> (i32, i32) {
    %c0_i32 = arith.constant 0 : i32
    %c0_i32_0 = arith.constant 0 : i32
    %c0_i32_1 = arith.constant 0 : i32
    return %c0_i32, %c0_i32_0 : i32, i32
  }
  func.func @transform_7(%arg0: i32) -> (i32, i32) {
    %c0_i32 = arith.constant 0 : i32
    %c0_i32_0 = arith.constant 0 : i32
    %c0_i32_1 = arith.constant 0 : i32
    return %c0_i32, %c0_i32_0 : i32, i32
  }
}

</mosaic_0001>

<bundles_post_ra>
// kernel: tpu_custom_call.1
= control target key start
LH: loop header
LB: loop body
LE: loop exit
PB: predicated region body
PF: predicated region fallthrough
CT: control target
= control target key end

     0   :  { %s7112_s0 = inlined_call_operand.hbm [shape: bf16[1,160], index: 0, kind: input, shape index: {}]   ;;  %s7113_s1 = inlined_call_operand.hbm [shape: bf16[64,3840], index: 1, kind: input, shape index: {}]   ;;  %s7114_s2 = inlined_call_operand.hbm [shape: bf16[160,3840], index: 2, kind: input, shape index: {}]   ;;  %s7115_s3 = inlined_call_operand.hbm [shape: f32[1,3840], index: 3, kind: input, shape index: {}]   ;;  %s7116_s4 = inlined_call_operand.hbm [shape: bf16[3840,640], index: 4, kind: input, shape index: {}]   ;;  %s7117_s5 = inlined_call_operand.hbm [shape: f32[1,640], index: 5, kind: input, shape index: {}]   ;;  %s7118_s6 = inlined_call_operand.hbm [shape: f32[1,640], index: 6, kind: input, shape index: {}]   ;;  %s7119_s7 = inlined_call_operand.hbm [shape: f32[64,640], index: 7, kind: output, shape index: {}]  }
   0x1   :  { %7157 = sst [smem:[#allocation39_spill]] %s7113_s1 }
   0x2   :  { %7158 = sst [smem:[#allocation40_spill]] %s7117_s5 }
   0x3   :  { %7159 = sst [smem:[#allocation41_spill]] %s7119_s7 }
   0x4   :  { %12 = vsyncpa [#allocation3], 0 }
   0x5   :  { %13 = vsyncpa [#allocation6], 0 }
   0x6   :  { %15 = vsyncpa [#allocation6 + $0x1], 0 }
   0x7   :  { %16 = vsyncpa [#allocation9], 0 }
   0x8   :  { %18 = vsyncpa [#allocation9 + $0x1], 0 }
   0x9   :  { %19 = vsyncpa [#allocation12], 0 }
   0xa   :  { %20 = vsyncpa [#allocation4], 0  ;;  %s5676_s24 = smov 0   ;;  %s5678_s25 = smov 0  }
   0xb   :  { %s5680_s26 = smov 0   ;;  %s5682_s27 = smov 0  }
   0xc LB: > { %7160 = sst [smem:[#allocation20_spill]] %s5612_s26  ;;  %s5695_s28 = sadd.s32 4294967295, %s5616_s27   ;;  %s5616_s27 = sphi %s5682_s27, %s7227_s27   ;;  %s5612_s26 = sphi %s5680_s26, %s7229_s26   ;;  %s5608_s25 = sphi %s5678_s25, %s7231_s25   ;;  %s5604_s24 = sphi %s5676_s24, %s7230_s24  }
   0xd   : > { %s5698_s29 = sadd.s32 1, %s5616_s27   ;;  %s54_s8 = sadd.s32 1, %s5612_s26 }
   0xe   : > { %7161 = sst [smem:[#allocation21_spill]] %s5698_s29  ;;  %s51_s30 = ssub.s32 %s5616_s27, %s5698_s29 }
   0xf   : > { %p52_p0 = scmp.eq.s32.totalorder %s51_s30, 0  ;;  %p61_p1 = scmp.ne.s32.totalorder %s5612_s26, %s5608_s25 }
  0x10   : > { %p62_p2 = scmp.eq.s32.totalorder %s5616_s27, 0  ;;  %p67_p3 = scmp.ne.s32.totalorder %s5608_s25, %s5604_s24 }
  0x11   : > { %s5708_s9 = scalar_select %p52_p0, %s5612_s26, %s54_s8  }
  0x12   : > { %p5710_p4 = por %p62_p2, %p61_p1  ;;  %p7120_p5 = scmp.eq.s32.totalorder %s5695_s28, 0 }
  0x13   : > { %7162 = sst [smem:[#allocation22_spill]] %s5708_s9  ;;  %p4247_p6 = scmp.ge.s32.totalorder %s5616_s27, 1 }
  0x14   : > { %p219_p7 = scmp.lt.s32.totalorder %s5616_s27, 6  ;;  %p5719_p8 = por %p7120_p5, %p67_p3 }
  0x15   : > { %s5618_s13 = smov [#allocation11]   ;;  %p4823_p12 = scmp.lt.s32.totalorder %s5616_s27, 5 }
  0x16   : > { %s7164_s11 = scalar_select %p5719_p8, 1, 0 }
  0x17   : > { %p5724_p10 = pnand %p4247_p6, %p219_p7  ;;  %s243_s14 = sshll.u32 %s5618_s13, 4  ;;  %s244_s14 = int_to_ptr.vmem [resolvable:$true] %s243_s14 }
  0x18   : > { %s7125_s15 = sand.u32 1, %s5616_s27   ;;  %p5740_p0 = pnand %p4823_p12, %p5710_p4 }
  0x19   : > { %s7165_s12 = scalar_select %p5724_p10, 1, 0 }
  0x1a   : > { %p4797_p11 = pneg %p5724_p10  ;;  %s5745_s18 = sand.u32 1, %s5612_s26  }
  0x1b   : > { %s7167_s17 = scalar_select %p5740_p0, 1, 0 }
  0x1c   : > { %p5734_p13 = pnand %p4797_p11, %p7120_p5  ;;  %s4764_s19 = smul.u32 192, %s5745_s18 }
  0x1d   : > { %s7168_s5 = sld [smem:[#allocation40_spill]] }
  0x1e   : > { %s7166_s16 = scalar_select %p5734_p13, 1, 0 }
  0x1f   : > { %p5756_p2 = pneg %p5734_p13 }
  0x21   : > { %s7169_s30 = scalar_select %p5756_p2, 1, 0 }
  0x23   : > { %s5336_s22 = scalar_lea.hbm %s7168_s5, 80 }
  0x24   : > { %p5337_p1 = scmp.ne.s32.totalorder %s7168_s5, %s5336_s22  ;;  %p5343_p6 = scmp.lt.u32.totalorder %s5336_s22, %s7168_s5 }
  0x26   : > { %p5339_p3 = pnand %p5756_p2, %p5337_p1 }
  0x28   : > { %p5340_p4 = pneg %p5339_p3 }
  0x2a   : > { %p5345_p7 = pnand %p5343_p6, %p5340_p4 }
  0x2c   : > { %5348 = shalt.err (!%p5345_p7)
}
  0x2d   : > { %s5349_s13 = scalar_lea.vmem %s244_s14, 80  ;;  %s5356_s20 = scalar_lea.vmem %s244_s14, 96 }
  0x2e   : > { %p5350_p11 = scmp.ne.s32.totalorder %s244_s14, %s5349_s13  ;;  %p5357_p5 = scmp.lt.s32.totalorder %s244_s14, %s244_s14 }
  0x2f   : > { %p5358_p8 = scmp.lt.s32.totalorder %s5356_s20, %s5349_s13 }
  0x30   : > { %p5352_p12 = pnand %p5350_p11, %p5756_p2 }
  0x31   : > { %p5359_p10 = por %p5358_p8, %p5357_p5 }
  0x32   : > { %p5353_p9 = pneg %p5352_p12 }
  0x34   : > { %p5360_p0 = pnand %p5359_p10, %p5353_p9 }
  0x36   : > { %5363 = shalt.err (!%p5360_p0)
}
  0x37   : > { %4803 = dma.hbm_to_vmem [thread:$0]  (!%p5734_p13), %s7168_s5, 80, %s244_s14, [#allocation12]  }
  0x38   : > { %s7124_s22 = smul.u32 384, %s5616_s27  ;;  %s269_s24 = scalar_lea.vmem [#allocation5], %s4764_s19 }
  0x39   : > { %s276_s8 = sshll.u32 %s269_s24, 4  ;;  %s7170_s1 = sld [smem:[#allocation39_spill]]  ;;  %s5773_s8 = int_to_ptr.vmem [resolvable:$true] %s276_s8 }
  0x3a   : > { %s5784_s21 = scalar_lea.sflag [#allocation6], %s7125_s15  ;;  %p7171_p8 = scmp.ne.s32.totalorder %s7167_s17, 0 }
  0x3c   : > { %p5790_p9 = pneg %p7171_p8 }
  0x3e   : > { %s7172_s14 = scalar_select %p5790_p9, 1, 0 }
  0x3f   : > { %s5780_s20 = scalar_lea.hbm %s7170_s1, %s7124_s22  ;;  %s5369_s10 = scalar_lea.hbm %s7170_s1, 15360 }
  0x40   : > { %s5364_s23 = scalar_lea.hbm %s5780_s20, 3072  ;;  %p5370_p1 = scmp.lt.u32.totalorder %s5780_s20, %s7170_s1 }
  0x41   : > { %p5365_p5 = scmp.ne.s32.totalorder %s5780_s20, %s5364_s23  ;;  %p5371_p3 = scmp.lt.u32.totalorder %s5369_s10, %s5364_s23 }
  0x42   : > { %p5373_p6 = scmp.lt.u32.totalorder %s5364_s23, %s5780_s20 }
  0x43   : > { %p5367_p10 = pnand %p5790_p9, %p5365_p5  ;;  %p5372_p4 = por %p5371_p3, %p5370_p1 }
  0x45   : > { %p5368_p0 = pneg %p5367_p10  ;;  %p5374_p7 = por %p5373_p6, %p5372_p4 }
  0x47   : > { %p5375_p11 = pnand %p5374_p7, %p5368_p0 }
  0x49   : > { %5378 = shalt.err (!%p5375_p11)
}
  0x4a   : > { %s5379_s15 = scalar_lea.vmem %s5773_s8, 3072  ;;  %s5619_s19 = smov [#allocation5]  }
  0x4b   : > { %p5380_p12 = scmp.ne.s32.totalorder %s5773_s8, %s5379_s15  ;;  %s5384_s24 = sshll.u32 %s5619_s19, 4  ;;  %s5385_s24 = int_to_ptr.vmem [resolvable:$false] %s5384_s24 }
  0x4c   : > { %s5386_s22 = scalar_lea.vmem %s5385_s24, 6144  ;;  %p5387_p13 = scmp.lt.s32.totalorder %s5773_s8, %s5385_s24 }
  0x4d   : > { %p5382_p5 = pnand %p5380_p12, %p5790_p9  ;;  %p5388_p2 = scmp.lt.s32.totalorder %s5386_s22, %s5379_s15 }
  0x4f   : > { %p5383_p10 = pneg %p5382_p5  ;;  %p5389_p1 = por %p5388_p2, %p5387_p13 }
  0x51   : > { %p5390_p3 = pnand %p5389_p1, %p5383_p10 }
  0x53   : > { %5393 = shalt.err (!%p5390_p3)
}
  0x54   : > { %s7134_s23 = smov 1920   ;;  %s7136_s10 = smov 384  }
  0x55   : > { %s7137_s13 = smov 24   ;;  %s4766_s15 = smul.u32 6, %s5745_s18 }
  0x56   : > { %4810 = dma.hbm_to_vmem [thread:$0]  (!%p7171_p8), %s5780_s20, 3072, %s5773_s8, %s5784_s21, %s7134_s23, %s7136_s10, %s7137_s13  }
  0x57   : > { %s4579_s19 = smul.u32 96, %s5616_s27  ;;  %s5623_s24 = smov [#allocation2]  }
  0x58   : > { %s232_s22 = sshll.u32 %s5623_s24, 4  ;;  %s311_s26 = scalar_lea.vmem [#allocation8], %s4766_s15  ;;  %s5819_s22 = int_to_ptr.vmem [resolvable:$true] %s232_s22 }
  0x59   : > { %s5824_s9 = scalar_lea.hbm %s7115_s3, %s4579_s19  ;;  %s319_s29 = sshll.u32 %s311_s26, 4  ;;  %s320_s29 = int_to_ptr.vmem [resolvable:$true] %s319_s29 }
  0x5a   : > { %s7173_s7 = sand.u32 1, %s5616_s27   ;;  %s5394_s20 = scalar_lea.hbm %s5824_s9, 96 }
  0x5b   : > { %s5828_s8 = scalar_lea.sflag [#allocation9], %s7173_s7  ;;  %p5395_p13 = scmp.ne.s32.totalorder %s5824_s9, %s5394_s20 }
  0x5c   : > { %s5399_s1 = scalar_lea.hbm %s7115_s3, 480  ;;  %p5400_p4 = scmp.lt.u32.totalorder %s5824_s9, %s7115_s3 }
  0x5d   : > { %p5397_p2 = pnand %p5395_p13, %p5790_p9  ;;  %p5401_p6 = scmp.lt.u32.totalorder %s5399_s1, %s5394_s20 }
  0x5e   : > { %p5403_p11 = scmp.lt.u32.totalorder %s5394_s20, %s5824_s9 }
  0x5f   : > { %p5398_p0 = pneg %p5397_p2  ;;  %p5402_p7 = por %p5401_p6, %p5400_p4 }
  0x61   : > { %p5404_p12 = por %p5403_p11, %p5402_p7 }
  0x63   : > { %p5405_p5 = pnand %p5404_p12, %p5398_p0 }
  0x65   : > { %5408 = shalt.err (!%p5405_p5)
}
  0x66   : > { %s5409_s7 = scalar_lea.vmem %s320_s29, 96  ;;  %s5624_s26 = smov [#allocation8]  }
  0x67   : > { %p5410_p10 = scmp.ne.s32.totalorder %s320_s29, %s5409_s7  ;;  %s5414_s15 = sshll.u32 %s5624_s26, 4  ;;  %s5415_s15 = int_to_ptr.vmem [resolvable:$false] %s5414_s15 }
  0x68   : > { %s5416_s23 = scalar_lea.vmem %s5415_s15, 192  ;;  %p5417_p13 = scmp.lt.s32.totalorder %s320_s29, %s5415_s15 }
  0x69   : > { %p5412_p1 = pnand %p5410_p10, %p5790_p9  ;;  %p5418_p2 = scmp.lt.s32.totalorder %s5416_s23, %s5409_s7 }
  0x6b   : > { %p5413_p3 = pneg %p5412_p1  ;;  %p5419_p8 = por %p5418_p2, %p5417_p13 }
  0x6d   : > { %p5420_p4 = pnand %p5419_p8, %p5413_p3 }
  0x6f   : > { %5423 = shalt.err (!%p5420_p4)
}
  0x70   : > { %p7174_p6 = scmp.ne.s32.totalorder %s7167_s17, 0  ;;  %s5424_s1 = scalar_lea.hbm %s7112_s0, 32 }
  0x71   : > { %p5425_p0 = scmp.ne.s32.totalorder %s7112_s0, %s5424_s1  ;;  %p7175_p7 = scmp.ne.s32.totalorder %s7169_s30, 0 }
  0x72   : > { %4816 = dma.hbm_to_vmem [thread:$0]  (!%p7174_p6), %s5824_s9, 96, %s320_s29, %s5828_s8  }
  0x73   : > { %p5427_p11 = pnand %p5425_p0, %p7175_p7  ;;  %p5431_p8 = scmp.lt.u32.totalorder %s5424_s1, %s7112_s0 }
  0x75   : > { %p5428_p12 = pneg %p5427_p11 }
  0x77   : > { %p5433_p5 = pnand %p5431_p8, %p5428_p12 }
  0x79   : > { %5436 = shalt.err (!%p5433_p5)
}
  0x7a   : > { %s5437_s29 = scalar_lea.vmem %s5819_s22, 32  ;;  %p5445_p13 = scmp.lt.s32.totalorder %s5819_s22, %s5819_s22 }
  0x7b   : > { %p5438_p10 = scmp.ne.s32.totalorder %s5819_s22, %s5437_s29  ;;  %p5446_p2 = scmp.lt.s32.totalorder %s5437_s29, %s5437_s29 }
  0x7d   : > { %p5440_p1 = pnand %p5438_p10, %p7175_p7  ;;  %p5447_p4 = por %p5446_p2, %p5445_p13 }
  0x7f   : > { %p5441_p3 = pneg %p5440_p1 }
  0x81   : > { %p5448_p0 = pnand %p5447_p4, %p5441_p3 }
  0x83   : > { %5451 = shalt.err (!%p5448_p0)
}
  0x84   : > { %p7176_p11 = scmp.ne.s32.totalorder %s7166_s16, 0  ;;  %s5625_s23 = smov [#allocation13]  }
  0x85   : > { %s254_s20 = sshll.u32 %s5625_s23, 4  ;;  %s4765_s24 = smul.u32 480, %s5745_s18  ;;  %s255_s20 = int_to_ptr.vmem [resolvable:$true] %s254_s20 }
  0x86   : > { %4800 = dma.hbm_to_vmem [thread:$0]  (!%p7176_p11), %s7112_s0, 32, %s5819_s22, [#allocation3]  }
  0x87   : > { %s7177_s1 = smul.u32 384, %s5616_s27  ;;  %s5452_s10 = scalar_lea.hbm %s7118_s6, 80 }
  0x88   : > { %p5453_p12 = scmp.ne.s32.totalorder %s7118_s6, %s5452_s10  ;;  %p5459_p10 = scmp.lt.u32.totalorder %s5452_s10, %s7118_s6 }
  0x89   : > { %s5877_s7 = scalar_lea.hbm %s7114_s2, %s7177_s1 }
  0x8a   : > { %p5455_p8 = pnand %p5453_p12, %p7175_p7 }
  0x8c   : > { %p5456_p5 = pneg %p5455_p8 }
  0x8e   : > { %p5461_p1 = pnand %p5459_p10, %p5456_p5 }
  0x90   : > { %5464 = shalt.err (!%p5461_p1)
}
  0x91   : > { %s5465_s23 = scalar_lea.vmem %s255_s20, 80  ;;  %s5472_s1 = scalar_lea.vmem %s255_s20, 96 }
  0x92   : > { %p5466_p3 = scmp.ne.s32.totalorder %s255_s20, %s5465_s23  ;;  %p5473_p4 = scmp.lt.s32.totalorder %s255_s20, %s255_s20 }
  0x93   : > { %p5474_p0 = scmp.lt.s32.totalorder %s5472_s1, %s5465_s23 }
  0x94   : > { %p5468_p13 = pnand %p5466_p3, %p7175_p7 }
  0x95   : > { %p5475_p6 = por %p5474_p0, %p5473_p4 }
  0x96   : > { %p5469_p2 = pneg %p5468_p13 }
  0x98   : > { %p5476_p9 = pnand %p5475_p6, %p5469_p2 }
  0x9a   : > { %5479 = shalt.err (!%p5476_p9)
}
  0x9b   : > { %4806 = dma.hbm_to_vmem [thread:$0]  (!%p7176_p11), %s7118_s6, 80, %s255_s20, [#allocation12]  }
  0x9c   : > { %s4767_s30 = smul.u32 1920, %s5745_s18  ;;  %s290_s10 = scalar_lea.vmem [#allocation7], %s4765_s24 }
  0x9d   : > { %s297_s19 = sshll.u32 %s290_s10, 4  ;;  %s4824_s26 = smul.u32 30720, %s5616_s27  ;;  %s5899_s19 = int_to_ptr.vmem [resolvable:$true] %s297_s19 }
  0x9e   : > { %s5480_s29 = scalar_lea.hbm %s5877_s7, 7680  ;;  %p7178_p6 = scmp.ne.s32.totalorder %s7172_s14, 0 }
  0x9f   : > { %p5481_p9 = scmp.ne.s32.totalorder %s5877_s7, %s5480_s29  ;;  %s5485_s22 = scalar_lea.hbm %s7114_s2, 38400 }
  0xa0   : > { %p5486_p8 = scmp.lt.u32.totalorder %s5877_s7, %s7114_s2  ;;  %p5487_p11 = scmp.lt.u32.totalorder %s5485_s22, %s5480_s29 }
  0xa1   : > { %p5483_p7 = pnand %p5481_p9, %p7178_p6  ;;  %p5489_p10 = scmp.lt.u32.totalorder %s5480_s29, %s5877_s7 }
  0xa2   : > { %p5488_p5 = por %p5487_p11, %p5486_p8 }
  0xa3   : > { %p5484_p12 = pneg %p5483_p7 }
  0xa4   : > { %p5490_p1 = por %p5489_p10, %p5488_p5 }
  0xa6   : > { %p5491_p3 = pnand %p5490_p1, %p5484_p12 }
  0xa8   : > { %5494 = shalt.err (!%p5491_p3)
}
  0xa9   : > { %s5495_s20 = scalar_lea.vmem %s5899_s19, 7680  ;;  %s5626_s24 = smov [#allocation7]  }
  0xaa   : > { %p5496_p13 = scmp.ne.s32.totalorder %s5899_s19, %s5495_s20  ;;  %s5500_s1 = sshll.u32 %s5626_s24, 4  ;;  %s5501_s1 = int_to_ptr.vmem [resolvable:$false] %s5500_s1 }
  0xab   : > { %s5502_s13 = scalar_lea.vmem %s5501_s1, 15360  ;;  %p5503_p0 = scmp.lt.s32.totalorder %s5899_s19, %s5501_s1 }
  0xac   : > { %p5498_p2 = pnand %p5496_p13, %p7178_p6  ;;  %p5504_p9 = scmp.lt.s32.totalorder %s5502_s13, %s5495_s20 }
  0xae   : > { %p5499_p4 = pneg %p5498_p2  ;;  %p5505_p7 = por %p5504_p9, %p5503_p0 }
  0xb0   : > { %p5506_p8 = pnand %p5505_p7, %p5499_p4 }
  0xb2   : > { %5509 = shalt.err (!%p5506_p8)
}
  0xb3   : > { %p7179_p12 = scmp.ne.s32.totalorder %s7167_s17, 0  ;;  %s7180_s5 = smov 24  }
  0xb4   : > { %s7181_s10 = smov 384   ;;  %s7182_s29 = smov 1920  }
  0xb5   : > { %4813 = dma.hbm_to_vmem [thread:$0]  (!%p7179_p12), %s5877_s7, 7680, %s5899_s19, %s5784_s21, %s7182_s29, %s7181_s10, %s7180_s5  }
  0xb6   : > { %s5931_s22 = scalar_lea.hbm %s7116_s4, %s4824_s26  ;;  %s330_s15 = scalar_lea.vmem [#allocation10], %s4767_s30 }
  0xb7   : > { %s338_s23 = sshll.u32 %s330_s15, 4  ;;  %s5510_s20 = scalar_lea.hbm %s5931_s22, 30720  ;;  %s5935_s23 = int_to_ptr.vmem [resolvable:$true] %s338_s23 }
  0xb8   : > { %p5511_p11 = scmp.ne.s32.totalorder %s5931_s22, %s5510_s20  ;;  %s5515_s7 = scalar_lea.hbm %s7116_s4, 153600 }
  0xb9   : > { %p5516_p1 = scmp.lt.u32.totalorder %s5931_s22, %s7116_s4  ;;  %p5517_p3 = scmp.lt.u32.totalorder %s5515_s7, %s5510_s20 }
  0xba   : > { %p5513_p5 = pnand %p5511_p11, %p7178_p6  ;;  %p5519_p2 = scmp.lt.u32.totalorder %s5510_s20, %s5931_s22 }
  0xbb   : > { %p5518_p13 = por %p5517_p3, %p5516_p1 }
  0xbc   : > { %p5514_p10 = pneg %p5513_p5 }
  0xbd   : > { %p5520_p4 = por %p5519_p2, %p5518_p13 }
  0xbf   : > { %p5521_p0 = pnand %p5520_p4, %p5514_p10 }
  0xc1   : > { %5524 = shalt.err (!%p5521_p0)
}
  0xc2   : > { %s5525_s18 = scalar_lea.vmem %s5935_s23, 30720  ;;  %s5627_s30 = smov [#allocation10]  }
  0xc3   : > { %p5526_p9 = scmp.ne.s32.totalorder %s5935_s23, %s5525_s18  ;;  %s5530_s24 = sshll.u32 %s5627_s30, 4  ;;  %s5531_s24 = int_to_ptr.vmem [resolvable:$false] %s5530_s24 }
  0xc4   : > { %s5532_s1 = scalar_lea.vmem %s5531_s24, 61440  ;;  %p5533_p11 = scmp.lt.s32.totalorder %s5935_s23, %s5531_s24 }
  0xc5   : > { %p5528_p7 = pnand %p5526_p9, %p7178_p6  ;;  %p5534_p5 = scmp.lt.s32.totalorder %s5532_s1, %s5525_s18 }
  0xc7   : > { %p5529_p8 = pneg %p5528_p7  ;;  %p5535_p1 = por %p5534_p5, %p5533_p11 }
  0xc9   : > { %p5536_p3 = pnand %p5535_p1, %p5529_p8 }
  0xcb   : > { %5539 = shalt.err (!%p5536_p3)
}
  0xcc   : > { %s5628_s13 = smov 320   ;;  %s5629_s5 = smov 20  }
  0xcd   : > { %4819 = dma.hbm_to_vmem [thread:$0]  (!%p7179_p12), %s5931_s22, 30720, %s5935_s23, %s5828_s8, %s5628_s13, %s5628_s13, %s5629_s5  }
  0xce   : > { %p7183_p6 = scmp.ne.s32.totalorder %s7165_s12, 0 }
  0xcf   : > { %p7184_p10 = scmp.eq.s32.totalorder (!%p7183_p6), %s5695_s28, 0 }
  0xd0   : > { %350 = sbr.rel (%p7183_p6) target bundleno = 1118 (0x45e), region = 48 }
  0xd7   : > { %5583 = dma.done.wait (%p7184_p10), [#allocation3], 32   ;;  %p7185_p13 = pmov %p7184_p10 }
  0xd8   : > { %s356_s14 = sand.u32 1, %s5695_s28   ;;  %s358_s10 = sand.u32 1, %s5608_s25  }
  0xd9   : > { %5585 = vsyncadd (%p7185_p13), [#allocation3], 4294967264  ;;  %s4769_s29 = smul.u32 192, %s358_s10  ;;  %s357_s16 = scalar_lea.sflag [#allocation6], %s356_s14 }
  0xda   : > { %p7186_p2 = scmp.ne.s32.totalorder %s7164_s11, 0 }
  0xdb   : > { %s5967_s9 = scalar_lea.vmem [#allocation5], %s4769_s29 }
  0xdc   : > { %5587 = dma.done.wait (%p7186_p2), %s357_s16, 10752  }
  0xdd   : > { %5589 = vsyncadd (%p7186_p2), %s357_s16, 4294956544  ;;  %s4770_s12 = smul.u32 480, %s358_s10  ;;  %s375_s22 = scalar_lea.sflag [#allocation9], %s356_s14 }
  0xde   : > { %s4771_s17 = smul.u32 6, %s358_s10 }
  0xdf   : > { %s5973_s8 = scalar_lea.vmem [#allocation7], %s4770_s12 }
  0xe0   : > { %s5975_s15 = scalar_lea.vmem [#allocation8], %s4771_s17 }
  0xe1   : > { %5591 = dma.done.wait (%p7186_p2), %s375_s22, 30816  }
  0xe2   : > { %5593 = vsyncadd (%p7186_p2), %s375_s22, 4294936480  ;;  %s4772_s23 = smul.u32 1920, %s358_s10  ;;  %p7187_p12 = pmov %p7184_p10 }
  0xe4   : > { %s5981_s20 = scalar_lea.vmem [#allocation10], %s4772_s23 }
  0xe5   : > { %5595 = dma.done.wait (%p7187_p12), [#allocation12], 160   ;;  %p7188_p4 = pmov %p7184_p10 }
  0xe6   : > { %p7189_p0 = scmp.ne.s32.totalorder %s5695_s28, 0 }
  0xe7   : > { %5597 = vsyncadd (%p7188_p4), [#allocation12], 4294967136  ;;  %v5630_v0 = vmov (!%p7189_p0), 0.0  }
  0xe8   : > { %444 = sbr.rel (%p7189_p0) target bundleno = 252 (0xfc), region = 80  ;;  %445 = vst [vmem:[#allocation14] sm:$0xff] (!%p7189_p0), %v5630_v0  ;;  %446 = vst [vmem:[#allocation14 + $0x8] sm:$0xff] (!%p7189_p0), %v5630_v0 }
  0xe9   : > { %447 = vst [vmem:[#allocation14 + $0x10] sm:$0xff] (!%p7189_p0), %v5630_v0  ;;  %448 = vst [vmem:[#allocation14 + $0x18] sm:$0xff] (!%p7189_p0), %v5630_v0 }
  0xea   : > { %449 = vst [vmem:[#allocation14 + $0x20] sm:$0xff] (!%p7189_p0), %v5630_v0  ;;  %450 = vst [vmem:[#allocation14 + $0x28] sm:$0xff] (!%p7189_p0), %v5630_v0 }
  0xeb   : > { %451 = vst [vmem:[#allocation14 + $0x30] sm:$0xff] (!%p7189_p0), %v5630_v0  ;;  %452 = vst [vmem:[#allocation14 + $0x38] sm:$0xff] (!%p7189_p0), %v5630_v0 }
  0xec   : > { %453 = vst [vmem:[#allocation14 + $0x40] sm:$0xff] (!%p7189_p0), %v5630_v0  ;;  %454 = vst [vmem:[#allocation14 + $0x48] sm:$0xff] (!%p7189_p0), %v5630_v0 }
  0xed   : > { %455 = vst [vmem:[#allocation14 + $0x50] sm:$0xff] (!%p7189_p0), %v5630_v0  ;;  %456 = vst [vmem:[#allocation14 + $0x58] sm:$0xff] (!%p7189_p0), %v5630_v0 }
  0xee   : > { %457 = vst [vmem:[#allocation14 + $0x60] sm:$0xff] (!%p7189_p0), %v5630_v0  ;;  %458 = vst [vmem:[#allocation14 + $0x68] sm:$0xff] (!%p7189_p0), %v5630_v0 }
  0xef   : > { %459 = vst [vmem:[#allocation14 + $0x70] sm:$0xff] %v5630_v0  ;;  %460 = vst [vmem:[#allocation14 + $0x78] sm:$0xff] %v5630_v0 }
  0xf0   : > { %461 = vst [vmem:[#allocation14 + $0x80] sm:$0xff] %v5630_v0  ;;  %462 = vst [vmem:[#allocation14 + $0x88] sm:$0xff] %v5630_v0 }
  0xf1   : > { %463 = vst [vmem:[#allocation14 + $0x90] sm:$0xff] %v5630_v0  ;;  %464 = vst [vmem:[#allocation14 + $0x98] sm:$0xff] %v5630_v0 }
  0xf2   : > { %465 = vst [vmem:[#allocation14 + $0xa0] sm:$0xff] %v5630_v0  ;;  %466 = vst [vmem:[#allocation14 + $0xa8] sm:$0xff] %v5630_v0 }
  0xf3   : > { %467 = vst [vmem:[#allocation14 + $0xb0] sm:$0xff] %v5630_v0  ;;  %468 = vst [vmem:[#allocation14 + $0xb8] sm:$0xff] %v5630_v0 }
  0xf4   : > { %469 = vst [vmem:[#allocation14 + $0xc0] sm:$0xff] %v5630_v0  ;;  %470 = vst [vmem:[#allocation14 + $0xc8] sm:$0xff] %v5630_v0 }
  0xf5   : > { %471 = vst [vmem:[#allocation14 + $0xd0] sm:$0xff] %v5630_v0  ;;  %472 = vst [vmem:[#allocation14 + $0xd8] sm:$0xff] %v5630_v0 }
  0xf6   : > { %473 = vst [vmem:[#allocation14 + $0xe0] sm:$0xff] %v5630_v0  ;;  %474 = vst [vmem:[#allocation14 + $0xe8] sm:$0xff] %v5630_v0 }
  0xf7   : > { %475 = vst [vmem:[#allocation14 + $0xf0] sm:$0xff] %v5630_v0  ;;  %476 = vst [vmem:[#allocation14 + $0xf8] sm:$0xff] %v5630_v0 }
  0xf8   : > { %477 = vst [vmem:[#allocation14 + $0x100] sm:$0xff] %v5630_v0  ;;  %478 = vst [vmem:[#allocation14 + $0x108] sm:$0xff] %v5630_v0 }
  0xf9   : > { %479 = vst [vmem:[#allocation14 + $0x110] sm:$0xff] %v5630_v0  ;;  %480 = vst [vmem:[#allocation14 + $0x118] sm:$0xff] %v5630_v0 }
  0xfa   : > { %481 = vst [vmem:[#allocation14 + $0x120] sm:$0xff] %v5630_v0  ;;  %482 = vst [vmem:[#allocation14 + $0x128] sm:$0xff] %v5630_v0 }
  0xfb   : > { %483 = vst [vmem:[#allocation14 + $0x130] sm:$0xff] %v5630_v0  ;;  %484 = vst [vmem:[#allocation14 + $0x138] sm:$0xff] %v5630_v0 }
  0xfc PF: > { %v4876_v1 = vld [vmem:[%s5973_s8 + $0x4] ss:$24 sps:$4 sm:$0xff]   ;;  %v4878_v2 = vld [vmem:[%s5973_s8] ss:$24 sps:$4 sm:$0xff]   ;;  %v4879_v3 = vld [vmem:[%s5973_s8 + $0x34] ss:$24 sps:$4 sm:$0xff]   ;;  %v559_v8 = vlaneseq }
  0xfd   : > { %906 = vmatprep.subr.bf16.mxu0 %v4876_v1  ;;  %v4881_v4 = vld [vmem:[%s5973_s8 + $0x30] ss:$24 sps:$4 sm:$0xff]   ;;  %v4882_v5 = vld [vmem:[%s5973_s8 + $0x64] ss:$24 sps:$4 sm:$0xff]   ;;  %v5631_v6 = vmov 1966171168  }
  0xfe   : > { %907 = vmatpush1.bf16.msra.mxu0 %v4878_v2  ;;  %v557_v7 = vunpack.c.l.s4 %v5631_v6  ;;  %v4884_v9 = vld [vmem:[%s5973_s8 + $0x60] ss:$24 sps:$4 sm:$0xff]   ;;  %v4885_v10 = vld [vmem:[%s5973_s8 + $0x94] ss:$24 sps:$4 sm:$0xff]   ;;  %v5996_v12 = vshrl.u32 %v559_v8, 7  ;;  %vm902_vm0 = vcmask 261120  }
  0xff   : > { %908 = vmatprep.subr.bf16.mxu0 %v4879_v3  ;;  %v4887_v13 = vld [vmem:[%s5973_s8 + $0x90] ss:$24 sps:$4 sm:$0xff]   ;;  %v4888_v14 = vld [vmem:[%s5973_s8 + $0xc4] ss:$24 sps:$4 sm:$0xff]   ;;  %v4890_v16 = vld [vmem:[%s5973_s8 + $0xc0] ss:$24 sps:$4 sm:$0xff]  }
 0x100   : > { %v558_v11 = vunpack.c.0.s8 %v557_v7  ;;  %v4261_v17 = vld.sshfl [vmem:[#allocation2] sm:$0x11 pattern:$0x75316420]  ;;  %v4906_v19 = vld [vmem:[%s5973_s8 + $0xc] ss:$24 sps:$4 sm:$0xff]  }
 0x101   : > { %v555_v18 = vcombine.high %v4261_v17, %v4261_v17  ;;  %v4908_v20 = vld [vmem:[%s5973_s8 + $0x8] ss:$24 sps:$4 sm:$0xff]   ;;  %v4891_v21 = vld [vmem:[%s5973_s8 + $0xf4] ss:$24 sps:$4 sm:$0xff]   ;;  %947 = vmatprep.subr.bf16.mxu1 %v4906_v19  ;;  %v4911_v24 = vld [vmem:[%s5973_s8 + $0x38] ss:$24 sps:$4 sm:$0xff]  }
 0x102   : > { %909 = vmatpush1.bf16.msra.mxu0 %v4881_v4  ;;  %v561_v15 = vsub.s32 %v558_v11, %v5996_v12  ;;  %v4909_v23 = vld [vmem:[%s5973_s8 + $0x3c] ss:$24 sps:$4 sm:$0xff]   ;;  %948 = vmatpush1.bf16.msra.mxu1 %v4908_v20  ;;  %v4912_v25 = vld [vmem:[%s5973_s8 + $0x6c] ss:$24 sps:$4 sm:$0xff]   ;;  %v4893_v26 = vld [vmem:[%s5973_s8 + $0xf0] ss:$24 sps:$4 sm:$0xff]  }
 0x103   : > { %910 = vmatprep.subr.bf16.mxu0 %v4882_v5  ;;  %949 = vmatprep.subr.bf16.mxu1 %v4909_v23  ;;  %v4894_v27 = vld [vmem:[%s5973_s8 + $0x124] ss:$24 sps:$4 sm:$0xff]   ;;  %v4914_v28 = vld [vmem:[%s5973_s8 + $0x68] ss:$24 sps:$4 sm:$0xff]   ;;  %v4897_v31 = vld [vmem:[%s5973_s8 + $0x154] ss:$24 sps:$4 sm:$0xff]  }
 0x104   : > { %v569_v22 = vrot.slane %v555_v18, %v561_v15  ;;  %v4915_v29 = vld [vmem:[%s5973_s8 + $0x9c] ss:$24 sps:$4 sm:$0xff]   ;;  %v4896_v30 = vld [vmem:[%s5973_s8 + $0x120] ss:$24 sps:$4 sm:$0xff]   ;;  %v4918_v33 = vld [vmem:[%s5973_s8 + $0xcc] ss:$24 sps:$4 sm:$0xff]   ;;  %v6029_v45 = vrot.slane %v4261_v17, %v561_v15 }
 0x105   : > { %v4917_v32 = vld [vmem:[%s5973_s8 + $0x98] ss:$24 sps:$4 sm:$0xff]   ;;  %v4900_v35 = vld [vmem:[%s5973_s8 + $0x184] ss:$24 sps:$4 sm:$0xff]   ;;  %v4920_v36 = vld [vmem:[%s5973_s8 + $0xc8] ss:$24 sps:$4 sm:$0xff]  }
 0x106   : > { %911 = vmatpush1.bf16.msra.mxu0 %v4884_v9  ;;  %4322 = vmatprep.mubr.msk.bf16.mxu0 %vm902_vm0, %v569_v22  ;;  %v4899_v34 = vld [vmem:[%s5973_s8 + $0x150] ss:$24 sps:$4 sm:$0xff]   ;;  %v4921_v37 = vld [vmem:[%s5973_s8 + $0xfc] ss:$24 sps:$4 sm:$0xff]   ;;  %v4902_v38 = vld [vmem:[%s5973_s8 + $0x180] ss:$24 sps:$4 sm:$0xff]  }
 0x107   : > { %912 = vmatprep.subr.bf16.mxu0 %v4885_v10  ;;  %4323 = vmatprep.mubr.msk.bf16.mxu1 %vm902_vm0, %v569_v22  ;;  %v4903_v39 = vld [vmem:[%s5973_s8 + $0x1b4] ss:$24 sps:$4 sm:$0xff]   ;;  %v4923_v40 = vld [vmem:[%s5973_s8 + $0xf8] ss:$24 sps:$4 sm:$0xff]   ;;  %v4926_v44 = vld [vmem:[%s5973_s8 + $0x128] ss:$24 sps:$4 sm:$0xff]  }
 0x108   : > { %950 = vmatpush1.bf16.msra.mxu1 %v4911_v24  ;;  %v4924_v41 = vld [vmem:[%s5973_s8 + $0x12c] ss:$24 sps:$4 sm:$0xff]   ;;  %v4905_v42 = vld [vmem:[%s5973_s8 + $0x1b0] ss:$24 sps:$4 sm:$0xff]   ;;  %v4927_v46 = vld [vmem:[%s5973_s8 + $0x15c] ss:$24 sps:$4 sm:$0xff]  }
 0x109   : > { %951 = vmatprep.subr.bf16.mxu1 %v4912_v25  ;;  %v4938_v43 = vld [vmem:[%s5973_s8 + $0x14] ss:$24 sps:$4 sm:$0xff]   ;;  %v4936_v47 = vld [vmem:[%s5973_s8 + $0x10] ss:$24 sps:$4 sm:$0xff]   ;;  %v4941_v48 = vld [vmem:[%s5973_s8 + $0x44] ss:$24 sps:$4 sm:$0xff]  }
 0x10a   : > { %913 = vmatpush1.bf16.msra.mxu0 %v4887_v13  ;;  %v4929_v49 = vld [vmem:[%s5973_s8 + $0x158] ss:$24 sps:$4 sm:$0xff]   ;;  %v4930_v50 = vld [vmem:[%s5973_s8 + $0x18c] ss:$24 sps:$4 sm:$0xff]   ;;  %v4932_v53 = vld [vmem:[%s5973_s8 + $0x188] ss:$24 sps:$4 sm:$0xff]  }
 0x10b   : > { %914 = vmatprep.subr.bf16.mxu0 %v4888_v14  ;;  %v4939_v51 = vld [vmem:[%s5973_s8 + $0x40] ss:$24 sps:$4 sm:$0xff]   ;;  %v4944_v52 = vld [vmem:[%s5973_s8 + $0x74] ss:$24 sps:$4 sm:$0xff]   ;;  %v4942_v55 = vld [vmem:[%s5973_s8 + $0x70] ss:$24 sps:$4 sm:$0xff]  }
 0x10c   : > { %952 = vmatpush1.bf16.msra.mxu1 %v4914_v28  ;;  %v4933_v54 = vld [vmem:[%s5973_s8 + $0x1bc] ss:$24 sps:$4 sm:$0xff]   ;;  %v4935_v57 = vld [vmem:[%s5973_s8 + $0x1b8] ss:$24 sps:$4 sm:$0xff]   ;;  %v4966_v61 = vld [vmem:[%s5981_s20] ss:$20 sps:$4 sm:$0xff]  }
 0x10d   : > { %953 = vmatprep.subr.bf16.mxu1 %v4915_v29  ;;  %v4947_v56 = vld [vmem:[%s5973_s8 + $0xa4] ss:$24 sps:$4 sm:$0xff]   ;;  %v4945_v59 = vld [vmem:[%s5973_s8 + $0xa0] ss:$24 sps:$4 sm:$0xff]   ;;  %v4950_v60 = vld [vmem:[%s5973_s8 + $0xd4] ss:$24 sps:$4 sm:$0xff]  }
 0x10e   : > { %915 = vmatpush1.bf16.msra.mxu0 %v4890_v16  ;;  %v4968_v58 = vld [vmem:[%s5981_s20 + $0x4] ss:$20 sps:$4 sm:$0xff]   ;;  %v4974_v62 = vld [vmem:[%s5981_s20 + $0x2c] ss:$20 sps:$4 sm:$0xff]   ;;  %v4972_v2 = vld [vmem:[%s5981_s20 + $0x28] ss:$20 sps:$4 sm:$0xff]  }
 0x10f   : > { %916 = vmatprep.subr.bf16.mxu0 %v4891_v21  ;;  %v4948_v63 = vld [vmem:[%s5973_s8 + $0xd0] ss:$24 sps:$4 sm:$0xff]   ;;  %v4953_v0 = vld [vmem:[%s5973_s8 + $0x104] ss:$24 sps:$4 sm:$0xff]   ;;  %v4951_v1 = vld [vmem:[%s5973_s8 + $0x100] ss:$24 sps:$4 sm:$0xff]  }
 0x110   : > { %954 = vmatpush1.bf16.msra.mxu1 %v4917_v32  ;;  %v4980_v3 = vld [vmem:[%s5981_s20 + $0x54] ss:$20 sps:$4 sm:$0xff]   ;;  %v4978_v5 = vld [vmem:[%s5981_s20 + $0x50] ss:$20 sps:$4 sm:$0xff]   ;;  %v4984_v9 = vld [vmem:[%s5981_s20 + $0x78] ss:$20 sps:$4 sm:$0xff]  }
 0x111   : > { %955 = vmatprep.subr.bf16.mxu1 %v4918_v33  ;;  %v4956_v4 = vld [vmem:[%s5973_s8 + $0x134] ss:$24 sps:$4 sm:$0xff]   ;;  %v4986_v6 = vld [vmem:[%s5981_s20 + $0x7c] ss:$20 sps:$4 sm:$0xff]   ;;  %v4992_v10 = vld [vmem:[%s5981_s20 + $0xa4] ss:$20 sps:$4 sm:$0xff]  }
 0x112   : > { %917 = vmatpush1.bf16.msra.mxu0 %v4893_v26  ;;  %v4954_v7 = vld [vmem:[%s5973_s8 + $0x130] ss:$24 sps:$4 sm:$0xff]   ;;  %v4959_v8 = vld [vmem:[%s5973_s8 + $0x164] ss:$24 sps:$4 sm:$0xff]   ;;  %v4957_v11 = vld [vmem:[%s5973_s8 + $0x160] ss:$24 sps:$4 sm:$0xff]  }
 0x113   : > { %918 = vmatprep.subr.bf16.mxu0 %v4894_v27  ;;  %v4962_v13 = vld [vmem:[%s5973_s8 + $0x194] ss:$24 sps:$4 sm:$0xff]   ;;  %v4960_v16 = vld [vmem:[%s5973_s8 + $0x190] ss:$24 sps:$4 sm:$0xff]   ;;  %v4965_v17 = vld [vmem:[%s5973_s8 + $0x1c4] ss:$24 sps:$4 sm:$0xff]  }
 0x114   : > { %956 = vmatpush1.bf16.msra.mxu1 %v4920_v36  ;;  %v4990_v14 = vld [vmem:[%s5981_s20 + $0xa0] ss:$20 sps:$4 sm:$0xff]   ;;  %v4996_v18 = vld [vmem:[%s5981_s20 + $0xc8] ss:$20 sps:$4 sm:$0xff]   ;;  %v4975_v25 = vld [vmem:[%s5981_s20 + $0x30] ss:$20 sps:$4 sm:$0xff]  }
 0x115   : > { %957 = vmatprep.subr.bf16.mxu1 %v4921_v37  ;;  %v4998_v15 = vld [vmem:[%s5981_s20 + $0xcc] ss:$20 sps:$4 sm:$0xff]   ;;  %v5004_v19 = vld [vmem:[%s5981_s20 + $0xf4] ss:$20 sps:$4 sm:$0xff]   ;;  %v4983_v26 = vld [vmem:[%s5981_s20 + $0x5c] ss:$20 sps:$4 sm:$0xff]  }
 0x116   : > { %919 = vmatpush1.bf16.msra.mxu0 %v4896_v30  ;;  %v4963_v20 = vld [vmem:[%s5973_s8 + $0x1c0] ss:$24 sps:$4 sm:$0xff]   ;;  %v4969_v23 = vld [vmem:[%s5981_s20 + $0x8] ss:$20 sps:$4 sm:$0xff]   ;;  %v4989_v28 = vld [vmem:[%s5981_s20 + $0x84] ss:$20 sps:$4 sm:$0xff]  }
 0x117   : > { %920 = vmatprep.subr.bf16.mxu0 %v4897_v31  ;;  %v4971_v21 = vld [vmem:[%s5981_s20 + $0xc] ss:$20 sps:$4 sm:$0xff]   ;;  %v4977_v24 = vld [vmem:[%s5981_s20 + $0x34] ss:$20 sps:$4 sm:$0xff]   ;;  %v4999_v33 = vld [vmem:[%s5981_s20 + $0xd0] ss:$20 sps:$4 sm:$0xff]  }
 0x118   : > { %958 = vmatpush1.bf16.msra.mxu1 %v4923_v40  ;;  %v4981_v27 = vld [vmem:[%s5981_s20 + $0x58] ss:$20 sps:$4 sm:$0xff]   ;;  %v4987_v29 = vld [vmem:[%s5981_s20 + $0x80] ss:$20 sps:$4 sm:$0xff]   ;;  %v4993_v31 = vld [vmem:[%s5981_s20 + $0xa8] ss:$20 sps:$4 sm:$0xff]  }
 0x119   : > { %959 = vmatprep.subr.bf16.mxu1 %v4924_v41  ;;  %v4995_v30 = vld [vmem:[%s5981_s20 + $0xac] ss:$20 sps:$4 sm:$0xff]   ;;  %v5001_v32 = vld [vmem:[%s5981_s20 + $0xd4] ss:$20 sps:$4 sm:$0xff]   ;;  %v5010_v36 = vld [vmem:[%s5981_s20 + $0x11c] ss:$20 sps:$4 sm:$0xff]  }
 0x11a   : > { %921 = vmatpush1.bf16.msra.mxu0 %v4899_v34  ;;  %v5007_v34 = vld [vmem:[%s5981_s20 + $0xfc] ss:$20 sps:$4 sm:$0xff]   ;;  %v5013_v37 = vld [vmem:[%s5981_s20 + $0x124] ss:$20 sps:$4 sm:$0xff]   ;;  %v5019_v41 = vld [vmem:[%s5981_s20 + $0x14c] ss:$20 sps:$4 sm:$0xff]  }
 0x11b   : > { %922 = vmatprep.subr.bf16.mxu0 %v4900_v35  ;;  %v5005_v35 = vld [vmem:[%s5981_s20 + $0xf8] ss:$20 sps:$4 sm:$0xff]   ;;  %p4571_p9 = scmp.ne.s32.totalorder %s5695_s28, 4 }
 0x11c   : > { %960 = vmatpush1.bf16.msra.mxu1 %v4926_v44  ;;  %v5016_v40 = vld [vmem:[%s5981_s20 + $0x144] ss:$20 sps:$4 sm:$0xff]   ;;  %v5022_v44 = vld [vmem:[%s5981_s20 + $0x16c] ss:$20 sps:$4 sm:$0xff]  }
 0x11d   : > { %961 = vmatprep.subr.bf16.mxu1 %v4927_v46  ;;  %v5020_v46 = vld [vmem:[%s5981_s20 + $0x168] ss:$20 sps:$4 sm:$0xff]  }
 0x11e   : > { %923 = vmatpush1.bf16.msra.mxu0 %v4902_v38  ;;  %v5008_v38 = vld [vmem:[%s5981_s20 + $0x118] ss:$20 sps:$4 sm:$0xff]  }
 0x11f   : > { %924 = vmatprep.subr.bf16.mxu0 %v4903_v39  ;;  %v5011_v39 = vld [vmem:[%s5981_s20 + $0x120] ss:$20 sps:$4 sm:$0xff]  }
 0x120   : > { %962 = vmatpush1.bf16.msra.mxu1 %v4929_v49  ;;  %v5031_v49 = vld [vmem:[%s5981_s20 + $0x19c] ss:$20 sps:$4 sm:$0xff]  }
 0x121   : > { %963 = vmatprep.subr.bf16.mxu1 %v4930_v50  ;;  %v5026_v50 = vld [vmem:[%s5981_s20 + $0x190] ss:$20 sps:$4 sm:$0xff]  }
 0x122   : > { %925 = vmatpush1.bf16.msra.mxu0 %v4905_v42  ;;  %v5014_v42 = vld [vmem:[%s5981_s20 + $0x140] ss:$20 sps:$4 sm:$0xff]  }
 0x123   : > { %988 = vmatprep.subr.bf16.mxu0 %v4938_v43  ;;  %v5017_v43 = vld [vmem:[%s5981_s20 + $0x148] ss:$20 sps:$4 sm:$0xff]  }
 0x124   : > { %964 = vmatpush1.bf16.msra.mxu1 %v4932_v53  ;;  %v5037_v53 = vld [vmem:[%s5981_s20 + $0x1c4] ss:$20 sps:$4 sm:$0xff]  }
 0x125   : > { %939 = vmatmul.mubr.bf16.vlgmr.msra.gmra.mrb[0].mxu0 %v6029_v45  ;;  %965 = vmatprep.subr.bf16.mxu1 %v4933_v54  ;;  %v5032_v54 = vld [vmem:[%s5981_s20 + $0x1b8] ss:$20 sps:$4 sm:$0xff]  }
 0x126   : > { %989 = vmatpush1.bf16.msra.mxu0 %v4936_v47  ;;  %4324 = vmatprep.mubr.msk.bf16.mxu0 %vm902_vm0, %v569_v22  ;;  %v5002_v22 = vld [vmem:[%s5981_s20 + $0xf0] ss:$20 sps:$4 sm:$0xff]  }
 0x127   : > { %990 = vmatprep.subr.bf16.mxu0 %v4941_v48  ;;  %v5023_v47 = vld [vmem:[%s5981_s20 + $0x170] ss:$20 sps:$4 sm:$0xff]   ;;  %v5028_v48 = vld [vmem:[%s5981_s20 + $0x194] ss:$20 sps:$4 sm:$0xff]  }
 0x128   : > { %966 = vmatpush1.bf16.msra.mxu1 %v4935_v57  ;;  %v5043_v57 = vld [vmem:[%s5981_s20 + $0x1ec] ss:$20 sps:$4 sm:$0xff]  }
 0x129   : > { %2809 = vmatprep.subr.bf16.mxu1 %v4968_v58  ;;  %v5038_v58 = vld [vmem:[%s5981_s20 + $0x1e0] ss:$20 sps:$4 sm:$0xff]  }
 0x12a   : > { %991 = vmatpush1.bf16.msra.mxu0 %v4939_v51  ;;  %v5029_v51 = vld [vmem:[%s5981_s20 + $0x198] ss:$20 sps:$4 sm:$0xff]  }
 0x12b   : > { %992 = vmatprep.subr.bf16.mxu0 %v4944_v52  ;;  %980 = vmatmul.mubr.bf16.vlgmr.msra.gmra.mrb[0].mxu1 %v6029_v45  ;;  %v5034_v52 = vld [vmem:[%s5981_s20 + $0x1bc] ss:$20 sps:$4 sm:$0xff]  }
 0x12c   : > { %2810 = vmatpush1.bf16.msra.mxu1 %v4966_v61  ;;  %v5049_v61 = vld [vmem:[%s5981_s20 + $0x214] ss:$20 sps:$4 sm:$0xff]  }
 0x12d   : > { %2811 = vmatprep.subr.bf16.mxu1 %v4974_v62  ;;  %v5044_v62 = vld [vmem:[%s5981_s20 + $0x208] ss:$20 sps:$4 sm:$0xff]  }
 0x12e   : > { %993 = vmatpush1.bf16.msra.mxu0 %v4942_v55  ;;  %v5035_v55 = vld [vmem:[%s5981_s20 + $0x1c0] ss:$20 sps:$4 sm:$0xff]  }
 0x12f   : > { %994 = vmatprep.subr.bf16.mxu0 %v4947_v56  ;;  %v5040_v56 = vld [vmem:[%s5981_s20 + $0x1e4] ss:$20 sps:$4 sm:$0xff]  }
 0x130   : > { %2812 = vmatpush1.bf16.msra.mxu1 %v4972_v2  ;;  %v5050_v2 = vld [vmem:[%s5981_s20 + $0x230] ss:$20 sps:$4 sm:$0xff]  }
 0x131   : > { %2813 = vmatprep.subr.bf16.mxu1 %v4980_v3  ;;  %v5053_v3 = vld [vmem:[%s5981_s20 + $0x238] ss:$20 sps:$4 sm:$0xff]  }
 0x132   : > { %995 = vmatpush1.bf16.msra.mxu0 %v4945_v59  ;;  %v5041_v59 = vld [vmem:[%s5981_s20 + $0x1e8] ss:$20 sps:$4 sm:$0xff]  }
 0x133   : > { %996 = vmatprep.subr.bf16.mxu0 %v4950_v60  ;;  %v5046_v60 = vld [vmem:[%s5981_s20 + $0x20c] ss:$20 sps:$4 sm:$0xff]  }
 0x134   : > { %2814 = vmatpush1.bf16.msra.mxu1 %v4978_v5  ;;  %v5058_v5 = vld [vmem:[%s5981_s20 + $0x25c] ss:$20 sps:$4 sm:$0xff]  }
 0x135   : > { %2815 = vmatprep.subr.bf16.mxu1 %v4986_v6  ;;  %v5059_v6 = vld [vmem:[%s5981_s20 + $0x260] ss:$20 sps:$4 sm:$0xff]  }
 0x136   : > { %997 = vmatpush1.bf16.msra.mxu0 %v4948_v63  ;;  %v5047_v63 = vld [vmem:[%s5981_s20 + $0x210] ss:$20 sps:$4 sm:$0xff]  }
 0x137   : > { %998 = vmatprep.subr.bf16.mxu0 %v4953_v0  ;;  %v5052_v0 = vld [vmem:[%s5981_s20 + $0x234] ss:$20 sps:$4 sm:$0xff]  }
 0x138   : > { %2816 = vmatpush1.bf16.msra.mxu1 %v4984_v9  ;;  %v5067_v9 = vld [vmem:[%s5981_s20 + $0x28c] ss:$20 sps:$4 sm:$0xff]  }
 0x139   : > { %2817 = vmatprep.subr.bf16.mxu1 %v4992_v10  ;;  %v6127_v10 = vsub.s32 0, %v5996_v12 }
 0x13a   : > { %999 = vmatpush1.bf16.msra.mxu0 %v4951_v1  ;;  %v5055_v1 = vld [vmem:[%s5981_s20 + $0x23c] ss:$20 sps:$4 sm:$0xff]  }
 0x13b   : > { %1000 = vmatprep.subr.bf16.mxu0 %v4956_v4  ;;  %v5056_v4 = vld [vmem:[%s5981_s20 + $0x258] ss:$20 sps:$4 sm:$0xff]  }
 0x13c   : > { %2818 = vmatpush1.bf16.msra.mxu1 %v4990_v14 }
 0x13d   : > { %2819 = vmatprep.subr.bf16.mxu1 %v4998_v15 }
 0x13e   : > { %1001 = vmatpush1.bf16.msra.mxu0 %v4954_v7  ;;  %v5061_v7 = vld [vmem:[%s5981_s20 + $0x264] ss:$20 sps:$4 sm:$0xff]  }
 0x13f   : > { %1002 = vmatprep.subr.bf16.mxu0 %v4959_v8  ;;  %v5064_v8 = vld [vmem:[%s5981_s20 + $0x284] ss:$20 sps:$4 sm:$0xff]  }
 0x140   : > { %2820 = vmatpush1.bf16.msra.mxu1 %v4996_v18 }
 0x141   : > { %2821 = vmatprep.subr.bf16.mxu1 %v5004_v19 }
 0x142   : > { %1003 = vmatpush1.bf16.msra.mxu0 %v4957_v11  ;;  %v6130_v11 = vld [vmem:[%s5975_s15] sm:$0x3f] }
 0x143   : > { %1004 = vmatprep.subr.bf16.mxu0 %v4962_v13  ;;  %v6133_v13 = vsub.s32 1, %v5996_v12  ;;  %v875_v14 = vrot.slane %v6130_v11, %v6127_v10 }
 0x144   : > { %2822 = vmatpush1.bf16.msra.mxu1 %v5002_v22 }
 0x145   : > { %2823 = vmatprep.subr.bf16.mxu1 %v5010_v36  ;;  %v879_v15 = vrot.slane %v6130_v11, %v6133_v13  ;;  %v1065_v36 = vld [vmem:[%s5967_s9] sm:$0xff] }
 0x146   : > { %1005 = vmatpush1.bf16.msra.mxu0 %v4960_v16 }
 0x147   : > { %1006 = vmatprep.subr.bf16.mxu0 %v4965_v17 }
 0x148   : > { %2824 = vmatpush1.bf16.msra.mxu1 %v5008_v38  ;;  %v1071_v38 = vld [vmem:[%s5967_s9 + $0x30] sm:$0xff] }
 0x149   : > { %2825 = vmatprep.subr.bf16.mxu1 %v5016_v40  ;;  %v1089_v40 = vunpack.c.l.bf16 %v1065_v36 }
 0x14a   : > { %1007 = vmatpush1.bf16.msra.mxu0 %v4963_v20 }
 0x14b   : > { %3028 = vmatprep.subr.bf16.mxu0 %v4971_v21 }
 0x14c   : > { %2826 = vmatpush1.bf16.msra.mxu1 %v5014_v42 }
 0x14d   : > { %1021 = vmatmul.mubr.bf16.vlgmr.msra.gmra.mrb[4].mxu0 %v6029_v45  ;;  %v5025_v45 = vld [vmem:[%s5981_s20 + $0x174] ss:$20 sps:$4 sm:$0xff]   ;;  %2827 = vmatprep.subr.bf16.mxu1 %v5022_v44 }
 0x14e   : > { %3029 = vmatpush1.bf16.msra.mxu0 %v4969_v23 }
 0x14f   : > { %3030 = vmatprep.subr.bf16.mxu0 %v4977_v24  ;;  %v6140_v24 = vsub.s32 3, %v5996_v12 }
 0x150   : > { %2828 = vmatpush1.bf16.msra.mxu1 %v5020_v46 }
 0x151   : > { %2829 = vmatprep.subr.bf16.mxu1 %v5028_v48 }
 0x152   : > { %3031 = vmatpush1.bf16.msra.mxu0 %v4975_v25  ;;  %v887_v25 = vrot.slane %v6130_v11, %v6140_v24 }
 0x153   : > { %3032 = vmatprep.subr.bf16.mxu0 %v4983_v26 }
 0x154   : > { %2830 = vmatpush1.bf16.msra.mxu1 %v5026_v50 }
 0x155   : > { %2831 = vmatprep.subr.bf16.mxu1 %v5034_v52 }
 0x156   : > { %3033 = vmatpush1.bf16.msra.mxu0 %v4981_v27 }
 0x157   : > { %3034 = vmatprep.subr.bf16.mxu0 %v4989_v28 }
 0x158   : > { %2832 = vmatpush1.bf16.msra.mxu1 %v5032_v54 }
 0x159   : > { %2833 = vmatprep.subr.bf16.mxu1 %v5040_v56 }
 0x15a   : > { %3035 = vmatpush1.bf16.msra.mxu0 %v4987_v29 }
 0x15b   : > { %3036 = vmatprep.subr.bf16.mxu0 %v4995_v30 }
 0x15c   : > { %2834 = vmatpush1.bf16.msra.mxu1 %v5038_v58 }
 0x15d   : > { %2835 = vmatprep.subr.bf16.mxu1 %v5046_v60  ;;  %v5065_v60 = vld [vmem:[%s5981_s20 + $0x288] ss:$20 sps:$4 sm:$0xff]  }
 0x15e   : > { %3037 = vmatpush1.bf16.msra.mxu0 %v4993_v31 }
 0x15f   : > { %3038 = vmatprep.subr.bf16.mxu0 %v5001_v32 }
 0x160   : > { %2836 = vmatpush1.bf16.msra.mxu1 %v5044_v62 }
 0x161   : > { %2837 = vmatprep.subr.bf16.mxu1 %v5052_v0 }
 0x162   : > { %3039 = vmatpush1.bf16.msra.mxu0 %v4999_v33 }
 0x163   : > { %3040 = vmatprep.subr.bf16.mxu0 %v5007_v34 }
 0x164   : > { %2838 = vmatpush1.bf16.msra.mxu1 %v5050_v2  ;;  %v5073_v2 = vld [vmem:[%s5981_s20 + $0x2b4] ss:$20 sps:$4 sm:$0xff]  }
 0x165   : > { %2839 = vmatprep.subr.bf16.mxu1 %v5058_v5 }
 0x166   : > { %3041 = vmatpush1.bf16.msra.mxu0 %v5005_v35 }
 0x167   : > { %3042 = vmatprep.subr.bf16.mxu0 %v5013_v37  ;;  %v1068_v37 = vld [vmem:[%s5967_s9 + $0x18] sm:$0xff] }
 0x168   : > { %2840 = vmatpush1.bf16.msra.mxu1 %v5056_v4  ;;  %v1096_v44 = vunpack.c.h.bf16 %v1068_v37 }
 0x169   : > { %2882 = vmatprep.subr.bf16.mxu1 %v5064_v8  ;;  %v5071_v8 = vld [vmem:[%s5981_s20 + $0x2b0] ss:$20 sps:$4 sm:$0xff]  }
 0x16a   : > { %3043 = vmatpush1.bf16.msra.mxu0 %v5011_v39  ;;  %v1074_v39 = vld [vmem:[%s5967_s9 + $0x48] sm:$0xff] }
 0x16b   : > { %3044 = vmatprep.subr.bf16.mxu0 %v5019_v41  ;;  %v1095_v41 = vunpack.c.l.bf16 %v1068_v37  ;;  %v1108_v48 = vunpack.c.h.bf16 %v1074_v39  ;;  %v1107_v0 = vunpack.c.l.bf16 %v1074_v39  ;;  %v5083_v39 = vld [vmem:[%s5981_s20 + $0x300] ss:$20 sps:$4 sm:$0xff]  }
 0x16e   : > { %3045 = vmatpush1.bf16.msra.mxu0 %v5017_v43  ;;  %v1090_v43 = vunpack.c.h.bf16 %v1065_v36 }
 0x16f   : > { %3046 = vmatprep.subr.bf16.mxu0 %v5025_v45 }
 0x172   : > { %3047 = vmatpush1.bf16.msra.mxu0 %v5023_v47  ;;  %v1102_v47 = vunpack.c.h.bf16 %v1071_v38 }
 0x173   : > { %3048 = vmatprep.subr.bf16.mxu0 %v5031_v49 }
 0x176   : > { %3049 = vmatpush1.bf16.msra.mxu0 %v5029_v51 }
 0x177   : > { %3050 = vmatprep.subr.bf16.mxu0 %v5037_v53 }
 0x17a   : > { %3051 = vmatpush1.bf16.msra.mxu0 %v5035_v55 }
 0x17b   : > { %3052 = vmatprep.subr.bf16.mxu0 %v5043_v57  ;;  %v6163_v57 = vld [vmem:[%s5967_s9 + $0x60] sm:$0xff] }
 0x17c   : > { %v1114_v5 = vunpack.c.h.bf16 %v6163_v57 }
 0x17e   : > { %3053 = vmatpush1.bf16.msra.mxu0 %v5041_v59  ;;  %v5062_v59 = vld [vmem:[%s5981_s20 + $0x280] ss:$20 sps:$4 sm:$0xff]  }
 0x17f   : > { %3054 = vmatprep.subr.bf16.mxu0 %v5049_v61  ;;  %v1080_v61 = vld [vmem:[%s5967_s9 + $0x78] sm:$0xff] }
 0x182   : > { %3055 = vmatpush1.bf16.msra.mxu0 %v5047_v63  ;;  %v1101_v63 = vunpack.c.l.bf16 %v1071_v38  ;;  %v5080_v38 = vld [vmem:[%s5981_s20 + $0x2f8] ss:$20 sps:$4 sm:$0xff]  }
 0x183   : > { %3056 = vmatprep.subr.bf16.mxu0 %v5055_v1  ;;  %v5070_v1 = vld [vmem:[%s5981_s20 + $0x2ac] ss:$20 sps:$4 sm:$0xff]  }
 0x186   : > { %3057 = vmatpush1.bf16.msra.mxu0 %v5053_v3 }
 0x187   : > { %3058 = vmatprep.subr.bf16.mxu0 %v5061_v7  ;;  %v5068_v7 = vld [vmem:[%s5981_s20 + $0x2a8] ss:$20 sps:$4 sm:$0xff]  }
 0x18a   : > { %3059 = vmatpush1.bf16.msra.mxu0 %v5059_v6  ;;  %v1120_v6 = vunpack.c.h.bf16 %v1080_v61 }
 0x18b   : > { %3101 = vmatprep.subr.bf16.mxu0 %v5067_v9  ;;  %v5076_v9 = vld [vmem:[%s5981_s20 + $0x2d4] ss:$20 sps:$4 sm:$0xff]  }
 0x1f8   : > { %v940_v16 = vpop.f32.mrb[0].mxu0 }
 0x1f9   : > { %v941_v17 = vadd.f32 %v940_v16, %v875_v14  ;;  %v942_v18 = vpop.f32.mrb[1].mxu0  ;;  %v5079_v14 = vld [vmem:[%s5981_s20 + $0x2dc] ss:$20 sps:$4 sm:$0xff]  }
 0x1fa   : > { %v943_v19 = vadd.f32 %v942_v18, %v879_v15  ;;  %v944_v20 = vpop.f32.mrb[2].mxu0 }
 0x1fb   : > { %v4325_v21 = vmul.f32 -1.442695, %v941_v17  ;;  %v945_v22 = vpop.f32.mrb[3].mxu0  ;;  %v6194_v20 = vld [vmem:[%s5967_s9 + $0x90] sm:$0xff] }
 0x1fc   : > { %v4326_v23 = vmul.f32 -1.442695, %v943_v19  ;;  %v5074_v22 = vld [vmem:[%s5981_s20 + $0x2d0] ss:$20 sps:$4 sm:$0xff]   ;;  %v1126_v36 = vunpack.c.h.bf16 %v6194_v20 }
 0x1fd   : > { %5302 = vpow2.f32 %v4325_v21 }
 0x1fe   : > { %5304 = vpow2.f32 %v4326_v23  ;;  %v6144_v26 = vpop.f32.mrb[0].mxu1  ;;  %v5077_v23 = vld [vmem:[%s5981_s20 + $0x2d8] ss:$20 sps:$4 sm:$0xff]  }
 0x1ff   : > { %v983_v28 = vpop.f32.mrb[1].mxu1 }
 0x200   : > { %v984_v31 = vadd.f32 %v983_v28, %v887_v25  ;;  %v985_v32 = vpop.f32.mrb[2].mxu1  ;;  %v6201_v25 = vld [vmem:[%s5967_s9 + $0xa8] sm:$0xff] }
 0x201   : > { %v986_v34 = vpop.f32.mrb[3].mxu1  ;;  %v1132_v37 = vunpack.c.h.bf16 %v6201_v25 }
 0x202   : > { %v4328_v35 = vmul.f32 -1.442695, %v984_v31  ;;  %v6207_v31 = vsub.s32 2, %v5996_v12  ;;  %v5085_v34 = vld [vmem:[%s5981_s20 + $0x304] ss:$20 sps:$4 sm:$0xff]  }
 0x207   : > { %v5303_v27 = vpop.eup %5302 }
 0x208   : > { %v5305_v29 = vpop.eup %5304  ;;  %v1047_v30 = vadd.f32 1.0, %v5303_v27 }
 0x209   : > { %v1048_v33 = vadd.f32 1.0, %v5305_v29  ;;  %v1113_v29 = vunpack.c.l.bf16 %v6163_v57  ;;  %v5094_v57 = vld [vmem:[%s5981_s20 + $0x34c] ss:$20 sps:$4 sm:$0xff]  }
 0x20a   : > { %5306 = vrcp.f32 %v1047_v30  ;;  %v1119_v30 = vunpack.c.l.bf16 %v1080_v61 }
 0x20b   : > { %5308 = vrcp.f32 %v1048_v33  ;;  %v5082_v33 = vld [vmem:[%s5981_s20 + $0x2fc] ss:$20 sps:$4 sm:$0xff]  }
 0x20c   : > { %5310 = vpow2.f32 %v4328_v35 }
 0x214   : > { %v5307_v42 = vpop.eup %5306 }
 0x215   : > { %v5309_v45 = vpop.eup %5308  ;;  %v6151_v46 = vrot.slane %v5307_v42, %v6127_v10 }
 0x216   : > { %v6154_v49 = vrot.slane %v5309_v45, %v6127_v10  ;;  %v5311_v54 = vpop.eup %5310 }
 0x217   : > { %v1161_v50 = vmul.f32 %v6151_v46, %v1089_v40  ;;  %v1167_v51 = vmul.f32 %v6151_v46, %v1095_v41  ;;  %v1050_v3 = vadd.f32 1.0, %v5311_v54  ;;  %v1173_v15 = vmul.f32 %v6151_v46, %v1101_v63  ;;  %v5088_v40 = vld [vmem:[%s5981_s20 + $0x324] ss:$20 sps:$4 sm:$0xff]   ;;  %v5091_v41 = vld [vmem:[%s5981_s20 + $0x32c] ss:$20 sps:$4 sm:$0xff]  }
 0x218   : > { %v1162_v52 = vmul.f32 %v6154_v49, %v1090_v43  ;;  %v1168_v53 = vmul.f32 %v6154_v49, %v1096_v44  ;;  %v1174_v55 = vmul.f32 %v6154_v49, %v1102_v47  ;;  %v1180_v56 = vmul.f32 %v6154_v49, %v1108_v48 }
 0x219   : > { %v6170_v62 = vpack.c.bf16 %v1167_v51, %v1161_v50  ;;  %v1179_v16 = vmul.f32 %v6151_v46, %v1107_v0  ;;  %5312 = vrcp.f32 %v1050_v3  ;;  %v1186_v18 = vmul.f32 %v6154_v49, %v1114_v5  ;;  %v6230_v50 = vld [vmem:[%s5967_s9 + $0x8] sm:$0xff]  ;;  %v6233_v51 = vld [vmem:[%s5967_s9 + $0x20] sm:$0xff] }
 0x21a   : > { %v6165_v58 = vpack.c.bf16 %v1168_v53, %v1162_v52  ;;  %v6178_v4 = vpack.c.bf16 %v1180_v56, %v1174_v55  ;;  %v1192_v19 = vmul.f32 %v6154_v49, %v1120_v6  ;;  %v1185_v42 = vmul.f32 %v6151_v46, %v1113_v29  ;;  %v5086_v52 = vld [vmem:[%s5981_s20 + $0x320] ss:$20 sps:$4 sm:$0xff]   ;;  %v5089_v53 = vld [vmem:[%s5981_s20 + $0x328] ss:$20 sps:$4 sm:$0xff]  }
 0x21b   : > { %v6203_v28 = vpack.c.bf16 %v1179_v16, %v1173_v15  ;;  %v1191_v43 = vmul.f32 %v6151_v46, %v1119_v30  ;;  %v883_v44 = vrot.slane %v6130_v11, %v6207_v31  ;;  %v1198_v47 = vmul.f32 %v6154_v49, %v1126_v36  ;;  %v5092_v0 = vld [vmem:[%s5981_s20 + $0x348] ss:$20 sps:$4 sm:$0xff]   ;;  %v5101_v15 = vld [vmem:[%s5981_s20 + $0x378] ss:$20 sps:$4 sm:$0xff]  }
 0x21c   : > { %2841 = vmatprep.mubr.bf16.mxu1 %v6165_v58  ;;  %3060 = vmatprep.mubr.bf16.mxu0 %v6165_v58  ;;  %v6213_v35 = vpack.c.bf16 %v1192_v19, %v1186_v18  ;;  %v1204_v48 = vmul.f32 %v6154_v49, %v1132_v37  ;;  %v1125_v56 = vunpack.c.l.bf16 %v6194_v20  ;;  %v1131_v49 = vunpack.c.l.bf16 %v6201_v25  ;;  %v5103_v3 = vld [vmem:[%s5981_s20 + $0x37c] ss:$20 sps:$4 sm:$0xff]   ;;  %v5109_v18 = vld [vmem:[%s5981_s20 + $0x3a4] ss:$20 sps:$4 sm:$0xff]   ;;  %v5115_v25 = vld [vmem:[%s5981_s20 + $0x3cc] ss:$20 sps:$4 sm:$0xff]  }
 0x21d   : > { %2842 = vmatmul.mubr.bf16.vlgmr.msra.gmra.mrb[4].mxu1 %v6170_v62  ;;  %3061 = vmatmul.mubr.bf16.vlgmr.msra.gmra.mrb[8].mxu0 %v6170_v62  ;;  %v6237_v54 = vpack.c.bf16 %v1191_v43, %v1185_v42  ;;  %v982_v55 = vadd.f32 %v6144_v26, %v883_v44  ;;  %v1092_v61 = vunpack.c.h.bf16 %v6230_v50  ;;  %v1098_v63 = vunpack.c.h.bf16 %v6233_v51  ;;  %v5104_v20 = vld [vmem:[%s5981_s20 + $0x398] ss:$20 sps:$4 sm:$0xff]   ;;  %v5113_v29 = vld [vmem:[%s5981_s20 + $0x3c8] ss:$20 sps:$4 sm:$0xff]   ;;  %v5119_v37 = vld [vmem:[%s5981_s20 + $0x3f0] ss:$20 sps:$4 sm:$0xff]  }
 0x21e   : > { %2883 = vmatpush1.bf16.msra.mxu1 %v5062_v59  ;;  %3102 = vmatpush1.bf16.msra.mxu0 %v5065_v60  ;;  %v5097_v59 = vld [vmem:[%s5981_s20 + $0x354] ss:$20 sps:$4 sm:$0xff]   ;;  %v6251_v26 = vpack.c.bf16 %v1204_v48, %v1198_v47  ;;  %v1197_v6 = vmul.f32 %v6151_v46, %v1125_v56  ;;  %v5118_v30 = vld [vmem:[%s5981_s20 + $0x3ec] ss:$20 sps:$4 sm:$0xff]   ;;  %v5122_v42 = vld [vmem:[%s5981_s20 + $0x410] ss:$20 sps:$4 sm:$0xff]  }
 0x21f   : > { %2851 = vmatprep.mubr.bf16.mxu1 %v6178_v4  ;;  %3070 = vmatprep.mubr.bf16.mxu0 %v6178_v4  ;;  %v4327_v5 = vmul.f32 -1.442695, %v982_v55  ;;  %v5116_v36 = vld [vmem:[%s5981_s20 + $0x3e8] ss:$20 sps:$4 sm:$0xff]   ;;  %v5125_v43 = vld [vmem:[%s5981_s20 + $0x418] ss:$20 sps:$4 sm:$0xff]  }
 0x220   : > { %2884 = vmatprep.subr.bf16.mxu1 %v5070_v1  ;;  %3103 = vmatprep.subr.bf16.mxu0 %v5073_v2  ;;  %v6189_v17 = vpop.f32.mrb[4].mxu0  ;;  %v5095_v1 = vld [vmem:[%s5981_s20 + $0x350] ss:$20 sps:$4 sm:$0xff]   ;;  %v5100_v2 = vld [vmem:[%s5981_s20 + $0x374] ss:$20 sps:$4 sm:$0xff]  }
 0x221   : > { %v6196_v21 = vpop.f32.mrb[5].mxu0  ;;  %5314 = vpow2.f32 %v4327_v5  ;;  %v5130_v44 = vld [vmem:[%s5981_s20 + $0x43c] ss:$20 sps:$4 sm:$0xff]   ;;  %v5128_v48 = vld [vmem:[%s5981_s20 + $0x438] ss:$20 sps:$4 sm:$0xff]   ;;  %v1091_v5 = vunpack.c.l.bf16 %v6230_v50 }
 0x222   : > { %2885 = vmatpush1.bf16.msra.mxu1 %v5068_v7  ;;  %3104 = vmatpush1.bf16.msra.mxu0 %v5071_v8  ;;  %v1026_v27 = vpop.f32.mrb[6].mxu0  ;;  %v1203_v7 = vmul.f32 %v6151_v46, %v1131_v49  ;;  %v5106_v46 = vld [vmem:[%s5981_s20 + $0x39c] ss:$20 sps:$4 sm:$0xff]   ;;  %v5139_v55 = vld [vmem:[%s5981_s20 + $0x46c] ss:$20 sps:$4 sm:$0xff]  }
 0x223   : > { %2886 = vmatprep.subr.bf16.mxu1 %v5076_v9  ;;  %3105 = vmatprep.subr.bf16.mxu0 %v5079_v14  ;;  %v1027_v32 = vpop.f32.mrb[7].mxu0  ;;  %v5313_v45 = vpop.eup %5312  ;;  %v5098_v14 = vld [vmem:[%s5981_s20 + $0x370] ss:$20 sps:$4 sm:$0xff]   ;;  %v5110_v27 = vld [vmem:[%s5981_s20 + $0x3c0] ss:$20 sps:$4 sm:$0xff]  }
 0x224   : > { %v6245_v60 = vrot.slane %v5313_v45, %v6127_v10  ;;  %v6265_v16 = vpack.c.bf16 %v1203_v7, %v1197_v6  ;;  %v5121_v32 = vld [vmem:[%s5981_s20 + $0x3f4] ss:$20 sps:$4 sm:$0xff]   ;;  %v5133_v45 = vld [vmem:[%s5981_s20 + $0x444] ss:$20 sps:$4 sm:$0xff]   ;;  %v1097_v6 = vunpack.c.l.bf16 %v6233_v51  ;;  %v1072_v7 = vld [vmem:[%s5967_s9 + $0x38] sm:$0xff] }
 0x225   : > { %2852 = vmatmul.mubr.bf16.gmra.mrb[8].mxu1 %v6203_v28  ;;  %3071 = vmatmul.mubr.bf16.gmra.mrb[12].mxu0 %v6203_v28  ;;  %v5134_v49 = vld [vmem:[%s5981_s20 + $0x460] ss:$20 sps:$4 sm:$0xff]  }
 0x226   : > { %2887 = vmatpush1.bf16.msra.mxu1 %v5074_v22  ;;  %3106 = vmatpush1.bf16.msra.mxu0 %v5077_v23  ;;  %v1164_v8 = vmul.f32 %v6245_v60, %v1092_v61  ;;  %v1170_v9 = vmul.f32 %v6245_v60, %v1098_v63  ;;  %v5107_v22 = vld [vmem:[%s5981_s20 + $0x3a0] ss:$20 sps:$4 sm:$0xff]   ;;  %v5112_v23 = vld [vmem:[%s5981_s20 + $0x3c4] ss:$20 sps:$4 sm:$0xff]   ;;  %v5140_v63 = vld [vmem:[%s5981_s20 + $0x488] ss:$20 sps:$4 sm:$0xff]  }
 0x227   : > { %2861 = vmatprep.mubr.bf16.mxu1 %v6213_v35  ;;  %3080 = vmatprep.mubr.bf16.mxu0 %v6213_v35 }
 0x228   : > { %2888 = vmatprep.subr.bf16.mxu1 %v5082_v33  ;;  %3107 = vmatprep.subr.bf16.mxu0 %v5085_v34  ;;  %v6269_v19 = vpack.c.bf16 %v1170_v9, %v1164_v8  ;;  %v894_v33 = vsub.s32 5, %v5996_v12  ;;  %v1075_v8 = vld [vmem:[%s5967_s9 + $0x50] sm:$0xff] }
 0x229   : > { %v5146_v9 = vld [vmem:[%s5981_s20 + $0x4b0] ss:$20 sps:$4 sm:$0xff]  }
 0x22a   : > { %2889 = vmatpush1.bf16.msra.mxu1 %v5080_v38  ;;  %3108 = vmatpush1.bf16.msra.mxu0 %v5083_v39  ;;  %v5124_v38 = vld [vmem:[%s5981_s20 + $0x414] ss:$20 sps:$4 sm:$0xff]   ;;  %v5127_v39 = vld [vmem:[%s5981_s20 + $0x41c] ss:$20 sps:$4 sm:$0xff]  }
 0x22b   : > { %2890 = vmatprep.subr.bf16.mxu1 %v5088_v40  ;;  %3109 = vmatprep.subr.bf16.mxu0 %v5091_v41  ;;  %v5315_v34 = vpop.eup %5314  ;;  %v895_v41 = vrot.slane %v6130_v11, %v894_v33 }
 0x22c   : > { %v1049_v40 = vadd.f32 1.0, %v5315_v34  ;;  %v1078_v34 = vld [vmem:[%s5967_s9 + $0x68] sm:$0xff] }
 0x22d   : > { %2862 = vmatmul.mubr.bf16.gmra.mrb[12].mxu1 %v6237_v54  ;;  %3081 = vmatmul.mubr.bf16.gmra.mrb[16].mxu0 %v6237_v54  ;;  %v1025_v47 = vadd.f32 %v6196_v21, %v895_v41  ;;  %v5142_v21 = vld [vmem:[%s5981_s20 + $0x48c] ss:$20 sps:$4 sm:$0xff]   ;;  %v1109_v41 = vunpack.c.l.bf16 %v1075_v8 }
 0x22e   : > { %2891 = vmatpush1.bf16.msra.mxu1 %v5086_v52  ;;  %3110 = vmatpush1.bf16.msra.mxu0 %v5089_v53  ;;  %5316 = vrcp.f32 %v1049_v40  ;;  %v5131_v52 = vld [vmem:[%s5981_s20 + $0x440] ss:$20 sps:$4 sm:$0xff]   ;;  %v5136_v53 = vld [vmem:[%s5981_s20 + $0x464] ss:$20 sps:$4 sm:$0xff]   ;;  %v1103_v40 = vunpack.c.l.bf16 %v1072_v7 }
 0x22f   : > { %2871 = vmatprep.mubr.bf16.mxu1 %v6251_v26  ;;  %3090 = vmatprep.mubr.bf16.mxu0 %v6251_v26  ;;  %v4330_v56 = vmul.f32 -1.442695, %v1025_v47 }
 0x230   : > { %2892 = vmatprep.subr.bf16.mxu1 %v5094_v57  ;;  %3111 = vmatprep.subr.bf16.mxu0 %v5097_v59  ;;  %v5137_v57 = vld [vmem:[%s5981_s20 + $0x468] ss:$20 sps:$4 sm:$0xff]  }
 0x231   : > { %v5145_v59 = vld [vmem:[%s5981_s20 + $0x494] ss:$20 sps:$4 sm:$0xff]   ;;  %5318 = vpow2.f32 %v4330_v56 }
 0x232   : > { %2893 = vmatpush1.bf16.msra.mxu1 %v5092_v0  ;;  %3112 = vmatpush1.bf16.msra.mxu0 %v5095_v1  ;;  %v5143_v0 = vld [vmem:[%s5981_s20 + $0x490] ss:$20 sps:$4 sm:$0xff]   ;;  %v5148_v1 = vld [vmem:[%s5981_s20 + $0x4b4] ss:$20 sps:$4 sm:$0xff]  }
 0x233   : > { %2894 = vmatprep.subr.bf16.mxu1 %v5100_v2  ;;  %3113 = vmatprep.subr.bf16.mxu0 %v5103_v3  ;;  %v5151_v2 = vld [vmem:[%s5981_s20 + $0x4bc] ss:$20 sps:$4 sm:$0xff]   ;;  %v5172_v56 = vld [vmem:[%s5981_s20 + $0x554] ss:$20 sps:$4 sm:$0xff]  }
 0x235   : > { %2872 = vmatmul.mubr.bf16.gmra.mrb[16].mxu1 %v6265_v16  ;;  %3091 = vmatmul.mubr.bf16.gmra.mrb[20].mxu0 %v6265_v16 }
 0x236   : > { %2895 = vmatpush1.bf16.msra.mxu1 %v5098_v14  ;;  %3114 = vmatpush1.bf16.msra.mxu0 %v5101_v15  ;;  %v5149_v14 = vld [vmem:[%s5981_s20 + $0x4b8] ss:$20 sps:$4 sm:$0xff]   ;;  %v5154_v15 = vld [vmem:[%s5981_s20 + $0x4dc] ss:$20 sps:$4 sm:$0xff]  }
 0x237   : > { %2896 = vmatprep.subr.bf16.mxu1 %v5106_v46  ;;  %3115 = vmatprep.subr.bf16.mxu0 %v5109_v18  ;;  %v5157_v46 = vld [vmem:[%s5981_s20 + $0x4e4] ss:$20 sps:$4 sm:$0xff]   ;;  %v1104_v18 = vunpack.c.h.bf16 %v1072_v7  ;;  %v5178_v7 = vld [vmem:[%s5981_s20 + $0x57c] ss:$20 sps:$4 sm:$0xff]  }
 0x238   : > { %2914 = vmatprep.mubr.bf16.mxu1 %v6269_v19  ;;  %3133 = vmatprep.mubr.bf16.mxu0 %v6269_v19  ;;  %v5317_v61 = vpop.eup %5316 }
 0x239   : > { %v6307_v3 = vrot.slane %v5317_v61, %v6127_v10  ;;  %v6351_v61 = vld [vmem:[%s5967_s9 + $0xb0] sm:$0xff] }
 0x23a   : > { %2897 = vmatpush1.bf16.msra.mxu1 %v5104_v20  ;;  %3116 = vmatpush1.bf16.msra.mxu0 %v5107_v22  ;;  %v1110_v20 = vunpack.c.h.bf16 %v1075_v8  ;;  %v5181_v8 = vld [vmem:[%s5981_s20 + $0x584] ss:$20 sps:$4 sm:$0xff]  }
 0x23b   : > { %2898 = vmatprep.subr.bf16.mxu1 %v5112_v23  ;;  %3117 = vmatprep.subr.bf16.mxu0 %v5115_v25  ;;  %v1163_v50 = vmul.f32 %v6307_v3, %v1091_v5  ;;  %v1169_v51 = vmul.f32 %v6307_v3, %v1097_v6  ;;  %v5319_v22 = vpop.eup %5318  ;;  %v5152_v23 = vld [vmem:[%s5981_s20 + $0x4d8] ss:$20 sps:$4 sm:$0xff]   ;;  %v5155_v25 = vld [vmem:[%s5981_s20 + $0x4e0] ss:$20 sps:$4 sm:$0xff]  }
 0x23d   : > { %v6325_v33 = vpack.c.bf16 %v1169_v51, %v1163_v50 }
 0x23e   : > { %2899 = vmatpush1.bf16.msra.mxu1 %v5110_v27  ;;  %3118 = vmatpush1.bf16.msra.mxu0 %v5113_v29  ;;  %v5160_v27 = vld [vmem:[%s5981_s20 + $0x504] ss:$20 sps:$4 sm:$0xff]   ;;  %v5163_v29 = vld [vmem:[%s5981_s20 + $0x50c] ss:$20 sps:$4 sm:$0xff]  }
 0x23f   : > { %2900 = vmatprep.subr.bf16.mxu1 %v5118_v30  ;;  %3119 = vmatprep.subr.bf16.mxu0 %v5121_v32  ;;  %v1176_v30 = vmul.f32 %v6245_v60, %v1104_v18  ;;  %v1182_v32 = vmul.f32 %v6245_v60, %v1110_v20  ;;  %v5179_v18 = vld [vmem:[%s5981_s20 + $0x580] ss:$20 sps:$4 sm:$0xff]  }
 0x242   : > { %2901 = vmatpush1.bf16.msra.mxu1 %v5116_v36  ;;  %3120 = vmatpush1.bf16.msra.mxu0 %v5119_v37  ;;  %v1081_v36 = vld [vmem:[%s5967_s9 + $0x80] sm:$0xff]  ;;  %v1052_v37 = vadd.f32 1.0, %v5319_v22 }
 0x243   : > { %2902 = vmatprep.subr.bf16.mxu1 %v5124_v38  ;;  %3121 = vmatprep.subr.bf16.mxu0 %v5127_v39  ;;  %v5158_v38 = vld [vmem:[%s5981_s20 + $0x500] ss:$20 sps:$4 sm:$0xff]   ;;  %v5161_v39 = vld [vmem:[%s5981_s20 + $0x508] ss:$20 sps:$4 sm:$0xff]   ;;  %v1122_v47 = vunpack.c.h.bf16 %v1081_v36  ;;  %v1121_v5 = vunpack.c.l.bf16 %v1081_v36  ;;  %v5184_v22 = vld [vmem:[%s5981_s20 + $0x5a4] ss:$20 sps:$4 sm:$0xff]  }
 0x244   : > { %5320 = vrcp.f32 %v1052_v37 }
 0x245   : > { %v1193_v51 = vmul.f32 %v6307_v3, %v1121_v5  ;;  %v5203_v5 = vld [vmem:[%s5981_s20 + $0x620] ss:$20 sps:$4 sm:$0xff]  }
 0x246   : > { %2903 = vmatpush1.bf16.msra.mxu1 %v5122_v42  ;;  %3122 = vmatpush1.bf16.msra.mxu0 %v5125_v43  ;;  %v6331_v42 = vpack.c.bf16 %v1182_v32, %v1176_v30  ;;  %v5166_v43 = vld [vmem:[%s5981_s20 + $0x52c] ss:$20 sps:$4 sm:$0xff]  }
 0x247   : > { %2904 = vmatprep.subr.bf16.mxu1 %v5130_v44  ;;  %3123 = vmatprep.subr.bf16.mxu0 %v5133_v45  ;;  %v5169_v44 = vld [vmem:[%s5981_s20 + $0x534] ss:$20 sps:$4 sm:$0xff]   ;;  %v1116_v45 = vunpack.c.h.bf16 %v1078_v34 }
 0x24a   : > { %2905 = vmatpush1.bf16.msra.mxu1 %v5128_v48  ;;  %3124 = vmatpush1.bf16.msra.mxu0 %v5131_v52  ;;  %v5164_v48 = vld [vmem:[%s5981_s20 + $0x528] ss:$20 sps:$4 sm:$0xff]   ;;  %v5167_v52 = vld [vmem:[%s5981_s20 + $0x530] ss:$20 sps:$4 sm:$0xff]  }
 0x24b   : > { %2906 = vmatprep.subr.bf16.mxu1 %v5136_v53  ;;  %3125 = vmatprep.subr.bf16.mxu0 %v5139_v55  ;;  %v1175_v53 = vmul.f32 %v6307_v3, %v1103_v40  ;;  %v1181_v55 = vmul.f32 %v6307_v3, %v1109_v41  ;;  %v5185_v40 = vld [vmem:[%s5981_s20 + $0x5a8] ss:$20 sps:$4 sm:$0xff]  }
 0x24e   : > { %2907 = vmatpush1.bf16.msra.mxu1 %v5134_v49  ;;  %3126 = vmatpush1.bf16.msra.mxu0 %v5137_v57  ;;  %v5175_v49 = vld [vmem:[%s5981_s20 + $0x55c] ss:$20 sps:$4 sm:$0xff]   ;;  %v1188_v57 = vmul.f32 %v6245_v60, %v1116_v45  ;;  %v5321_v20 = vpop.eup %5320 }
 0x24f   : > { %2908 = vmatprep.subr.bf16.mxu1 %v5142_v21  ;;  %3127 = vmatprep.subr.bf16.mxu0 %v5145_v59  ;;  %v1194_v21 = vmul.f32 %v6245_v60, %v1122_v47  ;;  %v6348_v59 = vld [vmem:[%s5967_s9 + $0x98] sm:$0xff]  ;;  %v6388_v36 = vrot.slane %v5321_v20, %v6127_v10  ;;  %v5188_v47 = vld [vmem:[%s5981_s20 + $0x5c8] ss:$20 sps:$4 sm:$0xff]  }
 0x250   : > { %v5212_v20 = vld [vmem:[%s5981_s20 + $0x668] ss:$20 sps:$4 sm:$0xff]  }
 0x251   : > { %v6357_v6 = vpack.c.bf16 %v1194_v21, %v1188_v57  ;;  %v5194_v21 = vld [vmem:[%s5981_s20 + $0x5f0] ss:$20 sps:$4 sm:$0xff]  }
 0x252   : > { %2909 = vmatpush1.bf16.msra.mxu1 %v5140_v63  ;;  %3128 = vmatpush1.bf16.msra.mxu0 %v5143_v0  ;;  %v5170_v63 = vld [vmem:[%s5981_s20 + $0x550] ss:$20 sps:$4 sm:$0xff]   ;;  %v6354_v0 = vpack.c.bf16 %v1181_v55, %v1175_v53 }
 0x253   : > { %2910 = vmatprep.subr.bf16.mxu1 %v5148_v1  ;;  %3129 = vmatprep.subr.bf16.mxu0 %v5151_v2  ;;  %v5173_v1 = vld [vmem:[%s5981_s20 + $0x558] ss:$20 sps:$4 sm:$0xff]   ;;  %v1115_v2 = vunpack.c.l.bf16 %v1078_v34  ;;  %v5182_v34 = vld [vmem:[%s5981_s20 + $0x5a0] ss:$20 sps:$4 sm:$0xff]   ;;  %v5191_v53 = vld [vmem:[%s5981_s20 + $0x5d0] ss:$20 sps:$4 sm:$0xff]  }
 0x255   : > { %v1187_v50 = vmul.f32 %v6307_v3, %v1115_v2  ;;  %v5200_v2 = vld [vmem:[%s5981_s20 + $0x618] ss:$20 sps:$4 sm:$0xff]  }
 0x256   : > { %2911 = vmatpush1.bf16.msra.mxu1 %v5146_v9  ;;  %3130 = vmatpush1.bf16.msra.mxu0 %v5149_v14  ;;  %v1128_v9 = vunpack.c.h.bf16 %v6348_v59  ;;  %v1134_v14 = vunpack.c.h.bf16 %v6351_v61 }
 0x257   : > { %2912 = vmatprep.subr.bf16.mxu1 %v5154_v15  ;;  %3131 = vmatprep.subr.bf16.mxu0 %v5157_v46  ;;  %v6366_v15 = vsub.s32 4, %v5996_v12  ;;  %v5176_v46 = vld [vmem:[%s5981_s20 + $0x578] ss:$20 sps:$4 sm:$0xff]  }
 0x258   : > { %v1206_v30 = vmul.f32 %v6245_v60, %v1134_v14  ;;  %v5209_v14 = vld [vmem:[%s5981_s20 + $0x648] ss:$20 sps:$4 sm:$0xff]  }
 0x259   : > { %v891_v32 = vrot.slane %v6130_v11, %v6366_v15  ;;  %v1133_v11 = vunpack.c.l.bf16 %v6351_v61 }
 0x25a   : > { %2913 = vmatpush1.bf16.msra.mxu1 %v5152_v23  ;;  %3132 = vmatpush1.bf16.msra.mxu0 %v5155_v25  ;;  %v6376_v23 = vld [vmem:[%s5967_s9 + $0x10] sm:$0xff]  ;;  %v6379_v25 = vld [vmem:[%s5967_s9 + $0x28] sm:$0xff] }
 0x25b   : > { %2955 = vmatprep.subr.bf16.mxu1 %v5160_v27  ;;  %3174 = vmatprep.subr.bf16.mxu0 %v5163_v29  ;;  %v5187_v27 = vld [vmem:[%s5981_s20 + $0x5ac] ss:$20 sps:$4 sm:$0xff]   ;;  %v1200_v29 = vmul.f32 %v6245_v60, %v1128_v9  ;;  %v1094_v37 = vunpack.c.h.bf16 %v6376_v23  ;;  %v1127_v60 = vunpack.c.l.bf16 %v6348_v59  ;;  %v1023_v45 = vadd.f32 %v6189_v17, %v891_v32 }
 0x25c   : > { %v1205_v17 = vmul.f32 %v6307_v3, %v1133_v11  ;;  %v5206_v9 = vld [vmem:[%s5981_s20 + $0x640] ss:$20 sps:$4 sm:$0xff]   ;;  %v5221_v32 = vld [vmem:[%s5981_s20 + $0x698] ss:$20 sps:$4 sm:$0xff]  }
 0x25d   : > { %2915 = vmatmul.mubr.bf16.vlgmr.msra.gmra.mrb[4].mxu1 %v6325_v33  ;;  %3134 = vmatmul.mubr.bf16.vlgmr.msra.gmra.mrb[8].mxu0 %v6325_v33  ;;  %v6397_v41 = vpack.c.bf16 %v1206_v30, %v1200_v29  ;;  %v1199_v55 = vmul.f32 %v6307_v3, %v1127_v60  ;;  %v4329_v57 = vmul.f32 -1.442695, %v1023_v45  ;;  %v5205_v3 = vld [vmem:[%s5981_s20 + $0x624] ss:$20 sps:$4 sm:$0xff]   ;;  %v5235_v11 = vld [vmem:[%s5981_s20 + $0x6ec] ss:$20 sps:$4 sm:$0xff]  }
 0x25e   : > { %2924 = vmatprep.mubr.bf16.mxu1 %v6331_v42  ;;  %2956 = vmatpush1.bf16.msra.mxu1 %v5158_v38  ;;  %v1100_v38 = vunpack.c.h.bf16 %v6379_v25  ;;  %v5218_v30 = vld [vmem:[%s5981_s20 + $0x690] ss:$20 sps:$4 sm:$0xff]   ;;  %v5238_v45 = vld [vmem:[%s5981_s20 + $0x70c] ss:$20 sps:$4 sm:$0xff]  }
 0x25f   : > { %3143 = vmatprep.mubr.bf16.mxu0 %v6331_v42  ;;  %3175 = vmatpush1.bf16.msra.mxu0 %v5161_v39  ;;  %v6392_v39 = vpack.c.bf16 %v1193_v51, %v1187_v50  ;;  %v6417_v61 = vpack.c.bf16 %v1205_v17, %v1199_v55  ;;  %5322 = vpow2.f32 %v4329_v57  ;;  %v5215_v51 = vld [vmem:[%s5981_s20 + $0x670] ss:$20 sps:$4 sm:$0xff]  }
 0x260   : > { %2957 = vmatprep.subr.bf16.mxu1 %v5166_v43  ;;  %3176 = vmatprep.subr.bf16.mxu0 %v5169_v44  ;;  %v5190_v43 = vld [vmem:[%s5981_s20 + $0x5cc] ss:$20 sps:$4 sm:$0xff]   ;;  %v5193_v44 = vld [vmem:[%s5981_s20 + $0x5d4] ss:$20 sps:$4 sm:$0xff]   ;;  %v5232_v60 = vld [vmem:[%s5981_s20 + $0x6e4] ss:$20 sps:$4 sm:$0xff]  }
 0x261   : > { %v5247_v17 = vld [vmem:[%s5981_s20 + $0x73c] ss:$20 sps:$4 sm:$0xff]  }
 0x262   : > { %2958 = vmatpush1.bf16.msra.mxu1 %v5164_v48  ;;  %v1166_v48 = vmul.f32 %v6388_v36, %v1094_v37  ;;  %v5229_v37 = vld [vmem:[%s5981_s20 + $0x6c4] ss:$20 sps:$4 sm:$0xff]  }
 0x263   : > { %3177 = vmatpush1.bf16.msra.mxu0 %v5167_v52  ;;  %2959 = vmatprep.subr.bf16.mxu1 %v5172_v56  ;;  %v1172_v52 = vmul.f32 %v6388_v36, %v1100_v38  ;;  %v5196_v56 = vld [vmem:[%s5981_s20 + $0x5f4] ss:$20 sps:$4 sm:$0xff]   ;;  %v5224_v38 = vld [vmem:[%s5981_s20 + $0x6b8] ss:$20 sps:$4 sm:$0xff]   ;;  %v5242_v57 = vld [vmem:[%s5981_s20 + $0x730] ss:$20 sps:$4 sm:$0xff]  }
 0x264   : > { %3178 = vmatprep.subr.bf16.mxu0 %v5175_v49  ;;  %v5199_v49 = vld [vmem:[%s5981_s20 + $0x5fc] ss:$20 sps:$4 sm:$0xff]  }
 0x265   : > { %2925 = vmatmul.mubr.bf16.gmra.mrb[8].mxu1 %v6354_v0  ;;  %3144 = vmatmul.mubr.bf16.gmra.mrb[12].mxu0 %v6354_v0  ;;  %v6415_v59 = vpack.c.bf16 %v1172_v52, %v1166_v48  ;;  %v5236_v48 = vld [vmem:[%s5981_s20 + $0x708] ss:$20 sps:$4 sm:$0xff]   ;;  %v5239_v52 = vld [vmem:[%s5981_s20 + $0x710] ss:$20 sps:$4 sm:$0xff]  }
 0x266   : > { %2934 = vmatprep.mubr.bf16.mxu1 %v6357_v6  ;;  %2960 = vmatpush1.bf16.msra.mxu1 %v5170_v63  ;;  %v5197_v63 = vld [vmem:[%s5981_s20 + $0x5f8] ss:$20 sps:$4 sm:$0xff]  }
 0x267   : > { %3153 = vmatprep.mubr.bf16.mxu0 %v6357_v6  ;;  %3179 = vmatpush1.bf16.msra.mxu0 %v5173_v1  ;;  %v5202_v1 = vld [vmem:[%s5981_s20 + $0x61c] ss:$20 sps:$4 sm:$0xff]  }
 0x268   : > { %2961 = vmatprep.subr.bf16.mxu1 %v5178_v7  ;;  %3180 = vmatprep.subr.bf16.mxu0 %v5181_v8  ;;  %v5208_v7 = vld [vmem:[%s5981_s20 + $0x644] ss:$20 sps:$4 sm:$0xff]   ;;  %v5211_v8 = vld [vmem:[%s5981_s20 + $0x64c] ss:$20 sps:$4 sm:$0xff]  }
 0x269   : > { %v5323_v50 = vpop.eup %5322 }
 0x26a   : > { %2962 = vmatpush1.bf16.msra.mxu1 %v5176_v46  ;;  %v5214_v46 = vld [vmem:[%s5981_s20 + $0x66c] ss:$20 sps:$4 sm:$0xff]   ;;  %v1051_v29 = vadd.f32 1.0, %v5323_v50 }
 0x26b   : > { %3181 = vmatpush1.bf16.msra.mxu0 %v5179_v18  ;;  %2963 = vmatprep.subr.bf16.mxu1 %v5184_v22  ;;  %v5217_v18 = vld [vmem:[%s5981_s20 + $0x674] ss:$20 sps:$4 sm:$0xff]  }
 0x26c   : > { %3182 = vmatprep.subr.bf16.mxu0 %v5187_v27  ;;  %v5220_v22 = vld [vmem:[%s5981_s20 + $0x694] ss:$20 sps:$4 sm:$0xff]   ;;  %v5223_v27 = vld [vmem:[%s5981_s20 + $0x69c] ss:$20 sps:$4 sm:$0xff]   ;;  %5324 = vrcp.f32 %v1051_v29 }
 0x26d   : > { %2935 = vmatmul.mubr.bf16.gmra.mrb[12].mxu1 %v6392_v39  ;;  %3154 = vmatmul.mubr.bf16.gmra.mrb[16].mxu0 %v6392_v39  ;;  %v5256_v29 = vld [vmem:[%s5981_s20 + $0x10] ss:$20 sps:$4 sm:$0xff]  }
 0x26e   : > { %2944 = vmatprep.mubr.bf16.mxu1 %v6397_v41  ;;  %2964 = vmatpush1.bf16.msra.mxu1 %v5182_v34  ;;  %v5226_v34 = vld [vmem:[%s5981_s20 + $0x6bc] ss:$20 sps:$4 sm:$0xff]  }
 0x26f   : > { %3163 = vmatprep.mubr.bf16.mxu0 %v6397_v41  ;;  %3183 = vmatpush1.bf16.msra.mxu0 %v5185_v40  ;;  %v5227_v40 = vld [vmem:[%s5981_s20 + $0x6c0] ss:$20 sps:$4 sm:$0xff]  }
 0x270   : > { %2965 = vmatprep.subr.bf16.mxu1 %v5190_v43  ;;  %3184 = vmatprep.subr.bf16.mxu0 %v5193_v44  ;;  %v5230_v43 = vld [vmem:[%s5981_s20 + $0x6e0] ss:$20 sps:$4 sm:$0xff]   ;;  %v5233_v44 = vld [vmem:[%s5981_s20 + $0x6e8] ss:$20 sps:$4 sm:$0xff]  }
 0x272   : > { %2966 = vmatpush1.bf16.msra.mxu1 %v5188_v47  ;;  %v5241_v47 = vld [vmem:[%s5981_s20 + $0x714] ss:$20 sps:$4 sm:$0xff]  }
 0x273   : > { %3185 = vmatpush1.bf16.msra.mxu0 %v5191_v53  ;;  %2967 = vmatprep.subr.bf16.mxu1 %v5196_v56  ;;  %v5244_v53 = vld [vmem:[%s5981_s20 + $0x734] ss:$20 sps:$4 sm:$0xff]  }
 0x274   : > { %3186 = vmatprep.subr.bf16.mxu0 %v5199_v49  ;;  %v1073_v56 = vld [vmem:[%s5967_s9 + $0x40] sm:$0xff]  ;;  %v1076_v49 = vld [vmem:[%s5967_s9 + $0x58] sm:$0xff] }
 0x275   : > { %2945 = vmatmul.mubr.bf16.gmra.mrb[16].mxu1 %v6417_v61  ;;  %3164 = vmatmul.mubr.bf16.gmra.mrb[20].mxu0 %v6417_v61 }
 0x276   : > { %2968 = vmatpush1.bf16.msra.mxu1 %v5194_v21  ;;  %2987 = vmatprep.mubr.bf16.mxu1 %v6415_v59  ;;  %v5325_v55 = vpop.eup %5324 }
 0x277   : > { %3187 = vmatpush1.bf16.msra.mxu0 %v5197_v63  ;;  %2969 = vmatprep.subr.bf16.mxu1 %v5202_v1  ;;  %v6458_v21 = vrot.slane %v5325_v55, %v6127_v10  ;;  %v5245_v63 = vld [vmem:[%s5981_s20 + $0x738] ss:$20 sps:$4 sm:$0xff]   ;;  %v5250_v1 = vld [vmem:[%s5981_s20 + $0x75c] ss:$20 sps:$4 sm:$0xff]   ;;  %v5263_v55 = vld [vmem:[%s5981_s20 + $0x6a0] ss:$20 sps:$4 sm:$0xff]  }
 0x278   : > { %3188 = vmatprep.subr.bf16.mxu0 %v5205_v3  ;;  %3206 = vmatprep.mubr.bf16.mxu0 %v6415_v59  ;;  %v1093_v3 = vunpack.c.l.bf16 %v6376_v23  ;;  %v5255_v23 = vld [vmem:[%s5981_s20 + $0x650] ss:$20 sps:$4 sm:$0xff]  }
 0x27a   : > { %2970 = vmatpush1.bf16.msra.mxu1 %v5200_v2  ;;  %v1099_v2 = vunpack.c.l.bf16 %v6379_v25 }
 0x27b   : > { %3189 = vmatpush1.bf16.msra.mxu0 %v5203_v5  ;;  %2971 = vmatprep.subr.bf16.mxu1 %v5208_v7  ;;  %v5253_v5 = vld [vmem:[%s5981_s20 + $0x764] ss:$20 sps:$4 sm:$0xff]   ;;  %v1106_v7 = vunpack.c.h.bf16 %v1073_v56 }
 0x27c   : > { %3190 = vmatprep.subr.bf16.mxu0 %v5211_v8  ;;  %v1112_v8 = vunpack.c.h.bf16 %v1076_v49 }
 0x27d   : > { %v1178_v25 = vmul.f32 %v6388_v36, %v1106_v7 }
 0x27e   : > { %2972 = vmatpush1.bf16.msra.mxu1 %v5206_v9  ;;  %v5248_v9 = vld [vmem:[%s5981_s20 + $0x758] ss:$20 sps:$4 sm:$0xff]   ;;  %v1184_v50 = vmul.f32 %v6388_v36, %v1112_v8 }
 0x27f   : > { %3191 = vmatpush1.bf16.msra.mxu0 %v5209_v14  ;;  %2973 = vmatprep.subr.bf16.mxu1 %v5214_v46  ;;  %v5251_v14 = vld [vmem:[%s5981_s20 + $0x760] ss:$20 sps:$4 sm:$0xff]   ;;  %v1165_v46 = vmul.f32 %v6458_v21, %v1093_v3 }
 0x280   : > { %3192 = vmatprep.subr.bf16.mxu0 %v5217_v18  ;;  %v1171_v18 = vmul.f32 %v6458_v21, %v1099_v2  ;;  %v5265_v2 = vld [vmem:[%s5981_s20 + $0x560] ss:$20 sps:$4 sm:$0xff]  }
 0x282   : > { %2974 = vmatpush1.bf16.msra.mxu1 %v5212_v20  ;;  %v5254_v20 = vld [vmem:[%s5981_s20 + $0x150] ss:$20 sps:$4 sm:$0xff]  }
 0x283   : > { %3193 = vmatpush1.bf16.msra.mxu0 %v5215_v51  ;;  %2975 = vmatprep.subr.bf16.mxu1 %v5220_v22  ;;  %v1079_v51 = vld [vmem:[%s5967_s9 + $0x70] sm:$0xff]  ;;  %v1082_v22 = vld [vmem:[%s5967_s9 + $0x88] sm:$0xff] }
 0x284   : > { %3194 = vmatprep.subr.bf16.mxu0 %v5223_v27  ;;  %v6475_v27 = vpack.c.bf16 %v1171_v18, %v1165_v46 }
 0x286   : > { %2976 = vmatpush1.bf16.msra.mxu1 %v5218_v30  ;;  %v1105_v30 = vunpack.c.l.bf16 %v1073_v56  ;;  %v1088_v56 = vld [vmem:[%s5967_s9 + $0xb8] sm:$0xff] }
 0x287   : > { %3195 = vmatpush1.bf16.msra.mxu0 %v5221_v32  ;;  %2977 = vmatprep.subr.bf16.mxu1 %v5226_v34  ;;  %v1111_v32 = vunpack.c.l.bf16 %v1076_v49  ;;  %v6478_v34 = vpack.c.bf16 %v1184_v50, %v1178_v25  ;;  %v1136_v8 = vunpack.c.h.bf16 %v1088_v56 }
 0x288   : > { %3196 = vmatprep.subr.bf16.mxu0 %v5229_v37  ;;  %v5257_v37 = vld [vmem:[%s5981_s20 + $0x510] ss:$20 sps:$4 sm:$0xff]  }
 0x289   : > { %v1208_v50 = vmul.f32 %v6388_v36, %v1136_v8  ;;  %v1236_v8 = vld [vmem:[#allocation14 + $0x18] sm:$0xff] }
 0x28a   : > { %2978 = vmatpush1.bf16.msra.mxu1 %v5224_v38  ;;  %v5258_v38 = vld [vmem:[%s5981_s20 + $0x178] ss:$20 sps:$4 sm:$0xff]  }
 0x28b   : > { %3197 = vmatpush1.bf16.msra.mxu0 %v5227_v40  ;;  %2979 = vmatprep.subr.bf16.mxu1 %v5232_v60  ;;  %v1118_v40 = vunpack.c.h.bf16 %v1079_v51  ;;  %v1124_v60 = vunpack.c.h.bf16 %v1082_v22 }
 0x28c   : > { %3198 = vmatprep.subr.bf16.mxu0 %v5235_v11  ;;  %v5259_v11 = vld [vmem:[%s5981_s20 + $0x678] ss:$20 sps:$4 sm:$0xff]  }
 0x28e   : > { %2980 = vmatpush1.bf16.msra.mxu1 %v5230_v43  ;;  %v5260_v43 = vld [vmem:[%s5981_s20 + $0x38] ss:$20 sps:$4 sm:$0xff]  }
 0x28f   : > { %3199 = vmatpush1.bf16.msra.mxu0 %v5233_v44  ;;  %2981 = vmatprep.subr.bf16.mxu1 %v5238_v45  ;;  %v1177_v44 = vmul.f32 %v6458_v21, %v1105_v30  ;;  %v1183_v45 = vmul.f32 %v6458_v21, %v1111_v32  ;;  %v1135_v32 = vunpack.c.l.bf16 %v1088_v56  ;;  %v5285_v56 = vld [vmem:[%s5981_s20 + $0x628] ss:$20 sps:$4 sm:$0xff]  }
 0x290   : > { %3200 = vmatprep.subr.bf16.mxu0 %v5241_v47  ;;  %v5261_v47 = vld [vmem:[%s5981_s20 + $0x538] ss:$20 sps:$4 sm:$0xff]  }
 0x291   : > { %v6497_v49 = vpack.c.bf16 %v1183_v45, %v1177_v44  ;;  %v5277_v44 = vld [vmem:[%s5981_s20 + $0x5d8] ss:$20 sps:$4 sm:$0xff]   ;;  %v5278_v45 = vld [vmem:[%s5981_s20 + $0x240] ss:$20 sps:$4 sm:$0xff]  }
 0x292   : > { %2982 = vmatpush1.bf16.msra.mxu1 %v5236_v48  ;;  %v5262_v48 = vld [vmem:[%s5981_s20 + $0x1a0] ss:$20 sps:$4 sm:$0xff]  }
 0x293   : > { %3201 = vmatpush1.bf16.msra.mxu0 %v5239_v52  ;;  %2983 = vmatprep.subr.bf16.mxu1 %v5244_v53  ;;  %v1190_v52 = vmul.f32 %v6388_v36, %v1118_v40  ;;  %v1196_v53 = vmul.f32 %v6388_v36, %v1124_v60  ;;  %v5274_v40 = vld [vmem:[%s5981_s20 + $0x218] ss:$20 sps:$4 sm:$0xff]  }
 0x294   : > { %3202 = vmatprep.subr.bf16.mxu0 %v5247_v17  ;;  %v1085_v17 = vld [vmem:[%s5967_s9 + $0xa0] sm:$0xff] }
 0x295   : > { %v6500_v3 = vpack.c.bf16 %v1196_v53, %v1190_v52  ;;  %v1130_v7 = vunpack.c.h.bf16 %v1085_v17  ;;  %v1129_v30 = vunpack.c.l.bf16 %v1085_v17  ;;  %v5276_v60 = vld [vmem:[%s5981_s20 + $0xd8] ss:$20 sps:$4 sm:$0xff]   ;;  %v5280_v52 = vld [vmem:[%s5981_s20 + $0x100] ss:$20 sps:$4 sm:$0xff]   ;;  %v5284_v17 = vld [vmem:[%s5981_s20 + $0x128] ss:$20 sps:$4 sm:$0xff]  }
 0x296   : > { %2984 = vmatpush1.bf16.msra.mxu1 %v5242_v57  ;;  %v5264_v57 = vld [vmem:[%s5981_s20 + $0x60] ss:$20 sps:$4 sm:$0xff]  }
 0x297   : > { %3203 = vmatpush1.bf16.msra.mxu0 %v5245_v63  ;;  %2985 = vmatprep.subr.bf16.mxu1 %v5250_v1  ;;  %v1117_v63 = vunpack.c.l.bf16 %v1079_v51  ;;  %v1123_v1 = vunpack.c.l.bf16 %v1082_v22  ;;  %v1202_v25 = vmul.f32 %v6388_v36, %v1130_v7  ;;  %v5271_v51 = vld [vmem:[%s5981_s20 + $0x6f0] ss:$20 sps:$4 sm:$0xff]   ;;  %v5275_v36 = vld [vmem:[%s5981_s20 + $0x718] ss:$20 sps:$4 sm:$0xff]   ;;  %v5281_v53 = vld [vmem:[%s5981_s20 + $0x600] ss:$20 sps:$4 sm:$0xff]  }
 0x298   : > { %3204 = vmatprep.subr.bf16.mxu0 %v5253_v5  ;;  %v5266_v5 = vld [vmem:[%s5981_s20 + $0x1c8] ss:$20 sps:$4 sm:$0xff]  }
 0x299   : > { %v1189_v46 = vmul.f32 %v6458_v21, %v1117_v63  ;;  %v1195_v18 = vmul.f32 %v6458_v21, %v1123_v1  ;;  %v5287_v63 = vld [vmem:[%s5981_s20 + $0x290] ss:$20 sps:$4 sm:$0xff]   ;;  %v5288_v1 = vld [vmem:[%s5981_s20 + $0x3f8] ss:$20 sps:$4 sm:$0xff]  }
 0x29a   : > { %2986 = vmatpush1.bf16.msra.mxu1 %v5248_v9  ;;  %v5267_v9 = vld [vmem:[%s5981_s20 + $0x6c8] ss:$20 sps:$4 sm:$0xff]  }
 0x29b   : > { %3205 = vmatpush1.bf16.msra.mxu0 %v5251_v14  ;;  %4580 = vmatprep.subr.bf16.mxu1 %v5254_v20  ;;  %v5268_v14 = vld [vmem:[%s5981_s20 + $0x88] ss:$20 sps:$4 sm:$0xff]   ;;  %v6517_v22 = vpack.c.bf16 %v1195_v18, %v1189_v46 }
 0x29c   : > { %4660 = vmatprep.subr.bf16.mxu0 %v5255_v23  ;;  %v5269_v20 = vld [vmem:[%s5981_s20 + $0x588] ss:$20 sps:$4 sm:$0xff]   ;;  %v5270_v23 = vld [vmem:[%s5981_s20 + $0x1f0] ss:$20 sps:$4 sm:$0xff]  }
 0x29d   : > { %2988 = vmatmul.mubr.bf16.vlgmr.msra.gmra.mrb[4].mxu1 %v6475_v27  ;;  %v1239_v18 = vld [vmem:[#allocation14 + $0x30] sm:$0xff] }
 0x29e   : > { %3207 = vmatmul.mubr.bf16.vlgmr.msra.gmra.mrb[8].mxu0 %v6475_v27  ;;  %2997 = vmatprep.mubr.bf16.mxu1 %v6478_v34 }
 0x29f   : > { %3216 = vmatprep.mubr.bf16.mxu0 %v6478_v34  ;;  %4581 = vmatpush3.bf16.msra.mxu1 %v5256_v29  ;;  %v5272_v29 = vld [vmem:[%s5981_s20 + $0xb0] ss:$20 sps:$4 sm:$0xff]  }
 0x2a0   : > { %4661 = vmatpush3.bf16.msra.mxu0 %v5257_v37  ;;  %4582 = vmatprep.subr.bf16.mxu1 %v5258_v38  ;;  %v6520_v37 = vpack.c.bf16 %v1208_v50, %v1202_v25  ;;  %v5273_v38 = vld [vmem:[%s5981_s20 + $0x5b0] ss:$20 sps:$4 sm:$0xff]  }
 0x2a1   : > { %4662 = vmatprep.subr.bf16.mxu0 %v5259_v11  ;;  %v1201_v11 = vmul.f32 %v6458_v21, %v1129_v30 }
 0x2a3   : > { %4583 = vmatpush3.bf16.msra.mxu1 %v5260_v43  ;;  %v1207_v43 = vmul.f32 %v6458_v21, %v1135_v32  ;;  %v5283_v21 = vld [vmem:[%s5981_s20 + $0x768] ss:$20 sps:$4 sm:$0xff]  }
 0x2a4   : > { %4663 = vmatpush3.bf16.msra.mxu0 %v5261_v47  ;;  %4584 = vmatprep.subr.bf16.mxu1 %v5262_v48  ;;  %v5279_v47 = vld [vmem:[%s5981_s20 + $0x740] ss:$20 sps:$4 sm:$0xff]  }
 0x2a5   : > { %2998 = vmatmul.mubr.bf16.gmra.mrb[8].mxu1 %v6497_v49  ;;  %4664 = vmatprep.subr.bf16.mxu0 %v5263_v55  ;;  %v1231_v48 = vpack.c.bf16 %v1207_v43, %v1201_v11  ;;  %v5282_v55 = vld [vmem:[%s5981_s20 + $0x268] ss:$20 sps:$4 sm:$0xff]  }
 0x2a6   : > { %3217 = vmatmul.mubr.bf16.gmra.mrb[12].mxu0 %v6497_v49  ;;  %3007 = vmatprep.mubr.bf16.mxu1 %v6500_v3  ;;  %v1243_v32 = vld [vmem:[#allocation14 + $0x50] sm:$0xff] }
 0x2a7   : > { %3226 = vmatprep.mubr.bf16.mxu0 %v6500_v3  ;;  %4585 = vmatpush3.bf16.msra.mxu1 %v5264_v57  ;;  %v5286_v57 = vld [vmem:[%s5981_s20 + $0x3d0] ss:$20 sps:$4 sm:$0xff]  }
 0x2a8   : > { %4665 = vmatpush3.bf16.msra.mxu0 %v5265_v2  ;;  %4586 = vmatprep.subr.bf16.mxu1 %v5266_v5  ;;  %v5291_v2 = vld [vmem:[%s5981_s20 + $0x2e0] ss:$20 sps:$4 sm:$0xff]   ;;  %v5292_v5 = vld [vmem:[%s5981_s20 + $0x448] ss:$20 sps:$4 sm:$0xff]  }
 0x2a9   : > { %4666 = vmatprep.subr.bf16.mxu0 %v5267_v9  ;;  %v1238_v9 = vld [vmem:[#allocation14 + $0x28] sm:$0xff] }
 0x2ab   : > { %4587 = vmatpush3.bf16.msra.mxu1 %v5268_v14 }
 0x2ac   : > { %4667 = vmatpush3.bf16.msra.mxu0 %v5269_v20  ;;  %4588 = vmatprep.subr.bf16.mxu1 %v5270_v23 }
 0x2ad   : > { %3008 = vmatmul.mubr.bf16.gmra.mrb[12].mxu1 %v6517_v22  ;;  %4668 = vmatprep.subr.bf16.mxu0 %v5271_v51 }
 0x2ae   : > { %3227 = vmatmul.mubr.bf16.gmra.mrb[16].mxu0 %v6517_v22  ;;  %3017 = vmatprep.mubr.bf16.mxu1 %v6520_v37 }
 0x2af   : > { %3236 = vmatprep.mubr.bf16.mxu0 %v6520_v37  ;;  %4589 = vmatpush3.bf16.msra.mxu1 %v5272_v29 }
 0x2b0   : > { %4669 = vmatpush3.bf16.msra.mxu0 %v5273_v38  ;;  %4590 = vmatprep.subr.bf16.mxu1 %v5274_v40  ;;  %v1244_v38 = vld [vmem:[#allocation14 + $0x58] sm:$0xff] }
 0x2b1   : > { %4670 = vmatprep.subr.bf16.mxu0 %v5275_v36  ;;  %v1246_v36 = vld [vmem:[#allocation14 + $0x68] sm:$0xff] }
 0x2b3   : > { %4591 = vmatpush3.bf16.msra.mxu1 %v5276_v60  ;;  %v1248_v60 = vld [vmem:[#allocation14 + $0x78] sm:$0xff] }
 0x2b4   : > { %4671 = vmatpush3.bf16.msra.mxu0 %v5277_v44  ;;  %4592 = vmatprep.subr.bf16.mxu1 %v5278_v45  ;;  %v1250_v45 = vld [vmem:[#allocation14 + $0x88] sm:$0xff] }
 0x2b5   : > { %3018 = vmatmul.mubr.bf16.gmra.mrb[16].mxu1 %v1231_v48  ;;  %4672 = vmatprep.subr.bf16.mxu0 %v5279_v47  ;;  %v1249_v47 = vld [vmem:[#allocation14 + $0x80] sm:$0xff] }
 0x2b6   : > { %3237 = vmatmul.mubr.bf16.gmra.mrb[20].mxu0 %v1231_v48  ;;  %3279 = vmatprep.mubr.bf16.mxu1 %v6165_v58  ;;  %v5289_v58 = vld [vmem:[%s5981_s20 + $0x2b8] ss:$20 sps:$4 sm:$0xff]  }
 0x2b7   : > { %4593 = vmatpush3.bf16.msra.mxu1 %v5280_v52  ;;  %3409 = vmatprep.mubr.bf16.mxu0 %v6415_v59  ;;  %v5290_v59 = vld [vmem:[%s5981_s20 + $0x420] ss:$20 sps:$4 sm:$0xff]  }
 0x2b8   : > { %4673 = vmatpush3.bf16.msra.mxu0 %v5281_v53  ;;  %4594 = vmatprep.subr.bf16.mxu1 %v5282_v55 }
 0x2b9   : > { %4674 = vmatprep.subr.bf16.mxu0 %v5283_v21  ;;  %v1251_v21 = vld [vmem:[#allocation14 + $0x90] sm:$0xff] }
 0x2bb   : > { %4595 = vmatpush3.bf16.msra.mxu1 %v5284_v17 }
 0x2bc   : > { %4675 = vmatpush3.bf16.msra.mxu0 %v5285_v56  ;;  %4620 = vmatprep.subr.bf16.mxu1 %v5286_v57 }
 0x2be   : > { %3280 = vmatmul.mubr.bf16.vlgmr.msra.gmra.mrb[20].mxu1 %v6170_v62  ;;  %v5293_v62 = vld [vmem:[%s5981_s20 + $0x308] ss:$20 sps:$4 sm:$0xff]  }
 0x2bf   : > { %3410 = vmatmul.mubr.bf16.vlgmr.msra.gmra.mrb[24].mxu0 %v6475_v27  ;;  %3287 = vmatprep.mubr.bf16.mxu1 %v6178_v4  ;;  %v5294_v4 = vld [vmem:[%s5981_s20 + $0x470] ss:$20 sps:$4 sm:$0xff]  }
 0x2c0   : > { %4621 = vmatpush3.bf16.msra.mxu1 %v5287_v63  ;;  %3417 = vmatprep.mubr.bf16.mxu0 %v6478_v34  ;;  %v5295_v27 = vld [vmem:[%s5981_s20 + $0x330] ss:$20 sps:$4 sm:$0xff]   ;;  %v5296_v34 = vld [vmem:[%s5981_s20 + $0x498] ss:$20 sps:$4 sm:$0xff]  }
 0x2c1   : > { %4622 = vmatprep.subr.bf16.mxu1 %v5288_v1 }
 0x2c4   : > { %4623 = vmatpush3.bf16.msra.mxu1 %v5289_v58 }
 0x2c5   : > { %4624 = vmatprep.subr.bf16.mxu1 %v5290_v59 }
 0x2c6   : > { %3288 = vmatmul.mubr.bf16.gmra.mrb[24].mxu1 %v6203_v28  ;;  %v5297_v28 = vld [vmem:[%s5981_s20 + $0x358] ss:$20 sps:$4 sm:$0xff]  }
 0x2c7   : > { %3418 = vmatmul.mubr.bf16.gmra.mrb[28].mxu0 %v6497_v49  ;;  %3295 = vmatprep.mubr.bf16.mxu1 %v6213_v35  ;;  %v5298_v35 = vld [vmem:[%s5981_s20 + $0x4c0] ss:$20 sps:$4 sm:$0xff]  }
 0x2c8   : > { %4625 = vmatpush3.bf16.msra.mxu1 %v5291_v2  ;;  %3425 = vmatprep.mubr.bf16.mxu0 %v6500_v3  ;;  %v5299_v49 = vld [vmem:[%s5981_s20 + $0x380] ss:$20 sps:$4 sm:$0xff]   ;;  %v5300_v3 = vld [vmem:[%s5981_s20 + $0x4e8] ss:$20 sps:$4 sm:$0xff]  }
 0x2c9   : > { %4626 = vmatprep.subr.bf16.mxu1 %v5292_v5  ;;  %v1253_v5 = vld [vmem:[#allocation14 + $0xa0] sm:$0xff] }
 0x2cc   : > { %4627 = vmatpush3.bf16.msra.mxu1 %v5293_v62  ;;  %v1255_v62 = vld [vmem:[#allocation14 + $0xb0] sm:$0xff] }
 0x2cd   : > { %4628 = vmatprep.subr.bf16.mxu1 %v5294_v4  ;;  %v1254_v4 = vld [vmem:[#allocation14 + $0xa8] sm:$0xff] }
 0x2ce   : > { %3296 = vmatmul.mubr.bf16.gmra.mrb[28].mxu1 %v6237_v54  ;;  %v5301_v54 = vld [vmem:[%s5981_s20 + $0x3a8] ss:$20 sps:$4 sm:$0xff]  }
 0x2cf   : > { %3426 = vmatmul.mubr.bf16.gmra.mrb[32].mxu0 %v6517_v22  ;;  %3303 = vmatprep.mubr.bf16.mxu1 %v6251_v26  ;;  %v1233_v26 = vld [vmem:[#allocation14] sm:$0xff] }
 0x2d0   : > { %4629 = vmatpush3.bf16.msra.mxu1 %v5295_v27  ;;  %3433 = vmatprep.mubr.bf16.mxu0 %v6520_v37  ;;  %v1245_v37 = vld [vmem:[#allocation14 + $0x60] sm:$0xff] }
 0x2d1   : > { %4630 = vmatprep.subr.bf16.mxu1 %v5296_v34  ;;  %v1256_v34 = vld [vmem:[#allocation14 + $0xb8] sm:$0xff] }
 0x2d4   : > { %4631 = vmatpush3.bf16.msra.mxu1 %v5297_v28  ;;  %v1258_v28 = vld [vmem:[#allocation14 + $0xc8] sm:$0xff] }
 0x2d5   : > { %4632 = vmatprep.subr.bf16.mxu1 %v5298_v35 }
 0x2d6   : > { %3304 = vmatmul.mubr.bf16.gmra.mrb[32].mxu1 %v6265_v16  ;;  %v1235_v16 = vld [vmem:[#allocation14 + $0x10] sm:$0xff] }
 0x2d7   : > { %3434 = vmatmul.mubr.bf16.gmra.mrb[36].mxu0 %v1231_v48  ;;  %3344 = vmatprep.mubr.bf16.mxu1 %v6269_v19  ;;  %v1234_v19 = vld [vmem:[#allocation14 + $0x8] sm:$0xff] }
 0x2d8   : > { %4633 = vmatpush3.bf16.msra.mxu1 %v5299_v49 }
 0x2d9   : > { %4634 = vmatprep.subr.bf16.mxu1 %v5300_v3 }
 0x2dc   : > { %4635 = vmatpush3.bf16.msra.mxu1 %v5301_v54  ;;  %v1260_v54 = vld [vmem:[#allocation14 + $0xd8] sm:$0xff] }
 0x2df   : > { %3345 = vmatmul.mubr.bf16.vlgmr.msra.gmra.mrb[36].mxu1 %v6325_v33 }
 0x2e0   : > { %3352 = vmatprep.mubr.bf16.mxu1 %v6331_v42  ;;  %v1240_v42 = vld [vmem:[#allocation14 + $0x38] sm:$0xff] }
 0x2e7   : > { %3353 = vmatmul.mubr.bf16.gmra.mrb[40].mxu1 %v6354_v0 }
 0x2e8   : > { %3360 = vmatprep.mubr.bf16.mxu1 %v6357_v6 }
 0x2ef   : > { %3361 = vmatmul.mubr.bf16.gmra.mrb[44].mxu1 %v6392_v39  ;;  %v1241_v39 = vld [vmem:[#allocation14 + $0x40] sm:$0xff] }
 0x2f0   : > { %3368 = vmatprep.mubr.bf16.mxu1 %v6397_v41 }
 0x2f7   : > { %3369 = vmatmul.mubr.bf16.gmra.mrb[48].mxu1 %v6417_v61 }
 0x370   : > { %v2989_v7 = vpop.f32.mrb[4].mxu1 }
 0x371   : > { %v3442_v14 = vadd.f32 %v2989_v7, %v1233_v26  ;;  %v3208_v33 = vpop.f32.mrb[8].mxu0  ;;  %v2991_v46 = vpop.f32.mrb[5].mxu1  ;;  %v1259_v26 = vld [vmem:[#allocation14 + $0xd0] sm:$0xff] }
 0x372   : > { %v3444_v0 = vadd.f32 %v3208_v33, %v1235_v16  ;;  %v3443_v20 = vadd.f32 %v2991_v46, %v1234_v19  ;;  %v3210_v6 = vpop.f32.mrb[9].mxu0  ;;  %v2993_v23 = vpop.f32.mrb[6].mxu1 }
 0x373   : > { %3482 = vst [vmem:[#allocation14] sm:$0xff] %v3442_v14  ;;  %v3445_v41 = vadd.f32 %v3210_v6, %v1236_v8  ;;  %v3447_v25 = vadd.f32 %v2993_v23, %v1238_v9  ;;  %v3212_v61 = vpop.f32.mrb[10].mxu0  ;;  %v2995_v50 = vpop.f32.mrb[7].mxu1  ;;  %v1261_v9 = vld [vmem:[#allocation14 + $0xe0] sm:$0xff]  ;;  %v1263_v23 = vld [vmem:[#allocation14 + $0xf0] sm:$0xff] }
 0x374   : > { %3484 = vst [vmem:[#allocation14 + $0x10] sm:$0xff] %v3444_v0  ;;  %3483 = vst [vmem:[#allocation14 + $0x8] sm:$0xff] %v3443_v20  ;;  %v3449_v51 = vadd.f32 %v3212_v61, %v1240_v42  ;;  %v3448_v22 = vadd.f32 %v2995_v50, %v1239_v18  ;;  %v3214_v29 = vpop.f32.mrb[11].mxu0  ;;  %v1266_v61 = vld [vmem:[#allocation14 + $0x108] sm:$0xff]  ;;  %v1268_v50 = vld [vmem:[#allocation14 + $0x118] sm:$0xff] }
 0x375   : > { %3485 = vst [vmem:[#allocation14 + $0x18] sm:$0xff] %v3445_v41  ;;  %3487 = vst [vmem:[#allocation14 + $0x28] sm:$0xff] %v3447_v25  ;;  %v3450_v30 = vadd.f32 %v3214_v29, %v1241_v39  ;;  %v1265_v39 = vld [vmem:[#allocation14 + $0x100] sm:$0xff]  ;;  %v1264_v41 = vld [vmem:[#allocation14 + $0xf8] sm:$0xff] }
 0x376   : > { %3489 = vst [vmem:[#allocation14 + $0x38] sm:$0xff] %v3449_v51  ;;  %3488 = vst [vmem:[#allocation14 + $0x30] sm:$0xff] %v3448_v22 }
 0x377   : > { %3490 = vst [vmem:[#allocation14 + $0x40] sm:$0xff] %v3450_v30  ;;  %v1270_v30 = vld [vmem:[#allocation14 + $0x128] sm:$0xff] }
 0x378   : > { %v2999_v40 = vpop.f32.mrb[8].mxu1 }
 0x379   : > { %v3452_v11 = vadd.f32 %v2999_v40, %v1243_v32  ;;  %v3218_v43 = vpop.f32.mrb[12].mxu0  ;;  %v3001_v44 = vpop.f32.mrb[9].mxu1  ;;  %v1269_v32 = vld [vmem:[#allocation14 + $0x120] sm:$0xff] }
 0x37a   : > { %v3454_v48 = vadd.f32 %v3218_v43, %v1245_v37  ;;  %v3453_v52 = vadd.f32 %v3001_v44, %v1244_v38  ;;  %v3220_v53 = vpop.f32.mrb[13].mxu0  ;;  %v3003_v55 = vpop.f32.mrb[10].mxu1 }
 0x37b   : > { %3492 = vst [vmem:[#allocation14 + $0x50] sm:$0xff] %v3452_v11  ;;  %v3455_v17 = vadd.f32 %v3220_v53, %v1246_v36  ;;  %v3457_v56 = vadd.f32 %v3003_v55, %v1248_v60  ;;  %v3222_v57 = vpop.f32.mrb[14].mxu0  ;;  %v3005_v63 = vpop.f32.mrb[11].mxu1  ;;  %v1271_v60 = vld [vmem:[#allocation14 + $0x130] sm:$0xff] }
 0x37c   : > { %3494 = vst [vmem:[#allocation14 + $0x60] sm:$0xff] %v3454_v48  ;;  %3493 = vst [vmem:[#allocation14 + $0x58] sm:$0xff] %v3453_v52  ;;  %v3459_v1 = vadd.f32 %v3222_v57, %v1250_v45  ;;  %v3458_v58 = vadd.f32 %v3005_v63, %v1249_v47  ;;  %v3224_v59 = vpop.f32.mrb[15].mxu0 }
 0x37d   : > { %3495 = vst [vmem:[#allocation14 + $0x68] sm:$0xff] %v3455_v17  ;;  %3497 = vst [vmem:[#allocation14 + $0x78] sm:$0xff] %v3457_v56  ;;  %v3460_v2 = vadd.f32 %v3224_v59, %v1251_v21 }
 0x37e   : > { %3499 = vst [vmem:[#allocation14 + $0x88] sm:$0xff] %v3459_v1  ;;  %3498 = vst [vmem:[#allocation14 + $0x80] sm:$0xff] %v3458_v58 }
 0x37f   : > { %3500 = vst [vmem:[#allocation14 + $0x90] sm:$0xff] %v3460_v2 }
 0x380   : > { %v3009_v27 = vpop.f32.mrb[12].mxu1 }
 0x381   : > { %v3462_v35 = vadd.f32 %v3009_v27, %v1253_v5  ;;  %v3228_v49 = vpop.f32.mrb[16].mxu0  ;;  %v3011_v3 = vpop.f32.mrb[13].mxu1 }
 0x382   : > { %v3464_v16 = vadd.f32 %v3228_v49, %v1255_v62  ;;  %v3463_v19 = vadd.f32 %v3011_v3, %v1254_v4  ;;  %v3230_v7 = vpop.f32.mrb[17].mxu0  ;;  %v3013_v8 = vpop.f32.mrb[14].mxu1 }
 0x383   : > { %3502 = vst [vmem:[#allocation14 + $0xa0] sm:$0xff] %v3462_v35  ;;  %v3465_v14 = vadd.f32 %v3230_v7, %v1256_v34  ;;  %v3467_v33 = vadd.f32 %v3013_v8, %v1258_v28  ;;  %v3232_v46 = vpop.f32.mrb[18].mxu0  ;;  %v3015_v42 = vpop.f32.mrb[15].mxu1 }
 0x384   : > { %3504 = vst [vmem:[#allocation14 + $0xb0] sm:$0xff] %v3464_v16  ;;  %3503 = vst [vmem:[#allocation14 + $0xa8] sm:$0xff] %v3463_v19  ;;  %v3469_v18 = vadd.f32 %v3232_v46, %v1260_v54  ;;  %v3468_v0 = vadd.f32 %v3015_v42, %v1259_v26  ;;  %v3234_v20 = vpop.f32.mrb[19].mxu0 }
 0x385   : > { %3505 = vst [vmem:[#allocation14 + $0xb8] sm:$0xff] %v3465_v14  ;;  %3507 = vst [vmem:[#allocation14 + $0xc8] sm:$0xff] %v3467_v33  ;;  %v3470_v6 = vadd.f32 %v3234_v20, %v1261_v9 }
 0x386   : > { %3509 = vst [vmem:[#allocation14 + $0xd8] sm:$0xff] %v3469_v18  ;;  %3508 = vst [vmem:[#allocation14 + $0xd0] sm:$0xff] %v3468_v0 }
 0x387   : > { %3510 = vst [vmem:[#allocation14 + $0xe0] sm:$0xff] %v3470_v6 }
 0x388   : > { %v3019_v25 = vpop.f32.mrb[16].mxu1 }
 0x389   : > { %v3472_v51 = vadd.f32 %v3019_v25, %v1263_v23  ;;  %v3238_v22 = vpop.f32.mrb[20].mxu0  ;;  %v3021_v29 = vpop.f32.mrb[17].mxu1 }
 0x38a   : > { %v3474_v37 = vadd.f32 %v3238_v22, %v1265_v39  ;;  %v3473_v38 = vadd.f32 %v3021_v29, %v1264_v41  ;;  %v3240_v40 = vpop.f32.mrb[21].mxu0  ;;  %v3023_v36 = vpop.f32.mrb[18].mxu1 }
 0x38b   : > { %3512 = vst [vmem:[#allocation14 + $0xf0] sm:$0xff] %v3472_v51  ;;  %v3475_v11 = vadd.f32 %v3240_v40, %v1266_v61  ;;  %v3477_v43 = vadd.f32 %v3023_v36, %v1268_v50  ;;  %v3242_v44 = vpop.f32.mrb[22].mxu0  ;;  %v3025_v45 = vpop.f32.mrb[19].mxu1 }
 0x38c   : > { %3514 = vst [vmem:[#allocation14 + $0x100] sm:$0xff] %v3474_v37  ;;  %3513 = vst [vmem:[#allocation14 + $0xf8] sm:$0xff] %v3473_v38  ;;  %v3479_v47 = vadd.f32 %v3242_v44, %v1270_v30  ;;  %v3478_v48 = vadd.f32 %v3025_v45, %v1269_v32  ;;  %v3244_v52 = vpop.f32.mrb[23].mxu0 }
 0x38d   : > { %3515 = vst [vmem:[#allocation14 + $0x108] sm:$0xff] %v3475_v11  ;;  %3517 = vst [vmem:[#allocation14 + $0x118] sm:$0xff] %v3477_v43  ;;  %v3480_v53 = vadd.f32 %v3244_v52, %v1271_v60 }
 0x38e   : > { %3519 = vst [vmem:[#allocation14 + $0x128] sm:$0xff] %v3479_v47  ;;  %3518 = vst [vmem:[#allocation14 + $0x120] sm:$0xff] %v3478_v48  ;;  %v1237_v48 = vld [vmem:[#allocation14 + $0x20] sm:$0xff] }
 0x38f   : > { %3520 = vst [vmem:[#allocation14 + $0x130] sm:$0xff] %v3480_v53 }
 0x391   : > { %v4596_v55 = vpop.f32.mrb[20].mxu1 }
 0x392   : > { %v4676_v21 = vpop.f32.mrb[24].mxu0  ;;  %v4597_v17 = vpop.f32.mrb[21].mxu1 }
 0x393   : > { %v4598_v56 = vadd.f32 %v4597_v17, %v4596_v55  ;;  %v4677_v57 = vpop.f32.mrb[25].mxu0  ;;  %v4599_v63 = vpop.f32.mrb[22].mxu1  ;;  %v1242_v55 = vld [vmem:[#allocation14 + $0x48] sm:$0xff] }
 0x394   : > { %v4678_v1 = vadd.f32 %v4677_v57, %v4676_v21  ;;  %v4679_v58 = vpop.f32.mrb[26].mxu0  ;;  %v4600_v59 = vpop.f32.mrb[23].mxu1 }
 0x395   : > { %v4601_v2 = vadd.f32 %v4600_v59, %v4599_v63  ;;  %v4680_v5 = vpop.f32.mrb[27].mxu0 }
 0x396   : > { %v4681_v62 = vadd.f32 %v4680_v5, %v4679_v58 }
 0x399   : > { %v4602_v4 = vpop.f32.mrb[24].mxu1 }
 0x39a   : > { %v4682_v27 = vpop.f32.mrb[28].mxu0  ;;  %v4603_v34 = vpop.f32.mrb[25].mxu1 }
 0x39b   : > { %v4604_v28 = vadd.f32 %v4603_v34, %v4602_v4  ;;  %v4683_v35 = vpop.f32.mrb[29].mxu0  ;;  %v4605_v49 = vpop.f32.mrb[26].mxu1 }
 0x39c   : > { %v4684_v3 = vadd.f32 %v4683_v35, %v4682_v27  ;;  %v4685_v54 = vpop.f32.mrb[30].mxu0  ;;  %v4606_v26 = vpop.f32.mrb[27].mxu1  ;;  %v1247_v35 = vld [vmem:[#allocation14 + $0x70] sm:$0xff] }
 0x39d   : > { %v4607_v16 = vadd.f32 %v4606_v26, %v4605_v49  ;;  %v4686_v19 = vpop.f32.mrb[31].mxu0 }
 0x39e   : > { %v4687_v7 = vadd.f32 %v4686_v19, %v4685_v54  ;;  %v1252_v54 = vld [vmem:[#allocation14 + $0x98] sm:$0xff] }
 0x3a1   : > { %v4608_v8 = vpop.f32.mrb[28].mxu1 }
 0x3a2   : > { %v4688_v9 = vpop.f32.mrb[32].mxu0  ;;  %v4609_v14 = vpop.f32.mrb[29].mxu1 }
 0x3a3   : > { %v4610_v33 = vadd.f32 %v4609_v14, %v4608_v8  ;;  %v4689_v46 = vpop.f32.mrb[33].mxu0  ;;  %v4611_v42 = vpop.f32.mrb[30].mxu1 }
 0x3a4   : > { %v4690_v18 = vadd.f32 %v4689_v46, %v4688_v9  ;;  %v4691_v0 = vpop.f32.mrb[34].mxu0  ;;  %v4612_v20 = vpop.f32.mrb[31].mxu1 }
 0x3a5   : > { %v4613_v6 = vadd.f32 %v4612_v20, %v4611_v42  ;;  %v4692_v23 = vpop.f32.mrb[35].mxu0 }
 0x3a6   : > { %v4693_v39 = vadd.f32 %v4692_v23, %v4691_v0  ;;  %v1257_v0 = vld [vmem:[#allocation14 + $0xc0] sm:$0xff]  ;;  %v1262_v23 = vld [vmem:[#allocation14 + $0xe8] sm:$0xff] }
 0x3a9   : > { %v4614_v41 = vpop.f32.mrb[32].mxu1 }
 0x3aa   : > { %v4694_v25 = vpop.f32.mrb[36].mxu0  ;;  %v4615_v61 = vpop.f32.mrb[33].mxu1 }
 0x3ab   : > { %v4616_v50 = vadd.f32 %v4615_v61, %v4614_v41  ;;  %v4695_v51 = vpop.f32.mrb[37].mxu0  ;;  %v4617_v22 = vpop.f32.mrb[34].mxu1 }
 0x3ac   : > { %v4696_v29 = vadd.f32 %v4695_v51, %v4694_v25  ;;  %v4697_v30 = vpop.f32.mrb[38].mxu0  ;;  %v4618_v32 = vpop.f32.mrb[35].mxu1 }
 0x3ad   : > { %v4619_v37 = vadd.f32 %v4618_v32, %v4617_v22  ;;  %v4698_v38 = vpop.f32.mrb[39].mxu0 }
 0x3ae   : > { %v4699_v40 = vadd.f32 %v4698_v38, %v4697_v30  ;;  %v1267_v38 = vld [vmem:[#allocation14 + $0x110] sm:$0xff] }
 0x3b2   : > { %v4636_v36 = vpop.f32.mrb[36].mxu1 }
 0x3b3   : > { %v4637_v60 = vpop.f32.mrb[37].mxu1 }
 0x3b4   : > { %v4638_v11 = vadd.f32 %v4637_v60, %v4636_v36  ;;  %v4639_v43 = vpop.f32.mrb[38].mxu1  ;;  %v1272_v60 = vld [vmem:[#allocation14 + $0x138] sm:$0xff] }
 0x3b5   : > { %v4640_v44 = vpop.f32.mrb[39].mxu1 }
 0x3b6   : > { %v3347_v45 = vadd.f32 %v4638_v11, %v4598_v56  ;;  %v4641_v47 = vadd.f32 %v4640_v44, %v4639_v43 }
 0x3b8   : > { %v3412_v52 = vadd.f32 %v4678_v1, %v3347_v45  ;;  %v3350_v53 = vadd.f32 %v4641_v47, %v4601_v2 }
 0x3ba   : > { %v3446_v21 = vadd.f32 %v3412_v52, %v1237_v48  ;;  %v3415_v17 = vadd.f32 %v4681_v62, %v3350_v53  ;;  %v4642_v57 = vpop.f32.mrb[40].mxu1 }
 0x3bb   : > { %v4643_v63 = vpop.f32.mrb[41].mxu1 }
 0x3bc   : > { %3486 = vst [vmem:[#allocation14 + $0x20] sm:$0xff] %v3446_v21  ;;  %v3451_v58 = vadd.f32 %v3415_v17, %v1242_v55  ;;  %v4644_v59 = vadd.f32 %v4643_v63, %v4642_v57  ;;  %v4645_v5 = vpop.f32.mrb[42].mxu1 }
 0x3bd   : > { %v4646_v4 = vpop.f32.mrb[43].mxu1 }
 0x3be   : > { %3491 = vst [vmem:[#allocation14 + $0x48] sm:$0xff] %v3451_v58  ;;  %v3355_v27 = vadd.f32 %v4644_v59, %v4604_v28  ;;  %v4647_v34 = vadd.f32 %v4646_v4, %v4645_v5 }
 0x3c0   : > { %v3420_v49 = vadd.f32 %v4684_v3, %v3355_v27  ;;  %v3358_v56 = vadd.f32 %v4647_v34, %v4607_v16 }
 0x3c2   : > { %v3456_v26 = vadd.f32 %v3420_v49, %v1247_v35  ;;  %v3423_v1 = vadd.f32 %v4687_v7, %v3358_v56  ;;  %v4648_v2 = vpop.f32.mrb[44].mxu1 }
 0x3c3   : > { %v4649_v19 = vpop.f32.mrb[45].mxu1 }
 0x3c4   : > { %3496 = vst [vmem:[#allocation14 + $0x70] sm:$0xff] %v3456_v26  ;;  %v3461_v62 = vadd.f32 %v3423_v1, %v1252_v54  ;;  %v4650_v8 = vadd.f32 %v4649_v19, %v4648_v2  ;;  %v4651_v9 = vpop.f32.mrb[46].mxu1 }
 0x3c5   : > { %v4652_v14 = vpop.f32.mrb[47].mxu1 }
 0x3c6   : > { %3501 = vst [vmem:[#allocation14 + $0x98] sm:$0xff] %v3461_v62  ;;  %v3363_v46 = vadd.f32 %v4650_v8, %v4610_v33  ;;  %v4653_v42 = vadd.f32 %v4652_v14, %v4651_v9 }
 0x3c8   : > { %v3428_v20 = vadd.f32 %v4690_v18, %v3363_v46  ;;  %v3366_v28 = vadd.f32 %v4653_v42, %v4613_v6 }
 0x3ca   : > { %v3466_v41 = vadd.f32 %v3428_v20, %v1257_v0  ;;  %v3431_v3 = vadd.f32 %v4693_v39, %v3366_v28  ;;  %v4654_v16 = vpop.f32.mrb[48].mxu1 }
 0x3cb   : > { %v4655_v25 = vpop.f32.mrb[49].mxu1 }
 0x3cc   : > { %3506 = vst [vmem:[#allocation14 + $0xc0] sm:$0xff] %v3466_v41  ;;  %v3471_v7 = vadd.f32 %v3431_v3, %v1262_v23  ;;  %v4656_v61 = vadd.f32 %v4655_v25, %v4654_v16  ;;  %v4657_v51 = vpop.f32.mrb[50].mxu1 }
 0x3cd   : > { %v4658_v22 = vpop.f32.mrb[51].mxu1 }
 0x3ce   : > { %3511 = vst [vmem:[#allocation14 + $0xe8] sm:$0xff] %v3471_v7  ;;  %v3371_v30 = vadd.f32 %v4656_v61, %v4616_v50  ;;  %v4659_v32 = vadd.f32 %v4658_v22, %v4657_v51 }
 0x3d0   : > { %v3436_v36 = vadd.f32 %v4696_v29, %v3371_v30  ;;  %v3374_v33 = vadd.f32 %v4659_v32, %v4619_v37  ;;  %3525 = sbr.rel (%p4571_p9) target bundleno = 1086 (0x43e), region = 84 }
 0x3d2   : > { %v3476_v11 = vadd.f32 %v3436_v36, %v1267_v38  ;;  %v3439_v18 = vadd.f32 %v4699_v40, %v3374_v33 }
 0x3d4   : > { %3516 = vst [vmem:[#allocation14 + $0x110] sm:$0xff] %v3476_v11  ;;  %v3481_v6 = vadd.f32 %v3439_v18, %v1272_v60 }
 0x3d6   : > { %3521 = vst [vmem:[#allocation14 + $0x138] sm:$0xff] %v3481_v6 }
 0x3d7   : > { %v3533_v39 = vadd.s32 48, %v5996_v12  ;;  %v6582_v43 = vld [vmem:[#allocation14] sm:$0xff]  ;;  %v6584_v44 = vld [vmem:[#allocation14 + $0x28] sm:$0xff]  ;;  %v6586_v50 = vld [vmem:[#allocation14 + $0x50] sm:$0xff]  ;;  %v5632_v57 = vmov 0.0  }
 0x3d8   : > { %v6588_v45 = vld [vmem:[#allocation14 + $0x78] sm:$0xff]  ;;  %v6590_v29 = vld [vmem:[#allocation14 + $0xa0] sm:$0xff]  ;;  %v6592_v37 = vld [vmem:[#allocation14 + $0xc8] sm:$0xff]  ;;  %v3639_v40 = vadd.f32 %v6584_v44, %v6582_v43  ;;  %v3704_v47 = vmul.f32 %v6582_v43, %v6582_v43  ;;  %v3709_v12 = vmul.f32 %v6584_v44, %v6584_v44  ;;  %v3714_v48 = vmul.f32 %v6586_v50, %v6586_v50 }
 0x3d9   : > { %7190 = vst [vmem:[#allocation23_spill] sm:$0xff] %v6592_v37  ;;  %vm3541_vm1 = vcmp.lt.s32.totalorder %v3533_v39, 49  ;;  %v3589_v52 = vld [vmem:[#allocation14 + $0xf0] sm:$0xff]  ;;  %v3594_v53 = vld [vmem:[#allocation14 + $0x118] sm:$0xff]  ;;  %v3719_v55 = vmul.f32 %v6588_v45, %v6588_v45  ;;  %v3724_v21 = vmul.f32 %v6590_v29, %v6590_v29  ;;  %v6615_v27 = vld [vmem:[#allocation14 + $0x8] sm:$0xff]  ;;  %v3729_v49 = vmul.f32 %v6592_v37, %v6592_v37 }
 0x3da   : > { %v6606_v17 = vld [vmem:[#allocation11] sm:$0x1f]  ;;  %v6608_v63 = vsel %vm3541_vm1, 1.0, %v5632_v57  ;;  %v6610_v58 = vmul.f32 0.0, %v3594_v53  ;;  %v3640_v59 = vadd.f32 %v3639_v40, %v6586_v50  ;;  %v3744_v5 = vadd.f32 %v3709_v12, %v3704_v47  ;;  %v6613_v4 = vld [vmem:[#allocation13] sm:$0x1f] }
 0x3db   : > { %v6617_v34 = vld [vmem:[#allocation14 + $0x30] sm:$0xff]  ;;  %v6620_v35 = vmul.f32 %v6608_v63, %v3589_v52  ;;  %v6626_v56 = vrot.slane %v6606_v17, %v6127_v10  ;;  %v6628_v54 = vld [vmem:[#allocation14 + $0x58] sm:$0xff]  ;;  %v6630_v26 = vld [vmem:[#allocation14 + $0x80] sm:$0xff]  ;;  %v6639_v8 = vrot.slane %v6613_v4, %v6127_v10  ;;  %v3705_v23 = vmul.f32 %v6615_v27, %v6615_v27 }
 0x3dc   : > { %7191 = vst [vmem:[#allocation24_spill] sm:$0xff] %v6610_v58  ;;  %v3652_v1 = vadd.f32 %v6617_v34, %v6615_v27  ;;  %v3641_v2 = vadd.f32 %v3640_v59, %v6588_v45  ;;  %v3739_v19 = vmul.f32 %v6610_v58, %v6610_v58  ;;  %v3745_v62 = vadd.f32 %v3744_v5, %v3714_v48  ;;  %v6641_v9 = vld [vmem:[#allocation14 + $0xa8] sm:$0xff]  ;;  %v3590_v14 = vld [vmem:[#allocation14 + $0xf8] sm:$0xff]  ;;  %v3595_v46 = vld [vmem:[#allocation14 + $0x120] sm:$0xff] }
 0x3dd   : > { %7192 = vst [vmem:[#allocation25_spill] sm:$0xff] %v6620_v35  ;;  %v6643_v42 = vld [vmem:[#allocation14 + $0xd0] sm:$0xff]  ;;  %v6646_v0 = vmul.f32 %v6608_v63, %v3590_v14  ;;  %v6648_v20 = vmul.f32 0.0, %v3595_v46  ;;  %v3734_v10 = vmul.f32 %v6620_v35, %v6620_v35  ;;  %v3710_v16 = vmul.f32 %v6617_v34, %v6617_v34  ;;  %v3591_v22 = vld [vmem:[#allocation14 + $0x100] sm:$0xff]  ;;  %v6672_v60 = vld [vmem:[#allocation14 + $0x38] sm:$0xff] }
 0x3de   : > { %7193 = vst [vmem:[#allocation26_spill] sm:$0xff] %v6643_v42  ;;  %v3653_v28 = vadd.f32 %v3652_v1, %v6628_v54  ;;  %v3642_v41 = vadd.f32 %v3641_v2, %v6590_v29  ;;  %v3746_v3 = vadd.f32 %v3745_v62, %v3719_v55  ;;  %v3715_v7 = vmul.f32 %v6628_v54, %v6628_v54  ;;  %v6670_v33 = vld [vmem:[#allocation14 + $0x10] sm:$0xff]  ;;  %v3596_v11 = vld [vmem:[#allocation14 + $0x128] sm:$0xff]  ;;  %v6686_v52 = vld [vmem:[#allocation14 + $0x60] sm:$0xff] }
 0x3df   : > { %7194 = vst [vmem:[#allocation27_spill] sm:$0xff] %v6646_v0  ;;  %7195 = vst [vmem:[#allocation28_spill] sm:$0xff] %v6648_v20  ;;  %v3720_v61 = vmul.f32 %v6630_v26, %v6630_v26  ;;  %v3725_v51 = vmul.f32 %v6641_v9, %v6641_v9  ;;  %v3730_v38 = vmul.f32 %v6643_v42, %v6643_v42  ;;  %v6692_v57 = vld [vmem:[#allocation14 + $0x88] sm:$0xff]  ;;  %v6694_v59 = vld [vmem:[#allocation14 + $0xb0] sm:$0xff]  ;;  %v6696_v5 = vmul.f32 0.0, %v3596_v11 }
 0x3e0   : > { %v3654_v25 = vadd.f32 %v3653_v28, %v6630_v26  ;;  %v3643_v30 = vadd.f32 %v3642_v41, %v6592_v37  ;;  %v3747_v32 = vadd.f32 %v3746_v3, %v3724_v21  ;;  %v3735_v36 = vmul.f32 %v6646_v0, %v6646_v0  ;;  %v6701_v2 = vld [vmem:[#allocation14 + $0xd8] sm:$0xff] }
 0x3e1   : > { %v3740_v6 = vmul.f32 %v6648_v20, %v6648_v20  ;;  %v3757_v39 = vadd.f32 %v3710_v16, %v3705_v23  ;;  %v6679_v40 = vrot.slane %v6606_v17, %v6133_v13  ;;  %v6684_v48 = vrot.slane %v6613_v4, %v6133_v13  ;;  %7197 = vst [vmem:[#allocation30_spill] sm:$0xff] %v6696_v5 }
 0x3e2   : > { %v3655_v18 = vadd.f32 %v3654_v25, %v6641_v9  ;;  %v3644_v47 = vadd.f32 %v3643_v30, %v6620_v35  ;;  %v3748_v12 = vadd.f32 %v3747_v32, %v3729_v49  ;;  %v6689_v53 = vmul.f32 %v6608_v63, %v3591_v22  ;;  %7198 = vst [vmem:[#allocation31_spill] sm:$0xff] %v6701_v2  ;;  %v6788_v35 = vld [vmem:[#allocation14 + $0x48] sm:$0xff] }
 0x3e3   : > { %v3758_v21 = vadd.f32 %v3757_v39, %v3715_v7  ;;  %v3665_v49 = vadd.f32 %v6672_v60, %v6670_v33  ;;  %v3706_v62 = vmul.f32 %v6670_v33, %v6670_v33  ;;  %v3711_v14 = vmul.f32 %v6672_v60, %v6672_v60 }
 0x3e4   : > { %7196 = vst [vmem:[#allocation29_spill] sm:$0xff] %v6689_v53  ;;  %v3656_v55 = vadd.f32 %v3655_v18, %v6643_v42  ;;  %v3645_v13 = vadd.f32 %v3644_v47, %v6610_v58  ;;  %v3749_v1 = vadd.f32 %v3748_v12, %v3734_v10  ;;  %v3716_v41 = vmul.f32 %v6686_v52, %v6686_v52 }
 0x3e5   : > { %v3759_v28 = vadd.f32 %v3758_v21, %v3720_v61  ;;  %v3666_v23 = vadd.f32 %v3665_v49, %v6686_v52  ;;  %v3721_v10 = vmul.f32 %v6692_v57, %v6692_v57  ;;  %v3726_v25 = vmul.f32 %v6694_v59, %v6694_v59  ;;  %v3592_v21 = vld [vmem:[#allocation14 + $0x108] sm:$0xff] }
 0x3e6   : > { %v3657_v46 = vadd.f32 %v3656_v55, %v6646_v0  ;;  %v3646_v3 = vrot.slane %v3645_v13, 4  ;;  %v3750_v16 = vadd.f32 %v3749_v1, %v3739_v19  ;;  %v3731_v61 = vmul.f32 %v6701_v2, %v6701_v2 }
 0x3e7   : > { %v3760_v22 = vadd.f32 %v3759_v28, %v3725_v51  ;;  %v3667_v30 = vadd.f32 %v3666_v23, %v6692_v57  ;;  %v3736_v18 = vmul.f32 %v6689_v53, %v6689_v53  ;;  %v3770_v19 = vadd.f32 %v3711_v14, %v3706_v62  ;;  %v6730_v28 = vld [vmem:[#allocation14 + $0x40] sm:$0xff] }
 0x3e8   : > { %v3658_v7 = vadd.f32 %v3657_v46, %v6648_v20  ;;  %v3647_v32 = vadd.f32 %v3646_v3, %v3645_v13  ;;  %v3751_v11 = vrot.slane %v3750_v16, 4  ;;  %v3741_v55 = vmul.f32 %v6696_v5, %v6696_v5  ;;  %v6728_v13 = vld [vmem:[#allocation14 + $0x18] sm:$0xff]  ;;  %v3597_v3 = vld [vmem:[#allocation14 + $0x130] sm:$0xff] }
 0x3e9   : > { %v3761_v47 = vadd.f32 %v3760_v22, %v3730_v38  ;;  %v3668_v12 = vadd.f32 %v3667_v30, %v6694_v59  ;;  %v3771_v1 = vadd.f32 %v3770_v19, %v3716_v41  ;;  %v6726_v46 = vrot.slane %v6606_v17, %v6207_v31  ;;  %v6737_v30 = vld [vmem:[#allocation14 + $0x68] sm:$0xff] }
 0x3ea   : > { %v3659_v39 = vrot.slane %v3658_v7, 4  ;;  %v3648_v51 = vrot.slane %v3647_v32, 2  ;;  %v3752_v49 = vadd.f32 %v3751_v11, %v3750_v16  ;;  %v6735_v23 = vrot.slane %v6613_v4, %v6207_v31 }
 0x3eb   : > { %v3762_v14 = vadd.f32 %v3761_v47, %v3735_v36  ;;  %v3669_v38 = vadd.f32 %v3668_v12, %v6701_v2  ;;  %v3772_v41 = vadd.f32 %v3771_v1, %v3721_v10  ;;  %v6740_v11 = vmul.f32 %v6608_v63, %v3592_v21  ;;  %v6745_v12 = vld [vmem:[#allocation14 + $0x90] sm:$0xff] }
 0x3ec   : > { %v3660_v62 = vadd.f32 %v3659_v39, %v3658_v7  ;;  %v3649_v22 = vadd.f32 %v3648_v51, %v3647_v32  ;;  %v3753_v16 = vrot.slane %v3752_v49, 2  ;;  %v3678_v36 = vadd.f32 %v6730_v28, %v6728_v13 }
 0x3ed   : > { %7199 = vst [vmem:[#allocation32_spill] sm:$0xff] %v6740_v11  ;;  %v3763_v20 = vadd.f32 %v3762_v14, %v3740_v6  ;;  %v3670_v7 = vadd.f32 %v3669_v38, %v6689_v53  ;;  %v3773_v31 = vadd.f32 %v3772_v41, %v3726_v25  ;;  %v6747_v32 = vmul.f32 0.0, %v3597_v3  ;;  %v6751_v38 = vld [vmem:[#allocation14 + $0xb8] sm:$0xff] }
 0x3ee   : > { %v3661_v19 = vrot.slane %v3660_v62, 2  ;;  %v3650_v39 = vrot.slane %v3649_v22, 1  ;;  %v3754_v47 = vadd.f32 %v3753_v16, %v3752_v49  ;;  %v3679_v21 = vadd.f32 %v3678_v36, %v6737_v30  ;;  %7201 = vst [vmem:[#allocation34_spill] sm:$0xff] %v6751_v38 }
 0x3ef   : > { %7200 = vst [vmem:[#allocation33_spill] sm:$0xff] %v6747_v32  ;;  %v3764_v51 = vrot.slane %v3763_v20, 4  ;;  %v3671_v1 = vadd.f32 %v3670_v7, %v6696_v5  ;;  %v3774_v14 = vadd.f32 %v3773_v31, %v3731_v61  ;;  %v3707_v53 = vmul.f32 %v6728_v13, %v6728_v13  ;;  %v6758_v7 = vld [vmem:[#allocation14 + $0xe0] sm:$0xff] }
 0x3f0   : > { %v3662_v10 = vadd.f32 %v3661_v19, %v3660_v62  ;;  %v3651_v58 = vadd.f32 %v3650_v39, %v3649_v22  ;;  %v3755_v6 = vrot.slane %v3754_v47, 1  ;;  %v3680_v3 = vadd.f32 %v3679_v21, %v6745_v12  ;;  %7202 = vst [vmem:[#allocation35_spill] sm:$0xff] %v6758_v7 }
 0x3f1   : > { %v3765_v25 = vadd.f32 %v3764_v51, %v3763_v20  ;;  %v3672_v16 = vrot.slane %v3671_v1, 4  ;;  %v3775_v19 = vadd.f32 %v3774_v14, %v3736_v18  ;;  %v3712_v22 = vmul.f32 %v6730_v28, %v6730_v28 }
 0x3f2   : > { %v3663_v49 = vrot.slane %v3662_v10, 1  ;;  %v3756_v41 = vadd.f32 %v3755_v6, %v3754_v47  ;;  %v6756_v62 = vmul.f32 0.020408163, %v3651_v58  ;;  %v3681_v31 = vadd.f32 %v3680_v3, %v6751_v38 }
 0x3f3   : > { %v3766_v36 = vrot.slane %v3765_v25, 2  ;;  %v3673_v39 = vadd.f32 %v3672_v16, %v3671_v1  ;;  %v3776_v51 = vadd.f32 %v3775_v19, %v3741_v55  ;;  %v3717_v58 = vmul.f32 %v6737_v30, %v6737_v30  ;;  %v3598_v19 = vld [vmem:[#allocation14 + $0x138] sm:$0xff] }
 0x3f4   : > { %v3664_v61 = vadd.f32 %v3663_v49, %v3662_v10  ;;  %v3814_v5 = vmul.f32 0.020408163, %v3756_v41  ;;  %v3819_v20 = vmul.f32 %v6756_v62, %v6756_v62  ;;  %v3682_v6 = vadd.f32 %v3681_v31, %v6758_v7 }
 0x3f5   : > { %v3767_v47 = vadd.f32 %v3766_v36, %v3765_v25  ;;  %v3674_v21 = vrot.slane %v3673_v39, 2  ;;  %v3777_v1 = vrot.slane %v3776_v51, 4  ;;  %v3722_v49 = vmul.f32 %v6745_v12, %v6745_v12 }
 0x3f6   : > { %v6767_v18 = vmul.f32 0.020408163, %v3664_v61  ;;  %v3824_v14 = vsub.f32 %v3814_v5, %v3819_v20  ;;  %v3727_v25 = vmul.f32 %v6751_v38, %v6751_v38  ;;  %v3683_v61 = vadd.f32 %v3682_v6, %v6740_v11 }
 0x3f7   : > { %v3768_v16 = vrot.slane %v3767_v47, 1  ;;  %v3675_v3 = vadd.f32 %v3674_v21, %v3673_v39  ;;  %v3778_v5 = vadd.f32 %v3777_v1, %v3776_v51  ;;  %v3732_v20 = vmul.f32 %v6758_v7, %v6758_v7  ;;  %v3593_v51 = vld [vmem:[#allocation14 + $0x110] sm:$0xff] }
 0x3f8   : > { %v3820_v55 = vmul.f32 %v6767_v18, %v6767_v18  ;;  %v3869_v41 = vadd.f32 0.001, %v3824_v14  ;;  %v3737_v10 = vmul.f32 %v6740_v11, %v6740_v11  ;;  %v3684_v21 = vadd.f32 %v3683_v61, %v6747_v32  ;;  %v6786_v14 = vld [vmem:[#allocation14 + $0x20] sm:$0xff] }
 0x3f9   : > { %v3769_v36 = vadd.f32 %v3768_v16, %v3767_v47  ;;  %v3676_v31 = vrot.slane %v3675_v3, 1  ;;  %v3779_v39 = vrot.slane %v3778_v5, 2  ;;  %v3783_v0 = vadd.f32 %v3712_v22, %v3707_v53  ;;  %v6800_v22 = vld [vmem:[#allocation14 + $0x70] sm:$0xff] }
 0x3fa   : > { %5326 = vrsqrt.f32 %v3869_v41  ;;  %v3742_v47 = vmul.f32 %v6747_v32, %v6747_v32  ;;  %v6794_v16 = vrot.slane %v6606_v17, %v6140_v24  ;;  %v3685_v11 = vrot.slane %v3684_v21, 4 }
 0x3fb   : > { %v3815_v1 = vmul.f32 0.020408163, %v3769_v36  ;;  %v3677_v6 = vadd.f32 %v3676_v31, %v3675_v3  ;;  %v3780_v41 = vadd.f32 %v3779_v39, %v3778_v5  ;;  %v3784_v7 = vadd.f32 %v3783_v0, %v3717_v58  ;;  %v6809_v39 = vld [vmem:[#allocation14 + $0x98] sm:$0xff] }
 0x3fc   : > { %7203 = vst [vmem:[#allocation36_spill] sm:$0xff] %v6794_v16  ;;  %v6798_v53 = vrot.slane %v6613_v4, %v6140_v24  ;;  %v6805_v3 = vmul.f32 %v6608_v63, %v3593_v51  ;;  %v3691_v31 = vadd.f32 %v6788_v35, %v6786_v14  ;;  %v3686_v16 = vadd.f32 %v3685_v11, %v3684_v21  ;;  %v6820_v11 = vld [vmem:[#allocation14 + $0xe8] sm:$0xff] }
 0x3fd   : > { %v3825_v61 = vsub.f32 %v3815_v1, %v3820_v55  ;;  %v6802_v36 = vmul.f32 0.020408163, %v3677_v6  ;;  %v3781_v32 = vrot.slane %v3780_v41, 1  ;;  %v3785_v5 = vadd.f32 %v3784_v7, %v3722_v49 }
 0x3fe   : > { %7204 = vst [vmem:[#allocation37_spill] sm:$0xff] %v6798_v53  ;;  %v6811_v0 = vmul.f32 0.0, %v3598_v19  ;;  %v3692_v55 = vadd.f32 %v3691_v31, %v6800_v22  ;;  %v3708_v63 = vmul.f32 %v6786_v14, %v6786_v14  ;;  %v3687_v1 = vrot.slane %v3686_v16, 2  ;;  %v6818_v53 = vld [vmem:[#allocation14 + $0xc0] sm:$0xff] }
 0x3ff   : > { %v3870_v24 = vadd.f32 0.001, %v3825_v61  ;;  %v3821_v58 = vmul.f32 %v6802_v36, %v6802_v36  ;;  %v3782_v51 = vadd.f32 %v3781_v32, %v3780_v41  ;;  %v3786_v6 = vadd.f32 %v3785_v5, %v3727_v25  ;;  %7205 = vst [vmem:[#allocation38_spill] sm:$0xff] %v6818_v53 }
 0x400   : > { %v3713_v7 = vmul.f32 %v6788_v35, %v6788_v35  ;;  %v3693_v19 = vadd.f32 %v3692_v55, %v6809_v39  ;;  %v3718_v21 = vmul.f32 %v6800_v22, %v6800_v22  ;;  %v3688_v32 = vadd.f32 %v3687_v1, %v3686_v16 }
 0x401   : > { %5328 = vrsqrt.f32 %v3870_v24  ;;  %v3816_v61 = vmul.f32 0.020408163, %v3782_v51  ;;  %v3787_v41 = vadd.f32 %v3786_v6, %v3732_v20  ;;  %v3723_v25 = vmul.f32 %v6809_v39, %v6809_v39 }
 0x402   : > { %v3694_v31 = vadd.f32 %v3693_v19, %v6818_v53  ;;  %v3728_v5 = vmul.f32 %v6818_v53, %v6818_v53  ;;  %v3733_v24 = vmul.f32 %v6820_v11, %v6820_v11  ;;  %v3738_v55 = vmul.f32 %v6805_v3, %v6805_v3 }
 0x403   : > { %v3826_v2 = vsub.f32 %v3816_v61, %v3821_v58  ;;  %v3689_v51 = vrot.slane %v3688_v32, 1  ;;  %v3788_v16 = vadd.f32 %v3787_v41, %v3737_v10  ;;  %v3796_v20 = vadd.f32 %v3713_v7, %v3708_v63 }
 0x404   : > { %v6838_v49 = vpop.eup %5326  ;;  %v7206_v1 = vsub.f32 %v6582_v43, %v6756_v62  ;;  %v3695_v19 = vadd.f32 %v3694_v31, %v6820_v11  ;;  %v3743_v53 = vmul.f32 %v6811_v0, %v6811_v0  ;;  %v6849_v42 = vrot.slane %v6606_v17, %v6366_v15 }
 0x405   : > { %v3871_v37 = vadd.f32 0.001, %v3826_v2  ;;  %v3690_v38 = vadd.f32 %v3689_v51, %v3688_v32  ;;  %v3789_v58 = vadd.f32 %v3788_v16, %v3742_v47  ;;  %v3797_v61 = vadd.f32 %v3796_v20, %v3718_v21 }
 0x406   : > { %v3879_v6 = vmul.f32 %v6838_v49, %v7206_v1  ;;  %v3696_v63 = vadd.f32 %v3695_v19, %v6805_v3  ;;  %v3834_v43 = vsub.f32 %v6584_v44, %v6756_v62  ;;  %v3835_v7 = vsub.f32 %v6617_v34, %v6767_v18 }
 0x407   : > { %5330 = vrsqrt.f32 %v3871_v37  ;;  %v3790_v41 = vrot.slane %v3789_v58, 4  ;;  %v6857_v31 = vmul.f32 0.020408163, %v3690_v38  ;;  %v3798_v17 = vadd.f32 %v3797_v61, %v3723_v25 }
 0x408   : > { %v3946_v10 = vmul.f32 %v6626_v56, %v3879_v6  ;;  %v3697_v47 = vadd.f32 %v3696_v63, %v6811_v0  ;;  %v6863_v21 = vrot.slane %v6613_v4, %v6366_v15  ;;  %v3884_v32 = vmul.f32 %v6838_v49, %v3834_v43 }
 0x409   : > { %v3791_v51 = vadd.f32 %v3790_v41, %v3789_v58  ;;  %v6868_v44 = vmul.f32 %v6857_v31, %v6857_v31  ;;  %v3799_v37 = vadd.f32 %v3798_v17, %v3728_v5  ;;  %v3836_v34 = vsub.f32 %v6672_v60, %v6802_v36 }
 0x40a   : > { %v4013_v2 = vadd.f32 %v6639_v8, %v3946_v10  ;;  %v3832_v25 = vsub.f32 %v6728_v13, %v6857_v31  ;;  %v3698_v16 = vrot.slane %v3697_v47, 4  ;;  %v3951_v15 = vmul.f32 %v6626_v56, %v3884_v32 }
 0x40b   : > { %v6872_v38 = vpop.eup %5328  ;;  %v3839_v4 = vsub.f32 %v6586_v50, %v6756_v62  ;;  %v7207_v20 = vsub.f32 %v6615_v27, %v6767_v18  ;;  %v3792_v1 = vrot.slane %v3791_v51, 2  ;;  %v3800_v6 = vadd.f32 %v3799_v37, %v3733_v24 }
 0x40c   : > { %4053 = vst [vmem:[#allocation14] sm:$0xff] %v4013_v2  ;;  %v3885_v60 = vmul.f32 %v6872_v38, %v3835_v7  ;;  %v3699_v19 = vadd.f32 %v3698_v16, %v3697_v47  ;;  %v4018_v58 = vadd.f32 %v6639_v8, %v3951_v15  ;;  %v3840_v10 = vsub.f32 %v6628_v54, %v6767_v18 }
 0x40d   : > { %v3880_v5 = vmul.f32 %v6872_v38, %v7207_v20  ;;  %v3889_v61 = vmul.f32 %v6838_v49, %v3839_v4  ;;  %v3793_v50 = vadd.f32 %v3792_v1, %v3791_v51  ;;  %v3801_v43 = vadd.f32 %v3800_v6, %v3738_v55 }
 0x40e   : > { %v3952_v27 = vmul.f32 %v6679_v40, %v3885_v60  ;;  %v3700_v41 = vrot.slane %v3699_v19, 2  ;;  %4058 = vst [vmem:[#allocation14 + $0x28] sm:$0xff] %v4018_v58  ;;  %v3890_v7 = vmul.f32 %v6872_v38, %v3840_v10  ;;  %v3841_v17 = vsub.f32 %v6686_v52, %v6802_v36 }
 0x40f   : > { %v3947_v63 = vmul.f32 %v6679_v40, %v3880_v5  ;;  %v3956_v24 = vmul.f32 %v6626_v56, %v3889_v61  ;;  %v3794_v47 = vrot.slane %v3793_v50, 1  ;;  %v3802_v32 = vadd.f32 %v3801_v43, %v3743_v53 }
 0x410   : > { %v4019_v54 = vadd.f32 %v6684_v48, %v3952_v27  ;;  %v3701_v37 = vadd.f32 %v3700_v41, %v3699_v19  ;;  %v3837_v55 = vsub.f32 %v6730_v28, %v6857_v31  ;;  %v3957_v16 = vmul.f32 %v6679_v40, %v3890_v7 }
 0x411   : > { %v4014_v2 = vadd.f32 %v6684_v48, %v3947_v63  ;;  %v4023_v51 = vadd.f32 %v6639_v8, %v3956_v24  ;;  %v6900_v15 = vpop.eup %5330  ;;  %v3795_v4 = vadd.f32 %v3794_v47, %v3793_v50  ;;  %v3803_v20 = vrot.slane %v3802_v32, 4 }
 0x412   : > { %4059 = vst [vmem:[#allocation14 + $0x30] sm:$0xff] %v4019_v54  ;;  %v3844_v52 = vsub.f32 %v6588_v45, %v6756_v62  ;;  %v3845_v53 = vsub.f32 %v6630_v26, %v6767_v18  ;;  %v7208_v5 = vsub.f32 %v6670_v33, %v6802_v36  ;;  %v3702_v6 = vrot.slane %v3701_v37, 1 }
 0x413   : > { %4054 = vst [vmem:[#allocation14 + $0x8] sm:$0xff] %v4014_v2  ;;  %v3886_v60 = vmul.f32 %v6900_v15, %v3836_v34  ;;  %4063 = vst [vmem:[#allocation14 + $0x50] sm:$0xff] %v4023_v51  ;;  %v4024_v19 = vadd.f32 %v6684_v48, %v3957_v16  ;;  %v3817_v58 = vmul.f32 0.020408163, %v3795_v4  ;;  %v3804_v61 = vadd.f32 %v3803_v20, %v3802_v32 }
 0x414   : > { %v3881_v1 = vmul.f32 %v6900_v15, %v7208_v5  ;;  %v3891_v10 = vmul.f32 %v6900_v15, %v3841_v17  ;;  %v3894_v45 = vmul.f32 %v6838_v49, %v3844_v52  ;;  %v3703_v26 = vadd.f32 %v3702_v6, %v3701_v37 }
 0x415   : > { %v3953_v50 = vmul.f32 %v6726_v46, %v3886_v60  ;;  %4064 = vst [vmem:[#allocation14 + $0x58] sm:$0xff] %v4024_v19  ;;  %v3895_v33 = vmul.f32 %v6872_v38, %v3845_v53  ;;  %v3827_v43 = vsub.f32 %v3817_v58, %v6868_v44  ;;  %v3805_v34 = vrot.slane %v3804_v61, 2 }
 0x416   : > { %v3948_v63 = vmul.f32 %v6726_v46, %v3881_v1  ;;  %v3958_v27 = vmul.f32 %v6726_v46, %v3891_v10  ;;  %v3961_v41 = vmul.f32 %v6626_v56, %v3894_v45  ;;  %v6921_v7 = vmul.f32 0.020408163, %v3703_v26  ;;  %v7209_v10 = vld [vmem:[#allocation34_spill] sm:$0xff]  ;;  %v7210_v45 = vld [vmem:[#allocation23_spill] sm:$0xff] }
 0x417   : > { %v4020_v17 = vadd.f32 %v6735_v23, %v3953_v50  ;;  %v3962_v2 = vmul.f32 %v6679_v40, %v3895_v33  ;;  %v3872_v47 = vadd.f32 0.001, %v3827_v43  ;;  %v3806_v32 = vadd.f32 %v3805_v34, %v3804_v61  ;;  %v7211_v33 = vld [vmem:[#allocation26_spill] sm:$0xff] }
 0x418   : > { %v4015_v24 = vadd.f32 %v6735_v23, %v3948_v63  ;;  %v4025_v54 = vadd.f32 %v6735_v23, %v3958_v27  ;;  %v4028_v37 = vadd.f32 %v6639_v8, %v3961_v41  ;;  %v3823_v44 = vmul.f32 %v6921_v7, %v6921_v7  ;;  %v7212_v41 = vld [vmem:[#allocation31_spill] sm:$0xff] }
 0x419   : > { %v3833_v51 = vsub.f32 %v6786_v14, %v6921_v7  ;;  %4060 = vst [vmem:[#allocation14 + $0x38] sm:$0xff] %v4020_v17  ;;  %v3838_v16 = vsub.f32 %v6788_v35, %v6921_v7  ;;  %v3842_v4 = vsub.f32 %v6737_v30, %v6857_v31  ;;  %5332 = vrsqrt.f32 %v3872_v47 }
 0x41a   : > { %4055 = vst [vmem:[#allocation14 + $0x10] sm:$0xff] %v4015_v24  ;;  %v3807_v20 = vrot.slane %v3806_v32, 1  ;;  %4065 = vst [vmem:[#allocation14 + $0x60] sm:$0xff] %v4025_v54  ;;  %v4029_v52 = vadd.f32 %v6684_v48, %v3962_v2  ;;  %v3846_v53 = vsub.f32 %v6692_v57, %v6802_v36  ;;  %v3843_v5 = vsub.f32 %v6800_v22, %v6921_v7 }
 0x41b   : > { %4068 = vst [vmem:[#allocation14 + $0x78] sm:$0xff] %v4028_v37  ;;  %v3847_v1 = vsub.f32 %v6745_v12, %v6857_v31  ;;  %v3849_v6 = vsub.f32 %v6590_v29, %v6756_v62  ;;  %v3850_v30 = vsub.f32 %v6641_v9, %v6767_v18  ;;  %v3848_v58 = vsub.f32 %v6809_v39, %v6921_v7 }
 0x41c   : > { %v3808_v60 = vadd.f32 %v3807_v20, %v3806_v32  ;;  %4069 = vst [vmem:[#allocation14 + $0x80] sm:$0xff] %v4029_v52  ;;  %v3896_v19 = vmul.f32 %v6900_v15, %v3846_v53  ;;  %v3851_v57 = vsub.f32 %v6694_v59, %v6802_v36  ;;  %v3852_v29 = vsub.f32 %v7209_v10, %v6857_v31  ;;  %v7215_v10 = vld [vmem:[#allocation25_spill] sm:$0xff] }
 0x41d   : > { %v3899_v61 = vmul.f32 %v6838_v49, %v3849_v6  ;;  %v3900_v12 = vmul.f32 %v6872_v38, %v3850_v30  ;;  %v3854_v9 = vsub.f32 %v7210_v45, %v6756_v62  ;;  %v3855_v43 = vsub.f32 %v7211_v33, %v6767_v18  ;;  %v7213_v30 = vld [vmem:[#allocation35_spill] sm:$0xff]  ;;  %v7217_v33 = vld [vmem:[#allocation29_spill] sm:$0xff] }
 0x41e   : > { %v3818_v63 = vmul.f32 0.020408163, %v3808_v60  ;;  %v3963_v26 = vmul.f32 %v6726_v46, %v3896_v19  ;;  %v3901_v50 = vmul.f32 %v6900_v15, %v3851_v57  ;;  %v3856_v24 = vsub.f32 %v7212_v41, %v6802_v36  ;;  %v7214_v19 = vld [vmem:[#allocation38_spill] sm:$0xff] }
 0x41f   : > { %v3966_v59 = vmul.f32 %v6626_v56, %v3899_v61  ;;  %v3967_v34 = vmul.f32 %v6679_v40, %v3900_v12  ;;  %v3904_v27 = vmul.f32 %v6838_v49, %v3854_v9  ;;  %v3905_v32 = vmul.f32 %v6872_v38, %v3855_v43 }
 0x420   : > { %v3828_v17 = vsub.f32 %v3818_v63, %v3823_v44  ;;  %v4030_v2 = vadd.f32 %v6735_v23, %v3963_v26  ;;  %v3968_v47 = vmul.f32 %v6726_v46, %v3901_v50  ;;  %v3906_v52 = vmul.f32 %v6900_v15, %v3856_v24  ;;  %v7216_v26 = vld [vmem:[#allocation27_spill] sm:$0xff] }
 0x421   : > { %v4033_v54 = vadd.f32 %v6639_v8, %v3966_v59  ;;  %v4034_v37 = vadd.f32 %v6684_v48, %v3967_v34  ;;  %v3971_v20 = vmul.f32 %v6626_v56, %v3904_v27  ;;  %v3972_v44 = vmul.f32 %v6679_v40, %v3905_v32  ;;  %v7218_v32 = vld [vmem:[#allocation36_spill] sm:$0xff] }
 0x422   : > { %v3873_v53 = vadd.f32 0.001, %v3828_v17  ;;  %4070 = vst [vmem:[#allocation14 + $0x88] sm:$0xff] %v4030_v2  ;;  %v4035_v6 = vadd.f32 %v6735_v23, %v3968_v47  ;;  %v3857_v60 = vsub.f32 %v7213_v30, %v6857_v31  ;;  %v3853_v57 = vsub.f32 %v7214_v19, %v6921_v7 }
 0x423   : > { %4073 = vst [vmem:[#allocation14 + $0xa0] sm:$0xff] %v4033_v54  ;;  %4074 = vst [vmem:[#allocation14 + $0xa8] sm:$0xff] %v4034_v37  ;;  %v4038_v61 = vadd.f32 %v6639_v8, %v3971_v20  ;;  %v3973_v12 = vmul.f32 %v6726_v46, %v3906_v52  ;;  %v3859_v45 = vsub.f32 %v7215_v10, %v6756_v62  ;;  %v5333_v9 = vpop.eup %5332 }
 0x424   : > { %5334 = vrsqrt.f32 %v3873_v53  ;;  %4075 = vst [vmem:[#allocation14 + $0xb0] sm:$0xff] %v4035_v6  ;;  %v4039_v63 = vadd.f32 %v6684_v48, %v3972_v44  ;;  %v3860_v50 = vsub.f32 %v7216_v26, %v6767_v18  ;;  %v3861_v43 = vsub.f32 %v7217_v33, %v6802_v36  ;;  %v7221_v26 = vld [vmem:[#allocation24_spill] sm:$0xff] }
 0x425   : > { %v3882_v59 = vmul.f32 %v5333_v9, %v3832_v25  ;;  %v3887_v34 = vmul.f32 %v5333_v9, %v3837_v55  ;;  %v3892_v27 = vmul.f32 %v5333_v9, %v3842_v4  ;;  %v3897_v41 = vmul.f32 %v5333_v9, %v3847_v1  ;;  %4078 = vst [vmem:[#allocation14 + $0xc8] sm:$0xff] %v4038_v61 }
 0x426   : > { %v3902_v24 = vmul.f32 %v5333_v9, %v3852_v29  ;;  %4079 = vst [vmem:[#allocation14 + $0xd0] sm:$0xff] %v4039_v63  ;;  %v4040_v17 = vadd.f32 %v6735_v23, %v3973_v12  ;;  %v3907_v2 = vmul.f32 %v5333_v9, %v3857_v60  ;;  %v3909_v47 = vmul.f32 %v6838_v49, %v3859_v45  ;;  %v7219_v29 = vld [vmem:[#allocation37_spill] sm:$0xff]  ;;  %v7220_v45 = vld [vmem:[#allocation32_spill] sm:$0xff] }
 0x427   : > { %v3949_v54 = vmul.f32 %v7218_v32, %v3882_v59  ;;  %v3954_v37 = vmul.f32 %v7218_v32, %v3887_v34  ;;  %v3959_v13 = vmul.f32 %v7218_v32, %v3892_v27  ;;  %v3964_v25 = vmul.f32 %v7218_v32, %v3897_v41  ;;  %v7222_v59 = vld [vmem:[#allocation28_spill] sm:$0xff]  ;;  %v7223_v27 = vld [vmem:[#allocation30_spill] sm:$0xff] }
 0x428   : > { %v3969_v28 = vmul.f32 %v7218_v32, %v3902_v24  ;;  %4080 = vst [vmem:[#allocation14 + $0xd8] sm:$0xff] %v4040_v17  ;;  %v3974_v55 = vmul.f32 %v7218_v32, %v3907_v2  ;;  %v3976_v4 = vmul.f32 %v6626_v56, %v3909_v47  ;;  %v3910_v1 = vmul.f32 %v6872_v38, %v3860_v50 }
 0x429   : > { %v4016_v20 = vadd.f32 %v7219_v29, %v3949_v54  ;;  %v4021_v52 = vadd.f32 %v7219_v29, %v3954_v37  ;;  %v4026_v53 = vadd.f32 %v7219_v29, %v3959_v13  ;;  %v4031_v6 = vadd.f32 %v7219_v29, %v3964_v25 }
 0x42a   : > { %v4036_v44 = vadd.f32 %v7219_v29, %v3969_v28  ;;  %v4041_v30 = vadd.f32 %v7219_v29, %v3974_v55  ;;  %v4043_v60 = vadd.f32 %v6639_v8, %v3976_v4  ;;  %v3977_v61 = vmul.f32 %v6679_v40, %v3910_v1 }
 0x42b   : > { %4056 = vst [vmem:[#allocation14 + $0x18] sm:$0xff] %v4016_v20  ;;  %4061 = vst [vmem:[#allocation14 + $0x40] sm:$0xff] %v4021_v52  ;;  %v3858_v12 = vsub.f32 %v6820_v11, %v6921_v7  ;;  %v3911_v10 = vmul.f32 %v6900_v15, %v3861_v43  ;;  %v3862_v63 = vsub.f32 %v7220_v45, %v6857_v31  ;;  %v7224_v11 = vld [vmem:[#allocation33_spill] sm:$0xff] }
 0x42c   : > { %4066 = vst [vmem:[#allocation14 + $0x68] sm:$0xff] %v4026_v53  ;;  %4071 = vst [vmem:[#allocation14 + $0x90] sm:$0xff] %v4031_v6  ;;  %v3864_v50 = vsub.f32 %v7221_v26, %v6756_v62  ;;  %v4044_v33 = vadd.f32 %v6684_v48, %v3977_v61  ;;  %v3865_v34 = vsub.f32 %v7222_v59, %v6767_v18 }
 0x42d   : > { %4076 = vst [vmem:[#allocation14 + $0xb8] sm:$0xff] %v4036_v44  ;;  %4081 = vst [vmem:[#allocation14 + $0xe0] sm:$0xff] %v4041_v30  ;;  %v3866_v41 = vsub.f32 %v7223_v27, %v6802_v36  ;;  %v3867_v43 = vsub.f32 %v7224_v11, %v6857_v31  ;;  %v3978_v24 = vmul.f32 %v6726_v46, %v3911_v10 }
 0x42e   : > { %4083 = vst [vmem:[#allocation14 + $0xf0] sm:$0xff] %v4043_v60  ;;  %v3912_v17 = vmul.f32 %v5333_v9, %v3862_v63  ;;  %v3863_v62 = vsub.f32 %v6805_v3, %v6921_v7  ;;  %v3914_v2 = vmul.f32 %v6838_v49, %v3864_v50  ;;  %v5335_v47 = vpop.eup %5334  ;;  %4084 = vst [vmem:[#allocation14 + $0xf8] sm:$0xff] %v4044_v33 }
 0x42f   : > { %v3915_v54 = vmul.f32 %v6872_v38, %v3865_v34  ;;  %v3916_v18 = vmul.f32 %v6900_v15, %v3866_v41  ;;  %v3917_v37 = vmul.f32 %v5333_v9, %v3867_v43  ;;  %v3868_v36 = vsub.f32 %v6811_v0, %v6921_v7 }
 0x430   : > { %v3883_v31 = vmul.f32 %v5335_v47, %v3833_v51  ;;  %v3888_v3 = vmul.f32 %v5335_v47, %v3838_v16  ;;  %v3893_v49 = vmul.f32 %v5335_v47, %v3843_v5  ;;  %v3898_v38 = vmul.f32 %v5335_v47, %v3848_v58 }
 0x431   : > { %v3903_v0 = vmul.f32 %v5335_v47, %v3853_v57  ;;  %v3908_v15 = vmul.f32 %v5335_v47, %v3858_v12  ;;  %v4045_v14 = vadd.f32 %v6735_v23, %v3978_v24  ;;  %v3979_v51 = vmul.f32 %v7218_v32, %v3912_v17 }
 0x432   : > { %v3950_v35 = vmul.f32 %v6849_v42, %v3883_v31  ;;  %v3955_v16 = vmul.f32 %v6849_v42, %v3888_v3  ;;  %v3960_v22 = vmul.f32 %v6849_v42, %v3893_v49  ;;  %v3965_v5 = vmul.f32 %v6849_v42, %v3898_v38 }
 0x433   : > { %v3970_v39 = vmul.f32 %v6849_v42, %v3903_v0  ;;  %v3975_v58 = vmul.f32 %v6849_v42, %v3908_v15  ;;  %4085 = vst [vmem:[#allocation14 + $0x100] sm:$0xff] %v4045_v14  ;;  %v4046_v7 = vadd.f32 %v7219_v29, %v3979_v51  ;;  %v3913_v19 = vmul.f32 %v5335_v47, %v3863_v62 }
 0x434   : > { %v4017_v57 = vadd.f32 %v6863_v21, %v3950_v35  ;;  %v4022_v9 = vadd.f32 %v6863_v21, %v3955_v16  ;;  %v4027_v13 = vadd.f32 %v6863_v21, %v3960_v22  ;;  %v4032_v25 = vadd.f32 %v6863_v21, %v3965_v5 }
 0x435   : > { %v4037_v28 = vadd.f32 %v6863_v21, %v3970_v39  ;;  %v4042_v55 = vadd.f32 %v6863_v21, %v3975_v58  ;;  %4086 = vst [vmem:[#allocation14 + $0x108] sm:$0xff] %v4046_v7  ;;  %v3980_v4 = vmul.f32 %v6849_v42, %v3913_v19  ;;  %v3981_v1 = vmul.f32 %v6626_v56, %v3914_v2 }
 0x436   : > { %4057 = vst [vmem:[#allocation14 + $0x20] sm:$0xff] %v4017_v57  ;;  %4062 = vst [vmem:[#allocation14 + $0x48] sm:$0xff] %v4022_v9  ;;  %v3982_v20 = vmul.f32 %v6679_v40, %v3915_v54  ;;  %v3983_v52 = vmul.f32 %v6726_v46, %v3916_v18  ;;  %v3984_v53 = vmul.f32 %v7218_v32, %v3917_v37 }
 0x437   : > { %4067 = vst [vmem:[#allocation14 + $0x70] sm:$0xff] %v4027_v13  ;;  %4072 = vst [vmem:[#allocation14 + $0x98] sm:$0xff] %v4032_v25  ;;  %v3918_v6 = vmul.f32 %v5335_v47, %v3868_v36  ;;  %v4047_v44 = vadd.f32 %v6863_v21, %v3980_v4  ;;  %v4048_v30 = vadd.f32 %v6639_v8, %v3981_v1 }
 0x438   : > { %4077 = vst [vmem:[#allocation14 + $0xc0] sm:$0xff] %v4037_v28  ;;  %4082 = vst [vmem:[#allocation14 + $0xe8] sm:$0xff] %v4042_v55  ;;  %v4049_v60 = vadd.f32 %v6684_v48, %v3982_v20  ;;  %v4050_v56 = vadd.f32 %v6735_v23, %v3983_v52  ;;  %v4051_v61 = vadd.f32 %v7219_v29, %v3984_v53 }
 0x439   : > { %v3985_v12 = vmul.f32 %v6849_v42, %v3918_v6  ;;  %4087 = vst [vmem:[#allocation14 + $0x110] sm:$0xff] %v4047_v44  ;;  %4088 = vst [vmem:[#allocation14 + $0x118] sm:$0xff] %v4048_v30 }
 0x43a   : > { %4089 = vst [vmem:[#allocation14 + $0x120] sm:$0xff] %v4049_v60  ;;  %4090 = vst [vmem:[#allocation14 + $0x128] sm:$0xff] %v4050_v56 }
 0x43b   : > { %4091 = vst [vmem:[#allocation14 + $0x130] sm:$0xff] %v4051_v61  ;;  %v4052_v40 = vadd.f32 %v6863_v21, %v3985_v12 }
 0x43d   : > { %4092 = vst [vmem:[#allocation14 + $0x138] sm:$0xff] %v4052_v40 }
 0x43e PF: > { %p4828_p7 = scmp.eq.s32.totalorder %s5695_s28, 4  ;;  %s5633_s11 = smov [#allocation14]  }
 0x43f   : > { %s4099_s27 = sshll.u32 %s5633_s11, 4  ;;  %s4100_s27 = int_to_ptr.vmem [resolvable:$true] %s4099_s27 }
 0x440   : > { %s5540_s21 = scalar_lea.vmem %s4100_s27, 5120  ;;  %p5547_p1 = scmp.lt.s32.totalorder %s4100_s27, %s4100_s27 }
 0x441   : > { %p5541_p8 = scmp.ne.s32.totalorder %s4100_s27, %s5540_s21  ;;  %p5548_p3 = scmp.lt.s32.totalorder %s5540_s21, %s5540_s21 }
 0x443   : > { %p5542_p11 = pnand %p5541_p8, %p4828_p7  ;;  %p5549_p6 = por %p5548_p3, %p5547_p1 }
 0x445   : > { %p5543_p5 = pneg %p5542_p11 }
 0x447   : > { %p5550_p10 = pnand %p5549_p6, %p5543_p5 }
 0x449   : > { %5553 = shalt.err (!%p5550_p10)
}
 0x44a   : > { %s7225_s26 = sld [smem:[#allocation41_spill]] }
 0x450   : > { %s7226_s18 = smov %s7225_s26  ;;  %s5554_s30 = scalar_lea.hbm %s7225_s26, 5120 }
 0x451   : > { %p5555_p13 = scmp.ne.s32.totalorder %s7226_s18, %s5554_s30  ;;  %p5560_p4 = scmp.lt.u32.totalorder %s5554_s30, %s7226_s18 }
 0x453   : > { %p5556_p2 = pnand %p5555_p13, %p4828_p7 }
 0x455   : > { %p5557_p12 = pneg %p5556_p2 }
 0x457   : > { %p5562_p0 = pnand %p5560_p4, %p5557_p12 }
 0x459   : > { %5565 = shalt.err (!%p5562_p0)
}
 0x45a   : > { %s5634_s14 = smov 640   ;;  %s5635_s10 = smov 40  }
 0x45b   : > { %4794 = dma.vmem_to_hbm [thread:$0]  (%p4828_p7), %s4100_s27, 5120, %s7226_s18, [#allocation4], %s5634_s14, %s5634_s14, %s5635_s10  }
 0x45c   : > { %5599 = dma.done.wait (%p4828_p7), [#allocation4], 5120  }
 0x45d   : > { %5601 = vsyncadd (%p4828_p7), [#allocation4], 4294962176 }
 0x45e PF: > { %s7227_s27 = sld [smem:[#allocation21_spill]]  ;;  %s7228_s9 = sld [smem:[#allocation20_spill]] }
 0x45f   : > { %s7229_s26 = sld [smem:[#allocation22_spill]]  ;;  %s7230_s24 = smov %s5608_s25 }
 0x464   : > { %p23_p9 = scmp.ge.s32.totalorder %s7227_s27, 7   ;;  %s7231_s25 = smov %s7228_s9 }
 0x466   :  { %25 = sbr.rel (!%p23_p9) target bundleno = 12 (0xc), region = 141 }
 0x46d   :  { %4115 = vsyncpa [#allocation3], 1 }
 0x46e   :  { %4117 = vsyncpa [#allocation3 + $0x1], 1 }
 0x46f   :  { %4118 = vsyncpa [#allocation6], 1 }
 0x470   :  { %4120 = vsyncpa [#allocation6 + $0x1], 1 }
 0x471   :  { %4121 = vsyncpa [#allocation9], 1 }
 0x472   :  { %4123 = vsyncpa [#allocation9 + $0x1], 1 }
 0x473   :  { %4124 = vsyncpa [#allocation12], 1 }
 0x474   :  { %4125 = vsyncpa [#allocation4], 1 }
 0x475   :  { %4127 = vsyncpa [#allocation4 + $0x1], 1 }

</bundles_post_ra>
